<compile_context>
chip_gen: v7x
topology: tpu7x:2x2x1
jax: 0.10.0
libtpu: 0.0.40
codegen_flags: <defaults>
</compile_context>

<pallas_src>
import functools

import jax
import jax.numpy as jnp
import numpy as np
from jax.experimental import pallas as pl
from jax.experimental.pallas import tpu as pltpu

K = 7            # conv kernel size
PAD = (K - 1) // 2
LANES = 128      # TPU vreg lane width


def attention_gate_kernel(w_ref, b_ref, x_ref, o_ref,
                          zp_ref, pad_ref, s2d_ref, sp_ref, *, C, H, W):
    # w_ref  : SMEM f32[2*K*K]        conv weights with BN scale folded in
    # b_ref  : SMEM f32[1]            folded BN bias
    # x_ref  : VMEM (1, C*RPC, 128)   packed input   (RPC = H*W // 128 rows/channel)
    # o_ref  : VMEM (1, C*RPC, 128)   packed output
    # zp_ref : VMEM (2, RPC, 128)     packed ZPool planes (max, mean)
    # pad_ref: VMEM (2, H+6, W+6)     zero-padded 2-D ZPool planes for the conv
    # s2d_ref: VMEM (H, W)            2-D sigmoid scale
    # sp_ref : VMEM (RPC, 128)        packed (lane-dense) scale
    rpc = (H * W) // LANES     # packed sublane rows per channel
    rps = LANES // W           # image rows per packed sublane row

    # ---- ZPool over channels, streamed over lane-dense (rpc, 128) slabs ----
    x0 = x_ref[0, 0:rpc, :].astype(jnp.float32)
    ch_max = x0
    ch_sum = x0
    for c in range(1, C):
        xc = x_ref[0, c * rpc:(c + 1) * rpc, :].astype(jnp.float32)
        ch_max = jnp.maximum(ch_max, xc)
        ch_sum = ch_sum + xc
    zp_ref[0] = ch_max
    zp_ref[1] = ch_sum * (1.0 / C)

    # ---- unpack the packed ZPool planes into the zero-padded 2-D buffer ----
    # Interior is fully overwritten each step; re-zeroing the (tiny) buffer is
    # required because scratch persists per-core under a parallel grid.
    pad_ref[...] = jnp.zeros_like(pad_ref)
    for cin in range(2):
        for h in range(H):
            p, j = divmod(h, rps)     # image row h lives at sublane row p, lanes [j*W, (j+1)*W)
            pad_ref[cin, PAD + h, PAD:PAD + W] = zp_ref[cin, p, j * W:(j + 1) * W]

    # ---- 7x7 conv (2 -> 1, BN scale pre-folded), fully unrolled on VPU ----
    wv = [w_ref[i] for i in range(2 * K * K)]     # hoisted scalar reads
    acc = jnp.zeros((H, W), jnp.float32)
    for cin in range(2):
        for dy in range(K):
            for dx in range(K):
                acc = acc + wv[cin * K * K + dy * K + dx] * pad_ref[cin, dy:dy + H, dx:dx + W]

    # ---- folded-BN bias + sigmoid ----
    s2d_ref[...] = jax.nn.sigmoid(acc + b_ref[0])

    # ---- repack the (H, W) scale into the lane-dense packed layout ----
    for h in range(H):
        p, j = divmod(h, rps)
        sp_ref[p, j * W:(j + 1) * W] = s2d_ref[h, :]

    # ---- gate the input: channel-streamed, dense 128-lane loads/stores ----
    scale = sp_ref[...].astype(x_ref.dtype)       # multiply in x's native dtype
    for c in range(C):
        sl = slice(c * rpc, (c + 1) * rpc)
        o_ref[0, sl, :] = (x_ref[0, sl, :] * scale).astype(o_ref.dtype)


def attention_gate(x, conv_w, gamma, beta, running_mean, running_var, eps=1e-5):
    """x: (N, C, H, W). conv_w: (1, 2, 7, 7). BN params: (1,). Eval-mode BN."""
    N, C, H, W = x.shape
    assert W <= LANES and LANES % W == 0 and (H * W) % LANES == 0, (
        "lane-dense packed layout requires W | 128 and 128 | H*W")
    # TODO(synk): general H, W that do not divide 128 need an unpacked (H, W) block path.
    rpc = (H * W) // LANES

    # Fold BatchNorm2d (eval mode) into the conv weights + a single bias.
    bn_scale = gamma / jnp.sqrt(running_var + eps)            # (1,)
    bn_bias = (beta - running_mean * bn_scale).astype(jnp.float32)
    w_flat = (conv_w * bn_scale.reshape(-1, 1, 1, 1)).reshape(-1).astype(jnp.float32)

    # Lane-dense view: (N, C, H, W) -> (N, C*H*W/128, 128) (free reshape in XLA).
    x_p = x.reshape(N, C * rpc, LANES)

    kernel = functools.partial(attention_gate_kernel, C=C, H=H, W=W)

    # Block = one full batch element (scales with C; for very large C*H*W add a
    # channel grid axis / halve the tile to respect v7x's 64 MiB VMEM).
    out_p = pl.pallas_call(
        kernel,
        out_shape=jax.ShapeDtypeStruct((N, C * rpc, LANES), x.dtype),
        grid_spec=pltpu.PrefetchScalarGridSpec(
            num_scalar_prefetch=0,
            grid=(N,),
            in_specs=[
                pl.BlockSpec(memory_space=pltpu.MemorySpace.SMEM),     # folded conv weights
                pl.BlockSpec(memory_space=pltpu.MemorySpace.SMEM),     # folded BN bias
                pl.BlockSpec((1, C * rpc, LANES), lambda n: (n, 0, 0)),  # x (packed)
            ],
            out_specs=pl.BlockSpec((1, C * rpc, LANES), lambda n: (n, 0, 0)),
            scratch_shapes=[
                pltpu.VMEM((2, rpc, LANES), jnp.float32),               # packed ZPool
                pltpu.VMEM((2, H + 2 * PAD, W + 2 * PAD), jnp.float32),  # padded conv input
                pltpu.VMEM((H, W), jnp.float32),                        # 2-D scale
                pltpu.VMEM((rpc, LANES), jnp.float32),                  # packed scale
            ],
        ),
        compiler_params=pltpu.CompilerParams(
            dimension_semantics=("parallel",)),   # batch elems independent -> v7x 2-TC sharding
    )(w_flat, bn_bias, x_p)
    return out_p.reshape(N, C, H, W)


def attention_gate_reference(x, conv_w, gamma, beta, running_mean, running_var,
                             eps=1e-5):
    """Pure-JAX reference matching the PyTorch module (BN in eval mode)."""
    ch_max = jnp.max(x, axis=1, keepdims=True)
    ch_mean = jnp.mean(x, axis=1, keepdims=True)
    z = jnp.concatenate([ch_max, ch_mean], axis=1)            # (N, 2, H, W)
    y = jax.lax.conv_general_dilated(
        z, conv_w, window_strides=(1, 1), padding=[(PAD, PAD), (PAD, PAD)],
        dimension_numbers=("NCHW", "OIHW", "NCHW"))
    g = gamma.reshape(1, -1, 1, 1)
    b = beta.reshape(1, -1, 1, 1)
    rm = running_mean.reshape(1, -1, 1, 1)
    rv = running_var.reshape(1, -1, 1, 1)
    y = (y - rm) / jnp.sqrt(rv + eps) * g + b
    return x * jax.nn.sigmoid(y)


if __name__ == "__main__":
    key = jax.random.PRNGKey(0)
    k_x, k_w, k_g, k_b, k_m, k_v = jax.random.split(key, 6)

    N, C, H, W = 2, 4, 16, 16
    x = jax.random.normal(k_x, (N, C, H, W), dtype=jnp.float32)

    # Deterministic synthetic parameters (shapes from the module's __init__).
    conv_w = 0.1 * jax.random.normal(k_w, (1, 2, K, K), dtype=jnp.float32)
    gamma = 1.0 + 0.1 * jax.random.normal(k_g, (1,), dtype=jnp.float32)
    beta = 0.1 * jax.random.normal(k_b, (1,), dtype=jnp.float32)
    running_mean = 0.05 * jax.random.normal(k_m, (1,), dtype=jnp.float32)
    running_var = 1.0 + 0.1 * jnp.abs(jax.random.normal(k_v, (1,), dtype=jnp.float32))

    out = attention_gate(x, conv_w, gamma, beta, running_mean, running_var)
    out = jax.block_until_ready(out)

    ref = attention_gate_reference(x, conv_w, gamma, beta, running_mean,
                                   running_var)
    np.testing.assert_allclose(np.asarray(out), np.asarray(ref),
                               atol=1e-5, rtol=1e-5)
    print("KERNEL_OK")
</pallas_src>

<mosaic_0001>
module attributes {stable_mosaic.version = 11 : i64} {
  func.func @attention_gate_kernel(%arg0: i32, %arg1: memref<98xf32, #tpu.memory_space<smem>>, %arg2: memref<1xf32, #tpu.memory_space<smem>>, %arg3: memref<1x8x128xf32, #tpu.memory_space<vmem>>, %arg4: memref<1x8x128xf32, #tpu.memory_space<vmem>>, %arg5: memref<2x2x128xf32, #tpu.memory_space<vmem>>, %arg6: memref<2x22x22xf32, #tpu.memory_space<vmem>>, %arg7: memref<16x16xf32, #tpu.memory_space<vmem>>, %arg8: memref<2x128xf32, #tpu.memory_space<vmem>>) attributes {dimension_semantics = [#tpu.dimension_semantics<parallel>], iteration_bounds = array<i64: 2>, scalar_prefetch = 0 : i64, scratch_operands = 4 : i64, tpu.core_type = #tpu.core_type<tc>, window_params = [{transform_indices = @transform_0, window_bounds = array<i64: 98>}, {transform_indices = @transform_1, window_bounds = array<i64: 1>}, {transform_indices = @transform_2, window_bounds = array<i64: 1, 8, 128>}, {transform_indices = @transform_3, window_bounds = array<i64: 1, 8, 128>}]} {
    %c0 = arith.constant 0 : index
    %c0_0 = arith.constant 0 : index
    %c0_1 = arith.constant 0 : index
    %0 = vector.load %arg3[%c0, %c0_0, %c0_1] : memref<1x8x128xf32, #tpu.memory_space<vmem>>, vector<1x2x128xf32>
    %1 = vector.shape_cast %0 : vector<1x2x128xf32> to vector<2x128xf32>
    %c0_2 = arith.constant 0 : index
    %c2 = arith.constant 2 : index
    %c0_3 = arith.constant 0 : index
    %2 = vector.load %arg3[%c0_2, %c2, %c0_3] : memref<1x8x128xf32, #tpu.memory_space<vmem>>, vector<1x2x128xf32>
    %3 = vector.shape_cast %2 : vector<1x2x128xf32> to vector<2x128xf32>
    %4 = arith.maximumf %1, %3 : vector<2x128xf32>
    %5 = arith.addf %1, %3 : vector<2x128xf32>
    %c0_4 = arith.constant 0 : index
    %c4 = arith.constant 4 : index
    %c0_5 = arith.constant 0 : index
    %6 = vector.load %arg3[%c0_4, %c4, %c0_5] : memref<1x8x128xf32, #tpu.memory_space<vmem>>, vector<1x2x128xf32>
    %7 = vector.shape_cast %6 : vector<1x2x128xf32> to vector<2x128xf32>
    %8 = arith.maximumf %4, %7 : vector<2x128xf32>
    %9 = arith.addf %5, %7 : vector<2x128xf32>
    %c0_6 = arith.constant 0 : index
    %c6 = arith.constant 6 : index
    %c0_7 = arith.constant 0 : index
    %10 = vector.load %arg3[%c0_6, %c6, %c0_7] : memref<1x8x128xf32, #tpu.memory_space<vmem>>, vector<1x2x128xf32>
    %11 = vector.shape_cast %10 : vector<1x2x128xf32> to vector<2x128xf32>
    %12 = arith.maximumf %8, %11 : vector<2x128xf32>
    %13 = arith.addf %9, %11 : vector<2x128xf32>
    %c0_8 = arith.constant 0 : index
    %c0_9 = arith.constant 0 : index
    %c0_10 = arith.constant 0 : index
    %14 = vector.load %arg5[%c0_8, %c0_9, %c0_10] : memref<2x2x128xf32, #tpu.memory_space<vmem>>, vector<1x2x128xf32>
    %15 = vector.shape_cast %14 : vector<1x2x128xf32> to vector<2x128xf32>
    %16 = vector.shape_cast %12 : vector<2x128xf32> to vector<1x2x128xf32>
    tpu.vector_store %arg5[%c0_8, %c0_9, %c0_10], %16 {strides = array<i32>} : memref<2x2x128xf32, #tpu.memory_space<vmem>>, vector<1x2x128xf32>,
    %cst = arith.constant 2.500000e-01 : f32
    %17 = vector.broadcast %cst : f32 to vector<2x128xf32>
    %18 = arith.mulf %13, %17 : vector<2x128xf32>
    %c1 = arith.constant 1 : index
    %c0_11 = arith.constant 0 : index
    %c0_12 = arith.constant 0 : index
    %19 = vector.load %arg5[%c1, %c0_11, %c0_12] : memref<2x2x128xf32, #tpu.memory_space<vmem>>, vector<1x2x128xf32>
    %20 = vector.shape_cast %19 : vector<1x2x128xf32> to vector<2x128xf32>
    %21 = vector.shape_cast %18 : vector<2x128xf32> to vector<1x2x128xf32>
    tpu.vector_store %arg5[%c1, %c0_11, %c0_12], %21 {strides = array<i32>} : memref<2x2x128xf32, #tpu.memory_space<vmem>>, vector<1x2x128xf32>,
    %cst_13 = arith.constant 0.000000e+00 : f32
    %22 = vector.broadcast %cst_13 : f32 to vector<2x22x22xf32>
    %c0_14 = arith.constant 0 : index
    %c0_15 = arith.constant 0 : index
    %c0_16 = arith.constant 0 : index
    %23 = vector.load %arg6[%c0_14, %c0_15, %c0_16] : memref<2x22x22xf32, #tpu.memory_space<vmem>>, vector<2x22x22xf32>
    tpu.vector_store %arg6[%c0_14, %c0_15, %c0_16], %22 {strides = array<i32>} : memref<2x22x22xf32, #tpu.memory_space<vmem>>, vector<2x22x22xf32>,
    %c0_17 = arith.constant 0 : index
    %c0_18 = arith.constant 0 : index
    %c0_19 = arith.constant 0 : index
    %24 = vector.load %arg5[%c0_17, %c0_18, %c0_19] : memref<2x2x128xf32, #tpu.memory_space<vmem>>, vector<1x1x16xf32>
    %25 = vector.shape_cast %24 : vector<1x1x16xf32> to vector<16xf32>
    %c0_20 = arith.constant 0 : index
    %c3 = arith.constant 3 : index
    %c3_21 = arith.constant 3 : index
    %26 = vector.load %arg6[%c0_20, %c3, %c3_21] : memref<2x22x22xf32, #tpu.memory_space<vmem>>, vector<1x1x16xf32>
    %27 = vector.shape_cast %26 : vector<1x1x16xf32> to vector<16xf32>
    %28 = vector.shape_cast %25 : vector<16xf32> to vector<1x1x16xf32>
    tpu.vector_store %arg6[%c0_20, %c3, %c3_21], %28 {strides = array<i32>} : memref<2x22x22xf32, #tpu.memory_space<vmem>>, vector<1x1x16xf32>,
    %c0_22 = arith.constant 0 : index
    %c0_23 = arith.constant 0 : index
    %c16 = arith.constant 16 : index
    %29 = vector.load %arg5[%c0_22, %c0_23, %c16] : memref<2x2x128xf32, #tpu.memory_space<vmem>>, vector<1x1x16xf32>
    %30 = vector.shape_cast %29 : vector<1x1x16xf32> to vector<16xf32>
    %c0_24 = arith.constant 0 : index
    %c4_25 = arith.constant 4 : index
    %c3_26 = arith.constant 3 : index
    %31 = vector.load %arg6[%c0_24, %c4_25, %c3_26] : memref<2x22x22xf32, #tpu.memory_space<vmem>>, vector<1x1x16xf32>
    %32 = vector.shape_cast %31 : vector<1x1x16xf32> to vector<16xf32>
    %33 = vector.shape_cast %30 : vector<16xf32> to vector<1x1x16xf32>
    tpu.vector_store %arg6[%c0_24, %c4_25, %c3_26], %33 {strides = array<i32>} : memref<2x22x22xf32, #tpu.memory_space<vmem>>, vector<1x1x16xf32>,
    %c0_27 = arith.constant 0 : index
    %c0_28 = arith.constant 0 : index
    %c32 = arith.constant 32 : index
    %34 = vector.load %arg5[%c0_27, %c0_28, %c32] : memref<2x2x128xf32, #tpu.memory_space<vmem>>, vector<1x1x16xf32>
    %35 = vector.shape_cast %34 : vector<1x1x16xf32> to vector<16xf32>
    %c0_29 = arith.constant 0 : index
    %c5 = arith.constant 5 : index
    %c3_30 = arith.constant 3 : index
    %36 = vector.load %arg6[%c0_29, %c5, %c3_30] : memref<2x22x22xf32, #tpu.memory_space<vmem>>, vector<1x1x16xf32>
    %37 = vector.shape_cast %36 : vector<1x1x16xf32> to vector<16xf32>
    %38 = vector.shape_cast %35 : vector<16xf32> to vector<1x1x16xf32>
    tpu.vector_store %arg6[%c0_29, %c5, %c3_30], %38 {strides = array<i32>} : memref<2x22x22xf32, #tpu.memory_space<vmem>>, vector<1x1x16xf32>,
    %c0_31 = arith.constant 0 : index
    %c0_32 = arith.constant 0 : index
    %c48 = arith.constant 48 : index
    %39 = vector.load %arg5[%c0_31, %c0_32, %c48] : memref<2x2x128xf32, #tpu.memory_space<vmem>>, vector<1x1x16xf32>
    %40 = vector.shape_cast %39 : vector<1x1x16xf32> to vector<16xf32>
    %c0_33 = arith.constant 0 : index
    %c6_34 = arith.constant 6 : index
    %c3_35 = arith.constant 3 : index
    %41 = vector.load %arg6[%c0_33, %c6_34, %c3_35] : memref<2x22x22xf32, #tpu.memory_space<vmem>>, vector<1x1x16xf32>
    %42 = vector.shape_cast %41 : vector<1x1x16xf32> to vector<16xf32>
    %43 = vector.shape_cast %40 : vector<16xf32> to vector<1x1x16xf32>
    tpu.vector_store %arg6[%c0_33, %c6_34, %c3_35], %43 {strides = array<i32>} : memref<2x22x22xf32, #tpu.memory_space<vmem>>, vector<1x1x16xf32>,
    %c0_36 = arith.constant 0 : index
    %c0_37 = arith.constant 0 : index
    %c64 = arith.constant 64 : index
    %44 = vector.load %arg5[%c0_36, %c0_37, %c64] : memref<2x2x128xf32, #tpu.memory_space<vmem>>, vector<1x1x16xf32>
    %45 = vector.shape_cast %44 : vector<1x1x16xf32> to vector<16xf32>
    %c0_38 = arith.constant 0 : index
    %c7 = arith.constant 7 : index
    %c3_39 = arith.constant 3 : index
    %46 = vector.load %arg6[%c0_38, %c7, %c3_39] : memref<2x22x22xf32, #tpu.memory_space<vmem>>, vector<1x1x16xf32>
    %47 = vector.shape_cast %46 : vector<1x1x16xf32> to vector<16xf32>
    %48 = vector.shape_cast %45 : vector<16xf32> to vector<1x1x16xf32>
    tpu.vector_store %arg6[%c0_38, %c7, %c3_39], %48 {strides = array<i32>} : memref<2x22x22xf32, #tpu.memory_space<vmem>>, vector<1x1x16xf32>,
    %c0_40 = arith.constant 0 : index
    %c0_41 = arith.constant 0 : index
    %c80 = arith.constant 80 : index
    %49 = vector.load %arg5[%c0_40, %c0_41, %c80] : memref<2x2x128xf32, #tpu.memory_space<vmem>>, vector<1x1x16xf32>
    %50 = vector.shape_cast %49 : vector<1x1x16xf32> to vector<16xf32>
    %c0_42 = arith.constant 0 : index
    %c8 = arith.constant 8 : index
    %c3_43 = arith.constant 3 : index
    %51 = vector.load %arg6[%c0_42, %c8, %c3_43] : memref<2x22x22xf32, #tpu.memory_space<vmem>>, vector<1x1x16xf32>
    %52 = vector.shape_cast %51 : vector<1x1x16xf32> to vector<16xf32>
    %53 = vector.shape_cast %50 : vector<16xf32> to vector<1x1x16xf32>
    tpu.vector_store %arg6[%c0_42, %c8, %c3_43], %53 {strides = array<i32>} : memref<2x22x22xf32, #tpu.memory_space<vmem>>, vector<1x1x16xf32>,
    %c0_44 = arith.constant 0 : index
    %c0_45 = arith.constant 0 : index
    %c96 = arith.constant 96 : index
    %54 = vector.load %arg5[%c0_44, %c0_45, %c96] : memref<2x2x128xf32, #tpu.memory_space<vmem>>, vector<1x1x16xf32>
    %55 = vector.shape_cast %54 : vector<1x1x16xf32> to vector<16xf32>
    %c0_46 = arith.constant 0 : index
    %c9 = arith.constant 9 : index
    %c3_47 = arith.constant 3 : index
    %56 = vector.load %arg6[%c0_46, %c9, %c3_47] : memref<2x22x22xf32, #tpu.memory_space<vmem>>, vector<1x1x16xf32>
    %57 = vector.shape_cast %56 : vector<1x1x16xf32> to vector<16xf32>
    %58 = vector.shape_cast %55 : vector<16xf32> to vector<1x1x16xf32>
    tpu.vector_store %arg6[%c0_46, %c9, %c3_47], %58 {strides = array<i32>} : memref<2x22x22xf32, #tpu.memory_space<vmem>>, vector<1x1x16xf32>,
    %c0_48 = arith.constant 0 : index
    %c0_49 = arith.constant 0 : index
    %c112 = arith.constant 112 : index
    %59 = vector.load %arg5[%c0_48, %c0_49, %c112] : memref<2x2x128xf32, #tpu.memory_space<vmem>>, vector<1x1x16xf32>
    %60 = vector.shape_cast %59 : vector<1x1x16xf32> to vector<16xf32>
    %c0_50 = arith.constant 0 : index
    %c10 = arith.constant 10 : index
    %c3_51 = arith.constant 3 : index
    %61 = vector.load %arg6[%c0_50, %c10, %c3_51] : memref<2x22x22xf32, #tpu.memory_space<vmem>>, vector<1x1x16xf32>
    %62 = vector.shape_cast %61 : vector<1x1x16xf32> to vector<16xf32>
    %63 = vector.shape_cast %60 : vector<16xf32> to vector<1x1x16xf32>
    tpu.vector_store %arg6[%c0_50, %c10, %c3_51], %63 {strides = array<i32>} : memref<2x22x22xf32, #tpu.memory_space<vmem>>, vector<1x1x16xf32>,
    %c0_52 = arith.constant 0 : index
    %c1_53 = arith.constant 1 : index
    %c0_54 = arith.constant 0 : index
    %64 = vector.load %arg5[%c0_52, %c1_53, %c0_54] : memref<2x2x128xf32, #tpu.memory_space<vmem>>, vector<1x1x16xf32>
    %65 = vector.shape_cast %64 : vector<1x1x16xf32> to vector<16xf32>
    %c0_55 = arith.constant 0 : index
    %c11 = arith.constant 11 : index
    %c3_56 = arith.constant 3 : index
    %66 = vector.load %arg6[%c0_55, %c11, %c3_56] : memref<2x22x22xf32, #tpu.memory_space<vmem>>, vector<1x1x16xf32>
    %67 = vector.shape_cast %66 : vector<1x1x16xf32> to vector<16xf32>
    %68 = vector.shape_cast %65 : vector<16xf32> to vector<1x1x16xf32>
    tpu.vector_store %arg6[%c0_55, %c11, %c3_56], %68 {strides = array<i32>} : memref<2x22x22xf32, #tpu.memory_space<vmem>>, vector<1x1x16xf32>,
    %c0_57 = arith.constant 0 : index
    %c1_58 = arith.constant 1 : index
    %c16_59 = arith.constant 16 : index
    %69 = vector.load %arg5[%c0_57, %c1_58, %c16_59] : memref<2x2x128xf32, #tpu.memory_space<vmem>>, vector<1x1x16xf32>
    %70 = vector.shape_cast %69 : vector<1x1x16xf32> to vector<16xf32>
    %c0_60 = arith.constant 0 : index
    %c12 = arith.constant 12 : index
    %c3_61 = arith.constant 3 : index
    %71 = vector.load %arg6[%c0_60, %c12, %c3_61] : memref<2x22x22xf32, #tpu.memory_space<vmem>>, vector<1x1x16xf32>
    %72 = vector.shape_cast %71 : vector<1x1x16xf32> to vector<16xf32>
    %73 = vector.shape_cast %70 : vector<16xf32> to vector<1x1x16xf32>
    tpu.vector_store %arg6[%c0_60, %c12, %c3_61], %73 {strides = array<i32>} : memref<2x22x22xf32, #tpu.memory_space<vmem>>, vector<1x1x16xf32>,
    %c0_62 = arith.constant 0 : index
    %c1_63 = arith.constant 1 : index
    %c32_64 = arith.constant 32 : index
    %74 = vector.load %arg5[%c0_62, %c1_63, %c32_64] : memref<2x2x128xf32, #tpu.memory_space<vmem>>, vector<1x1x16xf32>
    %75 = vector.shape_cast %74 : vector<1x1x16xf32> to vector<16xf32>
    %c0_65 = arith.constant 0 : index
    %c13 = arith.constant 13 : index
    %c3_66 = arith.constant 3 : index
    %76 = vector.load %arg6[%c0_65, %c13, %c3_66] : memref<2x22x22xf32, #tpu.memory_space<vmem>>, vector<1x1x16xf32>
    %77 = vector.shape_cast %76 : vector<1x1x16xf32> to vector<16xf32>
    %78 = vector.shape_cast %75 : vector<16xf32> to vector<1x1x16xf32>
    tpu.vector_store %arg6[%c0_65, %c13, %c3_66], %78 {strides = array<i32>} : memref<2x22x22xf32, #tpu.memory_space<vmem>>, vector<1x1x16xf32>,
    %c0_67 = arith.constant 0 : index
    %c1_68 = arith.constant 1 : index
    %c48_69 = arith.constant 48 : index
    %79 = vector.load %arg5[%c0_67, %c1_68, %c48_69] : memref<2x2x128xf32, #tpu.memory_space<vmem>>, vector<1x1x16xf32>
    %80 = vector.shape_cast %79 : vector<1x1x16xf32> to vector<16xf32>
    %c0_70 = arith.constant 0 : index
    %c14 = arith.constant 14 : index
    %c3_71 = arith.constant 3 : index
    %81 = vector.load %arg6[%c0_70, %c14, %c3_71] : memref<2x22x22xf32, #tpu.memory_space<vmem>>, vector<1x1x16xf32>
    %82 = vector.shape_cast %81 : vector<1x1x16xf32> to vector<16xf32>
    %83 = vector.shape_cast %80 : vector<16xf32> to vector<1x1x16xf32>
    tpu.vector_store %arg6[%c0_70, %c14, %c3_71], %83 {strides = array<i32>} : memref<2x22x22xf32, #tpu.memory_space<vmem>>, vector<1x1x16xf32>,
    %c0_72 = arith.constant 0 : index
    %c1_73 = arith.constant 1 : index
    %c64_74 = arith.constant 64 : index
    %84 = vector.load %arg5[%c0_72, %c1_73, %c64_74] : memref<2x2x128xf32, #tpu.memory_space<vmem>>, vector<1x1x16xf32>
    %85 = vector.shape_cast %84 : vector<1x1x16xf32> to vector<16xf32>
    %c0_75 = arith.constant 0 : index
    %c15 = arith.constant 15 : index
    %c3_76 = arith.constant 3 : index
    %86 = vector.load %arg6[%c0_75, %c15, %c3_76] : memref<2x22x22xf32, #tpu.memory_space<vmem>>, vector<1x1x16xf32>
    %87 = vector.shape_cast %86 : vector<1x1x16xf32> to vector<16xf32>
    %88 = vector.shape_cast %85 : vector<16xf32> to vector<1x1x16xf32>
    tpu.vector_store %arg6[%c0_75, %c15, %c3_76], %88 {strides = array<i32>} : memref<2x22x22xf32, #tpu.memory_space<vmem>>, vector<1x1x16xf32>,
    %c0_77 = arith.constant 0 : index
    %c1_78 = arith.constant 1 : index
    %c80_79 = arith.constant 80 : index
    %89 = vector.load %arg5[%c0_77, %c1_78, %c80_79] : memref<2x2x128xf32, #tpu.memory_space<vmem>>, vector<1x1x16xf32>
    %90 = vector.shape_cast %89 : vector<1x1x16xf32> to vector<16xf32>
    %c0_80 = arith.constant 0 : index
    %c16_81 = arith.constant 16 : index
    %c3_82 = arith.constant 3 : index
    %91 = vector.load %arg6[%c0_80, %c16_81, %c3_82] : memref<2x22x22xf32, #tpu.memory_space<vmem>>, vector<1x1x16xf32>
    %92 = vector.shape_cast %91 : vector<1x1x16xf32> to vector<16xf32>
    %93 = vector.shape_cast %90 : vector<16xf32> to vector<1x1x16xf32>
    tpu.vector_store %arg6[%c0_80, %c16_81, %c3_82], %93 {strides = array<i32>} : memref<2x22x22xf32, #tpu.memory_space<vmem>>, vector<1x1x16xf32>,
    %c0_83 = arith.constant 0 : index
    %c1_84 = arith.constant 1 : index
    %c96_85 = arith.constant 96 : index
    %94 = vector.load %arg5[%c0_83, %c1_84, %c96_85] : memref<2x2x128xf32, #tpu.memory_space<vmem>>, vector<1x1x16xf32>
    %95 = vector.shape_cast %94 : vector<1x1x16xf32> to vector<16xf32>
    %c0_86 = arith.constant 0 : index
    %c17 = arith.constant 17 : index
    %c3_87 = arith.constant 3 : index
    %96 = vector.load %arg6[%c0_86, %c17, %c3_87] : memref<2x22x22xf32, #tpu.memory_space<vmem>>, vector<1x1x16xf32>
    %97 = vector.shape_cast %96 : vector<1x1x16xf32> to vector<16xf32>
    %98 = vector.shape_cast %95 : vector<16xf32> to vector<1x1x16xf32>
    tpu.vector_store %arg6[%c0_86, %c17, %c3_87], %98 {strides = array<i32>} : memref<2x22x22xf32, #tpu.memory_space<vmem>>, vector<1x1x16xf32>,
    %c0_88 = arith.constant 0 : index
    %c1_89 = arith.constant 1 : index
    %c112_90 = arith.constant 112 : index
    %99 = vector.load %arg5[%c0_88, %c1_89, %c112_90] : memref<2x2x128xf32, #tpu.memory_space<vmem>>, vector<1x1x16xf32>
    %100 = vector.shape_cast %99 : vector<1x1x16xf32> to vector<16xf32>
    %c0_91 = arith.constant 0 : index
    %c18 = arith.constant 18 : index
    %c3_92 = arith.constant 3 : index
    %101 = vector.load %arg6[%c0_91, %c18, %c3_92] : memref<2x22x22xf32, #tpu.memory_space<vmem>>, vector<1x1x16xf32>
    %102 = vector.shape_cast %101 : vector<1x1x16xf32> to vector<16xf32>
    %103 = vector.shape_cast %100 : vector<16xf32> to vector<1x1x16xf32>
    tpu.vector_store %arg6[%c0_91, %c18, %c3_92], %103 {strides = array<i32>} : memref<2x22x22xf32, #tpu.memory_space<vmem>>, vector<1x1x16xf32>,
    %c1_93 = arith.constant 1 : index
    %c0_94 = arith.constant 0 : index
    %c0_95 = arith.constant 0 : index
    %104 = vector.load %arg5[%c1_93, %c0_94, %c0_95] : memref<2x2x128xf32, #tpu.memory_space<vmem>>, vector<1x1x16xf32>
    %105 = vector.shape_cast %104 : vector<1x1x16xf32> to vector<16xf32>
    %c1_96 = arith.constant 1 : index
    %c3_97 = arith.constant 3 : index
    %c3_98 = arith.constant 3 : index
    %106 = vector.load %arg6[%c1_96, %c3_97, %c3_98] : memref<2x22x22xf32, #tpu.memory_space<vmem>>, vector<1x1x16xf32>
    %107 = vector.shape_cast %106 : vector<1x1x16xf32> to vector<16xf32>
    %108 = vector.shape_cast %105 : vector<16xf32> to vector<1x1x16xf32>
    tpu.vector_store %arg6[%c1_96, %c3_97, %c3_98], %108 {strides = array<i32>} : memref<2x22x22xf32, #tpu.memory_space<vmem>>, vector<1x1x16xf32>,
    %c1_99 = arith.constant 1 : index
    %c0_100 = arith.constant 0 : index
    %c16_101 = arith.constant 16 : index
    %109 = vector.load %arg5[%c1_99, %c0_100, %c16_101] : memref<2x2x128xf32, #tpu.memory_space<vmem>>, vector<1x1x16xf32>
    %110 = vector.shape_cast %109 : vector<1x1x16xf32> to vector<16xf32>
    %c1_102 = arith.constant 1 : index
    %c4_103 = arith.constant 4 : index
    %c3_104 = arith.constant 3 : index
    %111 = vector.load %arg6[%c1_102, %c4_103, %c3_104] : memref<2x22x22xf32, #tpu.memory_space<vmem>>, vector<1x1x16xf32>
    %112 = vector.shape_cast %111 : vector<1x1x16xf32> to vector<16xf32>
    %113 = vector.shape_cast %110 : vector<16xf32> to vector<1x1x16xf32>
    tpu.vector_store %arg6[%c1_102, %c4_103, %c3_104], %113 {strides = array<i32>} : memref<2x22x22xf32, #tpu.memory_space<vmem>>, vector<1x1x16xf32>,
    %c1_105 = arith.constant 1 : index
    %c0_106 = arith.constant 0 : index
    %c32_107 = arith.constant 32 : index
    %114 = vector.load %arg5[%c1_105, %c0_106, %c32_107] : memref<2x2x128xf32, #tpu.memory_space<vmem>>, vector<1x1x16xf32>
    %115 = vector.shape_cast %114 : vector<1x1x16xf32> to vector<16xf32>
    %c1_108 = arith.constant 1 : index
    %c5_109 = arith.constant 5 : index
    %c3_110 = arith.constant 3 : index
    %116 = vector.load %arg6[%c1_108, %c5_109, %c3_110] : memref<2x22x22xf32, #tpu.memory_space<vmem>>, vector<1x1x16xf32>
    %117 = vector.shape_cast %116 : vector<1x1x16xf32> to vector<16xf32>
    %118 = vector.shape_cast %115 : vector<16xf32> to vector<1x1x16xf32>
    tpu.vector_store %arg6[%c1_108, %c5_109, %c3_110], %118 {strides = array<i32>} : memref<2x22x22xf32, #tpu.memory_space<vmem>>, vector<1x1x16xf32>,
    %c1_111 = arith.constant 1 : index
    %c0_112 = arith.constant 0 : index
    %c48_113 = arith.constant 48 : index
    %119 = vector.load %arg5[%c1_111, %c0_112, %c48_113] : memref<2x2x128xf32, #tpu.memory_space<vmem>>, vector<1x1x16xf32>
    %120 = vector.shape_cast %119 : vector<1x1x16xf32> to vector<16xf32>
    %c1_114 = arith.constant 1 : index
    %c6_115 = arith.constant 6 : index
    %c3_116 = arith.constant 3 : index
    %121 = vector.load %arg6[%c1_114, %c6_115, %c3_116] : memref<2x22x22xf32, #tpu.memory_space<vmem>>, vector<1x1x16xf32>
    %122 = vector.shape_cast %121 : vector<1x1x16xf32> to vector<16xf32>
    %123 = vector.shape_cast %120 : vector<16xf32> to vector<1x1x16xf32>
    tpu.vector_store %arg6[%c1_114, %c6_115, %c3_116], %123 {strides = array<i32>} : memref<2x22x22xf32, #tpu.memory_space<vmem>>, vector<1x1x16xf32>,
    %c1_117 = arith.constant 1 : index
    %c0_118 = arith.constant 0 : index
    %c64_119 = arith.constant 64 : index
    %124 = vector.load %arg5[%c1_117, %c0_118, %c64_119] : memref<2x2x128xf32, #tpu.memory_space<vmem>>, vector<1x1x16xf32>
    %125 = vector.shape_cast %124 : vector<1x1x16xf32> to vector<16xf32>
    %c1_120 = arith.constant 1 : index
    %c7_121 = arith.constant 7 : index
    %c3_122 = arith.constant 3 : index
    %126 = vector.load %arg6[%c1_120, %c7_121, %c3_122] : memref<2x22x22xf32, #tpu.memory_space<vmem>>, vector<1x1x16xf32>
    %127 = vector.shape_cast %126 : vector<1x1x16xf32> to vector<16xf32>
    %128 = vector.shape_cast %125 : vector<16xf32> to vector<1x1x16xf32>
    tpu.vector_store %arg6[%c1_120, %c7_121, %c3_122], %128 {strides = array<i32>} : memref<2x22x22xf32, #tpu.memory_space<vmem>>, vector<1x1x16xf32>,
    %c1_123 = arith.constant 1 : index
    %c0_124 = arith.constant 0 : index
    %c80_125 = arith.constant 80 : index
    %129 = vector.load %arg5[%c1_123, %c0_124, %c80_125] : memref<2x2x128xf32, #tpu.memory_space<vmem>>, vector<1x1x16xf32>
    %130 = vector.shape_cast %129 : vector<1x1x16xf32> to vector<16xf32>
    %c1_126 = arith.constant 1 : index
    %c8_127 = arith.constant 8 : index
    %c3_128 = arith.constant 3 : index
    %131 = vector.load %arg6[%c1_126, %c8_127, %c3_128] : memref<2x22x22xf32, #tpu.memory_space<vmem>>, vector<1x1x16xf32>
    %132 = vector.shape_cast %131 : vector<1x1x16xf32> to vector<16xf32>
    %133 = vector.shape_cast %130 : vector<16xf32> to vector<1x1x16xf32>
    tpu.vector_store %arg6[%c1_126, %c8_127, %c3_128], %133 {strides = array<i32>} : memref<2x22x22xf32, #tpu.memory_space<vmem>>, vector<1x1x16xf32>,
    %c1_129 = arith.constant 1 : index
    %c0_130 = arith.constant 0 : index
    %c96_131 = arith.constant 96 : index
    %134 = vector.load %arg5[%c1_129, %c0_130, %c96_131] : memref<2x2x128xf32, #tpu.memory_space<vmem>>, vector<1x1x16xf32>
    %135 = vector.shape_cast %134 : vector<1x1x16xf32> to vector<16xf32>
    %c1_132 = arith.constant 1 : index
    %c9_133 = arith.constant 9 : index
    %c3_134 = arith.constant 3 : index
    %136 = vector.load %arg6[%c1_132, %c9_133, %c3_134] : memref<2x22x22xf32, #tpu.memory_space<vmem>>, vector<1x1x16xf32>
    %137 = vector.shape_cast %136 : vector<1x1x16xf32> to vector<16xf32>
    %138 = vector.shape_cast %135 : vector<16xf32> to vector<1x1x16xf32>
    tpu.vector_store %arg6[%c1_132, %c9_133, %c3_134], %138 {strides = array<i32>} : memref<2x22x22xf32, #tpu.memory_space<vmem>>, vector<1x1x16xf32>,
    %c1_135 = arith.constant 1 : index
    %c0_136 = arith.constant 0 : index
    %c112_137 = arith.constant 112 : index
    %139 = vector.load %arg5[%c1_135, %c0_136, %c112_137] : memref<2x2x128xf32, #tpu.memory_space<vmem>>, vector<1x1x16xf32>
    %140 = vector.shape_cast %139 : vector<1x1x16xf32> to vector<16xf32>
    %c1_138 = arith.constant 1 : index
    %c10_139 = arith.constant 10 : index
    %c3_140 = arith.constant 3 : index
    %141 = vector.load %arg6[%c1_138, %c10_139, %c3_140] : memref<2x22x22xf32, #tpu.memory_space<vmem>>, vector<1x1x16xf32>
    %142 = vector.shape_cast %141 : vector<1x1x16xf32> to vector<16xf32>
    %143 = vector.shape_cast %140 : vector<16xf32> to vector<1x1x16xf32>
    tpu.vector_store %arg6[%c1_138, %c10_139, %c3_140], %143 {strides = array<i32>} : memref<2x22x22xf32, #tpu.memory_space<vmem>>, vector<1x1x16xf32>,
    %c1_141 = arith.constant 1 : index
    %c1_142 = arith.constant 1 : index
    %c0_143 = arith.constant 0 : index
    %144 = vector.load %arg5[%c1_141, %c1_142, %c0_143] : memref<2x2x128xf32, #tpu.memory_space<vmem>>, vector<1x1x16xf32>
    %145 = vector.shape_cast %144 : vector<1x1x16xf32> to vector<16xf32>
    %c1_144 = arith.constant 1 : index
    %c11_145 = arith.constant 11 : index
    %c3_146 = arith.constant 3 : index
    %146 = vector.load %arg6[%c1_144, %c11_145, %c3_146] : memref<2x22x22xf32, #tpu.memory_space<vmem>>, vector<1x1x16xf32>
    %147 = vector.shape_cast %146 : vector<1x1x16xf32> to vector<16xf32>
    %148 = vector.shape_cast %145 : vector<16xf32> to vector<1x1x16xf32>
    tpu.vector_store %arg6[%c1_144, %c11_145, %c3_146], %148 {strides = array<i32>} : memref<2x22x22xf32, #tpu.memory_space<vmem>>, vector<1x1x16xf32>,
    %c1_147 = arith.constant 1 : index
    %c1_148 = arith.constant 1 : index
    %c16_149 = arith.constant 16 : index
    %149 = vector.load %arg5[%c1_147, %c1_148, %c16_149] : memref<2x2x128xf32, #tpu.memory_space<vmem>>, vector<1x1x16xf32>
    %150 = vector.shape_cast %149 : vector<1x1x16xf32> to vector<16xf32>
    %c1_150 = arith.constant 1 : index
    %c12_151 = arith.constant 12 : index
    %c3_152 = arith.constant 3 : index
    %151 = vector.load %arg6[%c1_150, %c12_151, %c3_152] : memref<2x22x22xf32, #tpu.memory_space<vmem>>, vector<1x1x16xf32>
    %152 = vector.shape_cast %151 : vector<1x1x16xf32> to vector<16xf32>
    %153 = vector.shape_cast %150 : vector<16xf32> to vector<1x1x16xf32>
    tpu.vector_store %arg6[%c1_150, %c12_151, %c3_152], %153 {strides = array<i32>} : memref<2x22x22xf32, #tpu.memory_space<vmem>>, vector<1x1x16xf32>,
    %c1_153 = arith.constant 1 : index
    %c1_154 = arith.constant 1 : index
    %c32_155 = arith.constant 32 : index
    %154 = vector.load %arg5[%c1_153, %c1_154, %c32_155] : memref<2x2x128xf32, #tpu.memory_space<vmem>>, vector<1x1x16xf32>
    %155 = vector.shape_cast %154 : vector<1x1x16xf32> to vector<16xf32>
    %c1_156 = arith.constant 1 : index
    %c13_157 = arith.constant 13 : index
    %c3_158 = arith.constant 3 : index
    %156 = vector.load %arg6[%c1_156, %c13_157, %c3_158] : memref<2x22x22xf32, #tpu.memory_space<vmem>>, vector<1x1x16xf32>
    %157 = vector.shape_cast %156 : vector<1x1x16xf32> to vector<16xf32>
    %158 = vector.shape_cast %155 : vector<16xf32> to vector<1x1x16xf32>
    tpu.vector_store %arg6[%c1_156, %c13_157, %c3_158], %158 {strides = array<i32>} : memref<2x22x22xf32, #tpu.memory_space<vmem>>, vector<1x1x16xf32>,
    %c1_159 = arith.constant 1 : index
    %c1_160 = arith.constant 1 : index
    %c48_161 = arith.constant 48 : index
    %159 = vector.load %arg5[%c1_159, %c1_160, %c48_161] : memref<2x2x128xf32, #tpu.memory_space<vmem>>, vector<1x1x16xf32>
    %160 = vector.shape_cast %159 : vector<1x1x16xf32> to vector<16xf32>
    %c1_162 = arith.constant 1 : index
    %c14_163 = arith.constant 14 : index
    %c3_164 = arith.constant 3 : index
    %161 = vector.load %arg6[%c1_162, %c14_163, %c3_164] : memref<2x22x22xf32, #tpu.memory_space<vmem>>, vector<1x1x16xf32>
    %162 = vector.shape_cast %161 : vector<1x1x16xf32> to vector<16xf32>
    %163 = vector.shape_cast %160 : vector<16xf32> to vector<1x1x16xf32>
    tpu.vector_store %arg6[%c1_162, %c14_163, %c3_164], %163 {strides = array<i32>} : memref<2x22x22xf32, #tpu.memory_space<vmem>>, vector<1x1x16xf32>,
    %c1_165 = arith.constant 1 : index
    %c1_166 = arith.constant 1 : index
    %c64_167 = arith.constant 64 : index
    %164 = vector.load %arg5[%c1_165, %c1_166, %c64_167] : memref<2x2x128xf32, #tpu.memory_space<vmem>>, vector<1x1x16xf32>
    %165 = vector.shape_cast %164 : vector<1x1x16xf32> to vector<16xf32>
    %c1_168 = arith.constant 1 : index
    %c15_169 = arith.constant 15 : index
    %c3_170 = arith.constant 3 : index
    %166 = vector.load %arg6[%c1_168, %c15_169, %c3_170] : memref<2x22x22xf32, #tpu.memory_space<vmem>>, vector<1x1x16xf32>
    %167 = vector.shape_cast %166 : vector<1x1x16xf32> to vector<16xf32>
    %168 = vector.shape_cast %165 : vector<16xf32> to vector<1x1x16xf32>
    tpu.vector_store %arg6[%c1_168, %c15_169, %c3_170], %168 {strides = array<i32>} : memref<2x22x22xf32, #tpu.memory_space<vmem>>, vector<1x1x16xf32>,
    %c1_171 = arith.constant 1 : index
    %c1_172 = arith.constant 1 : index
    %c80_173 = arith.constant 80 : index
    %169 = vector.load %arg5[%c1_171, %c1_172, %c80_173] : memref<2x2x128xf32, #tpu.memory_space<vmem>>, vector<1x1x16xf32>
    %170 = vector.shape_cast %169 : vector<1x1x16xf32> to vector<16xf32>
    %c1_174 = arith.constant 1 : index
    %c16_175 = arith.constant 16 : index
    %c3_176 = arith.constant 3 : index
    %171 = vector.load %arg6[%c1_174, %c16_175, %c3_176] : memref<2x22x22xf32, #tpu.memory_space<vmem>>, vector<1x1x16xf32>
    %172 = vector.shape_cast %171 : vector<1x1x16xf32> to vector<16xf32>
    %173 = vector.shape_cast %170 : vector<16xf32> to vector<1x1x16xf32>
    tpu.vector_store %arg6[%c1_174, %c16_175, %c3_176], %173 {strides = array<i32>} : memref<2x22x22xf32, #tpu.memory_space<vmem>>, vector<1x1x16xf32>,
    %c1_177 = arith.constant 1 : index
    %c1_178 = arith.constant 1 : index
    %c96_179 = arith.constant 96 : index
    %174 = vector.load %arg5[%c1_177, %c1_178, %c96_179] : memref<2x2x128xf32, #tpu.memory_space<vmem>>, vector<1x1x16xf32>
    %175 = vector.shape_cast %174 : vector<1x1x16xf32> to vector<16xf32>
    %c1_180 = arith.constant 1 : index
    %c17_181 = arith.constant 17 : index
    %c3_182 = arith.constant 3 : index
    %176 = vector.load %arg6[%c1_180, %c17_181, %c3_182] : memref<2x22x22xf32, #tpu.memory_space<vmem>>, vector<1x1x16xf32>
    %177 = vector.shape_cast %176 : vector<1x1x16xf32> to vector<16xf32>
    %178 = vector.shape_cast %175 : vector<16xf32> to vector<1x1x16xf32>
    tpu.vector_store %arg6[%c1_180, %c17_181, %c3_182], %178 {strides = array<i32>} : memref<2x22x22xf32, #tpu.memory_space<vmem>>, vector<1x1x16xf32>,
    %c1_183 = arith.constant 1 : index
    %c1_184 = arith.constant 1 : index
    %c112_185 = arith.constant 112 : index
    %179 = vector.load %arg5[%c1_183, %c1_184, %c112_185] : memref<2x2x128xf32, #tpu.memory_space<vmem>>, vector<1x1x16xf32>
    %180 = vector.shape_cast %179 : vector<1x1x16xf32> to vector<16xf32>
    %c1_186 = arith.constant 1 : index
    %c18_187 = arith.constant 18 : index
    %c3_188 = arith.constant 3 : index
    %181 = vector.load %arg6[%c1_186, %c18_187, %c3_188] : memref<2x22x22xf32, #tpu.memory_space<vmem>>, vector<1x1x16xf32>
    %182 = vector.shape_cast %181 : vector<1x1x16xf32> to vector<16xf32>
    %183 = vector.shape_cast %180 : vector<16xf32> to vector<1x1x16xf32>
    tpu.vector_store %arg6[%c1_186, %c18_187, %c3_188], %183 {strides = array<i32>} : memref<2x22x22xf32, #tpu.memory_space<vmem>>, vector<1x1x16xf32>,
    %c0_189 = arith.constant 0 : index
    %184 = memref.load %arg1[%c0_189] : memref<98xf32, #tpu.memory_space<smem>>
    %c1_190 = arith.constant 1 : index
    %185 = memref.load %arg1[%c1_190] : memref<98xf32, #tpu.memory_space<smem>>
    %c2_191 = arith.constant 2 : index
    %186 = memref.load %arg1[%c2_191] : memref<98xf32, #tpu.memory_space<smem>>
    %c3_192 = arith.constant 3 : index
    %187 = memref.load %arg1[%c3_192] : memref<98xf32, #tpu.memory_space<smem>>
    %c4_193 = arith.constant 4 : index
    %188 = memref.load %arg1[%c4_193] : memref<98xf32, #tpu.memory_space<smem>>
    %c5_194 = arith.constant 5 : index
    %189 = memref.load %arg1[%c5_194] : memref<98xf32, #tpu.memory_space<smem>>
    %c6_195 = arith.constant 6 : index
    %190 = memref.load %arg1[%c6_195] : memref<98xf32, #tpu.memory_space<smem>>
    %c7_196 = arith.constant 7 : index
    %191 = memref.load %arg1[%c7_196] : memref<98xf32, #tpu.memory_space<smem>>
    %c8_197 = arith.constant 8 : index
    %192 = memref.load %arg1[%c8_197] : memref<98xf32, #tpu.memory_space<smem>>
    %c9_198 = arith.constant 9 : index
    %193 = memref.load %arg1[%c9_198] : memref<98xf32, #tpu.memory_space<smem>>
    %c10_199 = arith.constant 10 : index
    %194 = memref.load %arg1[%c10_199] : memref<98xf32, #tpu.memory_space<smem>>
    %c11_200 = arith.constant 11 : index
    %195 = memref.load %arg1[%c11_200] : memref<98xf32, #tpu.memory_space<smem>>
    %c12_201 = arith.constant 12 : index
    %196 = memref.load %arg1[%c12_201] : memref<98xf32, #tpu.memory_space<smem>>
    %c13_202 = arith.constant 13 : index
    %197 = memref.load %arg1[%c13_202] : memref<98xf32, #tpu.memory_space<smem>>
    %c14_203 = arith.constant 14 : index
    %198 = memref.load %arg1[%c14_203] : memref<98xf32, #tpu.memory_space<smem>>
    %c15_204 = arith.constant 15 : index
    %199 = memref.load %arg1[%c15_204] : memref<98xf32, #tpu.memory_space<smem>>
    %c16_205 = arith.constant 16 : index
    %200 = memref.load %arg1[%c16_205] : memref<98xf32, #tpu.memory_space<smem>>
    %c17_206 = arith.constant 17 : index
    %201 = memref.load %arg1[%c17_206] : memref<98xf32, #tpu.memory_space<smem>>
    %c18_207 = arith.constant 18 : index
    %202 = memref.load %arg1[%c18_207] : memref<98xf32, #tpu.memory_space<smem>>
    %c19 = arith.constant 19 : index
    %203 = memref.load %arg1[%c19] : memref<98xf32, #tpu.memory_space<smem>>
    %c20 = arith.constant 20 : index
    %204 = memref.load %arg1[%c20] : memref<98xf32, #tpu.memory_space<smem>>
    %c21 = arith.constant 21 : index
    %205 = memref.load %arg1[%c21] : memref<98xf32, #tpu.memory_space<smem>>
    %c22 = arith.constant 22 : index
    %206 = memref.load %arg1[%c22] : memref<98xf32, #tpu.memory_space<smem>>
    %c23 = arith.constant 23 : index
    %207 = memref.load %arg1[%c23] : memref<98xf32, #tpu.memory_space<smem>>
    %c24 = arith.constant 24 : index
    %208 = memref.load %arg1[%c24] : memref<98xf32, #tpu.memory_space<smem>>
    %c25 = arith.constant 25 : index
    %209 = memref.load %arg1[%c25] : memref<98xf32, #tpu.memory_space<smem>>
    %c26 = arith.constant 26 : index
    %210 = memref.load %arg1[%c26] : memref<98xf32, #tpu.memory_space<smem>>
    %c27 = arith.constant 27 : index
    %211 = memref.load %arg1[%c27] : memref<98xf32, #tpu.memory_space<smem>>
    %c28 = arith.constant 28 : index
    %212 = memref.load %arg1[%c28] : memref<98xf32, #tpu.memory_space<smem>>
    %c29 = arith.constant 29 : index
    %213 = memref.load %arg1[%c29] : memref<98xf32, #tpu.memory_space<smem>>
    %c30 = arith.constant 30 : index
    %214 = memref.load %arg1[%c30] : memref<98xf32, #tpu.memory_space<smem>>
    %c31 = arith.constant 31 : index
    %215 = memref.load %arg1[%c31] : memref<98xf32, #tpu.memory_space<smem>>
    %c32_208 = arith.constant 32 : index
    %216 = memref.load %arg1[%c32_208] : memref<98xf32, #tpu.memory_space<smem>>
    %c33 = arith.constant 33 : index
    %217 = memref.load %arg1[%c33] : memref<98xf32, #tpu.memory_space<smem>>
    %c34 = arith.constant 34 : index
    %218 = memref.load %arg1[%c34] : memref<98xf32, #tpu.memory_space<smem>>
    %c35 = arith.constant 35 : index
    %219 = memref.load %arg1[%c35] : memref<98xf32, #tpu.memory_space<smem>>
    %c36 = arith.constant 36 : index
    %220 = memref.load %arg1[%c36] : memref<98xf32, #tpu.memory_space<smem>>
    %c37 = arith.constant 37 : index
    %221 = memref.load %arg1[%c37] : memref<98xf32, #tpu.memory_space<smem>>
    %c38 = arith.constant 38 : index
    %222 = memref.load %arg1[%c38] : memref<98xf32, #tpu.memory_space<smem>>
    %c39 = arith.constant 39 : index
    %223 = memref.load %arg1[%c39] : memref<98xf32, #tpu.memory_space<smem>>
    %c40 = arith.constant 40 : index
    %224 = memref.load %arg1[%c40] : memref<98xf32, #tpu.memory_space<smem>>
    %c41 = arith.constant 41 : index
    %225 = memref.load %arg1[%c41] : memref<98xf32, #tpu.memory_space<smem>>
    %c42 = arith.constant 42 : index
    %226 = memref.load %arg1[%c42] : memref<98xf32, #tpu.memory_space<smem>>
    %c43 = arith.constant 43 : index
    %227 = memref.load %arg1[%c43] : memref<98xf32, #tpu.memory_space<smem>>
    %c44 = arith.constant 44 : index
    %228 = memref.load %arg1[%c44] : memref<98xf32, #tpu.memory_space<smem>>
    %c45 = arith.constant 45 : index
    %229 = memref.load %arg1[%c45] : memref<98xf32, #tpu.memory_space<smem>>
    %c46 = arith.constant 46 : index
    %230 = memref.load %arg1[%c46] : memref<98xf32, #tpu.memory_space<smem>>
    %c47 = arith.constant 47 : index
    %231 = memref.load %arg1[%c47] : memref<98xf32, #tpu.memory_space<smem>>
    %c48_209 = arith.constant 48 : index
    %232 = memref.load %arg1[%c48_209] : memref<98xf32, #tpu.memory_space<smem>>
    %c49 = arith.constant 49 : index
    %233 = memref.load %arg1[%c49] : memref<98xf32, #tpu.memory_space<smem>>
    %c50 = arith.constant 50 : index
    %234 = memref.load %arg1[%c50] : memref<98xf32, #tpu.memory_space<smem>>
    %c51 = arith.constant 51 : index
    %235 = memref.load %arg1[%c51] : memref<98xf32, #tpu.memory_space<smem>>
    %c52 = arith.constant 52 : index
    %236 = memref.load %arg1[%c52] : memref<98xf32, #tpu.memory_space<smem>>
    %c53 = arith.constant 53 : index
    %237 = memref.load %arg1[%c53] : memref<98xf32, #tpu.memory_space<smem>>
    %c54 = arith.constant 54 : index
    %238 = memref.load %arg1[%c54] : memref<98xf32, #tpu.memory_space<smem>>
    %c55 = arith.constant 55 : index
    %239 = memref.load %arg1[%c55] : memref<98xf32, #tpu.memory_space<smem>>
    %c56 = arith.constant 56 : index
    %240 = memref.load %arg1[%c56] : memref<98xf32, #tpu.memory_space<smem>>
    %c57 = arith.constant 57 : index
    %241 = memref.load %arg1[%c57] : memref<98xf32, #tpu.memory_space<smem>>
    %c58 = arith.constant 58 : index
    %242 = memref.load %arg1[%c58] : memref<98xf32, #tpu.memory_space<smem>>
    %c59 = arith.constant 59 : index
    %243 = memref.load %arg1[%c59] : memref<98xf32, #tpu.memory_space<smem>>
    %c60 = arith.constant 60 : index
    %244 = memref.load %arg1[%c60] : memref<98xf32, #tpu.memory_space<smem>>
    %c61 = arith.constant 61 : index
    %245 = memref.load %arg1[%c61] : memref<98xf32, #tpu.memory_space<smem>>
    %c62 = arith.constant 62 : index
    %246 = memref.load %arg1[%c62] : memref<98xf32, #tpu.memory_space<smem>>
    %c63 = arith.constant 63 : index
    %247 = memref.load %arg1[%c63] : memref<98xf32, #tpu.memory_space<smem>>
    %c64_210 = arith.constant 64 : index
    %248 = memref.load %arg1[%c64_210] : memref<98xf32, #tpu.memory_space<smem>>
    %c65 = arith.constant 65 : index
    %249 = memref.load %arg1[%c65] : memref<98xf32, #tpu.memory_space<smem>>
    %c66 = arith.constant 66 : index
    %250 = memref.load %arg1[%c66] : memref<98xf32, #tpu.memory_space<smem>>
    %c67 = arith.constant 67 : index
    %251 = memref.load %arg1[%c67] : memref<98xf32, #tpu.memory_space<smem>>
    %c68 = arith.constant 68 : index
    %252 = memref.load %arg1[%c68] : memref<98xf32, #tpu.memory_space<smem>>
    %c69 = arith.constant 69 : index
    %253 = memref.load %arg1[%c69] : memref<98xf32, #tpu.memory_space<smem>>
    %c70 = arith.constant 70 : index
    %254 = memref.load %arg1[%c70] : memref<98xf32, #tpu.memory_space<smem>>
    %c71 = arith.constant 71 : index
    %255 = memref.load %arg1[%c71] : memref<98xf32, #tpu.memory_space<smem>>
    %c72 = arith.constant 72 : index
    %256 = memref.load %arg1[%c72] : memref<98xf32, #tpu.memory_space<smem>>
    %c73 = arith.constant 73 : index
    %257 = memref.load %arg1[%c73] : memref<98xf32, #tpu.memory_space<smem>>
    %c74 = arith.constant 74 : index
    %258 = memref.load %arg1[%c74] : memref<98xf32, #tpu.memory_space<smem>>
    %c75 = arith.constant 75 : index
    %259 = memref.load %arg1[%c75] : memref<98xf32, #tpu.memory_space<smem>>
    %c76 = arith.constant 76 : index
    %260 = memref.load %arg1[%c76] : memref<98xf32, #tpu.memory_space<smem>>
    %c77 = arith.constant 77 : index
    %261 = memref.load %arg1[%c77] : memref<98xf32, #tpu.memory_space<smem>>
    %c78 = arith.constant 78 : index
    %262 = memref.load %arg1[%c78] : memref<98xf32, #tpu.memory_space<smem>>
    %c79 = arith.constant 79 : index
    %263 = memref.load %arg1[%c79] : memref<98xf32, #tpu.memory_space<smem>>
    %c80_211 = arith.constant 80 : index
    %264 = memref.load %arg1[%c80_211] : memref<98xf32, #tpu.memory_space<smem>>
    %c81 = arith.constant 81 : index
    %265 = memref.load %arg1[%c81] : memref<98xf32, #tpu.memory_space<smem>>
    %c82 = arith.constant 82 : index
    %266 = memref.load %arg1[%c82] : memref<98xf32, #tpu.memory_space<smem>>
    %c83 = arith.constant 83 : index
    %267 = memref.load %arg1[%c83] : memref<98xf32, #tpu.memory_space<smem>>
    %c84 = arith.constant 84 : index
    %268 = memref.load %arg1[%c84] : memref<98xf32, #tpu.memory_space<smem>>
    %c85 = arith.constant 85 : index
    %269 = memref.load %arg1[%c85] : memref<98xf32, #tpu.memory_space<smem>>
    %c86 = arith.constant 86 : index
    %270 = memref.load %arg1[%c86] : memref<98xf32, #tpu.memory_space<smem>>
    %c87 = arith.constant 87 : index
    %271 = memref.load %arg1[%c87] : memref<98xf32, #tpu.memory_space<smem>>
    %c88 = arith.constant 88 : index
    %272 = memref.load %arg1[%c88] : memref<98xf32, #tpu.memory_space<smem>>
    %c89 = arith.constant 89 : index
    %273 = memref.load %arg1[%c89] : memref<98xf32, #tpu.memory_space<smem>>
    %c90 = arith.constant 90 : index
    %274 = memref.load %arg1[%c90] : memref<98xf32, #tpu.memory_space<smem>>
    %c91 = arith.constant 91 : index
    %275 = memref.load %arg1[%c91] : memref<98xf32, #tpu.memory_space<smem>>
    %c92 = arith.constant 92 : index
    %276 = memref.load %arg1[%c92] : memref<98xf32, #tpu.memory_space<smem>>
    %c93 = arith.constant 93 : index
    %277 = memref.load %arg1[%c93] : memref<98xf32, #tpu.memory_space<smem>>
    %c94 = arith.constant 94 : index
    %278 = memref.load %arg1[%c94] : memref<98xf32, #tpu.memory_space<smem>>
    %c95 = arith.constant 95 : index
    %279 = memref.load %arg1[%c95] : memref<98xf32, #tpu.memory_space<smem>>
    %c96_212 = arith.constant 96 : index
    %280 = memref.load %arg1[%c96_212] : memref<98xf32, #tpu.memory_space<smem>>
    %c97 = arith.constant 97 : index
    %281 = memref.load %arg1[%c97] : memref<98xf32, #tpu.memory_space<smem>>
    %cst_213 = arith.constant 0.000000e+00 : f32
    %282 = vector.broadcast %cst_213 : f32 to vector<16x16xf32>
    %c0_214 = arith.constant 0 : index
    %c0_215 = arith.constant 0 : index
    %c0_216 = arith.constant 0 : index
    %283 = vector.load %arg6[%c0_214, %c0_215, %c0_216] : memref<2x22x22xf32, #tpu.memory_space<vmem>>, vector<1x16x16xf32>
    %284 = vector.shape_cast %283 : vector<1x16x16xf32> to vector<16x16xf32>
    %285 = vector.broadcast %184 : f32 to vector<16x16xf32>
    %286 = arith.mulf %285, %284 : vector<16x16xf32>
    %287 = arith.addf %282, %286 : vector<16x16xf32>
    %c0_217 = arith.constant 0 : index
    %c0_218 = arith.constant 0 : index
    %c1_219 = arith.constant 1 : index
    %288 = vector.load %arg6[%c0_217, %c0_218, %c1_219] : memref<2x22x22xf32, #tpu.memory_space<vmem>>, vector<1x16x16xf32>
    %289 = vector.shape_cast %288 : vector<1x16x16xf32> to vector<16x16xf32>
    %290 = vector.broadcast %185 : f32 to vector<16x16xf32>
    %291 = arith.mulf %290, %289 : vector<16x16xf32>
    %292 = arith.addf %287, %291 : vector<16x16xf32>
    %c0_220 = arith.constant 0 : index
    %c0_221 = arith.constant 0 : index
    %c2_222 = arith.constant 2 : index
    %293 = vector.load %arg6[%c0_220, %c0_221, %c2_222] : memref<2x22x22xf32, #tpu.memory_space<vmem>>, vector<1x16x16xf32>
    %294 = vector.shape_cast %293 : vector<1x16x16xf32> to vector<16x16xf32>
    %295 = vector.broadcast %186 : f32 to vector<16x16xf32>
    %296 = arith.mulf %295, %294 : vector<16x16xf32>
    %297 = arith.addf %292, %296 : vector<16x16xf32>
    %c0_223 = arith.constant 0 : index
    %c0_224 = arith.constant 0 : index
    %c3_225 = arith.constant 3 : index
    %298 = vector.load %arg6[%c0_223, %c0_224, %c3_225] : memref<2x22x22xf32, #tpu.memory_space<vmem>>, vector<1x16x16xf32>
    %299 = vector.shape_cast %298 : vector<1x16x16xf32> to vector<16x16xf32>
    %300 = vector.broadcast %187 : f32 to vector<16x16xf32>
    %301 = arith.mulf %300, %299 : vector<16x16xf32>
    %302 = arith.addf %297, %301 : vector<16x16xf32>
    %c0_226 = arith.constant 0 : index
    %c0_227 = arith.constant 0 : index
    %c4_228 = arith.constant 4 : index
    %303 = vector.load %arg6[%c0_226, %c0_227, %c4_228] : memref<2x22x22xf32, #tpu.memory_space<vmem>>, vector<1x16x16xf32>
    %304 = vector.shape_cast %303 : vector<1x16x16xf32> to vector<16x16xf32>
    %305 = vector.broadcast %188 : f32 to vector<16x16xf32>
    %306 = arith.mulf %305, %304 : vector<16x16xf32>
    %307 = arith.addf %302, %306 : vector<16x16xf32>
    %c0_229 = arith.constant 0 : index
    %c0_230 = arith.constant 0 : index
    %c5_231 = arith.constant 5 : index
    %308 = vector.load %arg6[%c0_229, %c0_230, %c5_231] : memref<2x22x22xf32, #tpu.memory_space<vmem>>, vector<1x16x16xf32>
    %309 = vector.shape_cast %308 : vector<1x16x16xf32> to vector<16x16xf32>
    %310 = vector.broadcast %189 : f32 to vector<16x16xf32>
    %311 = arith.mulf %310, %309 : vector<16x16xf32>
    %312 = arith.addf %307, %311 : vector<16x16xf32>
    %c0_232 = arith.constant 0 : index
    %c0_233 = arith.constant 0 : index
    %c6_234 = arith.constant 6 : index
    %313 = vector.load %arg6[%c0_232, %c0_233, %c6_234] : memref<2x22x22xf32, #tpu.memory_space<vmem>>, vector<1x16x16xf32>
    %314 = vector.shape_cast %313 : vector<1x16x16xf32> to vector<16x16xf32>
    %315 = vector.broadcast %190 : f32 to vector<16x16xf32>
    %316 = arith.mulf %315, %314 : vector<16x16xf32>
    %317 = arith.addf %312, %316 : vector<16x16xf32>
    %c0_235 = arith.constant 0 : index
    %c1_236 = arith.constant 1 : index
    %c0_237 = arith.constant 0 : index
    %318 = vector.load %arg6[%c0_235, %c1_236, %c0_237] : memref<2x22x22xf32, #tpu.memory_space<vmem>>, vector<1x16x16xf32>
    %319 = vector.shape_cast %318 : vector<1x16x16xf32> to vector<16x16xf32>
    %320 = vector.broadcast %191 : f32 to vector<16x16xf32>
    %321 = arith.mulf %320, %319 : vector<16x16xf32>
    %322 = arith.addf %317, %321 : vector<16x16xf32>
    %c0_238 = arith.constant 0 : index
    %c1_239 = arith.constant 1 : index
    %c1_240 = arith.constant 1 : index
    %323 = vector.load %arg6[%c0_238, %c1_239, %c1_240] : memref<2x22x22xf32, #tpu.memory_space<vmem>>, vector<1x16x16xf32>
    %324 = vector.shape_cast %323 : vector<1x16x16xf32> to vector<16x16xf32>
    %325 = vector.broadcast %192 : f32 to vector<16x16xf32>
    %326 = arith.mulf %325, %324 : vector<16x16xf32>
    %327 = arith.addf %322, %326 : vector<16x16xf32>
    %c0_241 = arith.constant 0 : index
    %c1_242 = arith.constant 1 : index
    %c2_243 = arith.constant 2 : index
    %328 = vector.load %arg6[%c0_241, %c1_242, %c2_243] : memref<2x22x22xf32, #tpu.memory_space<vmem>>, vector<1x16x16xf32>
    %329 = vector.shape_cast %328 : vector<1x16x16xf32> to vector<16x16xf32>
    %330 = vector.broadcast %193 : f32 to vector<16x16xf32>
    %331 = arith.mulf %330, %329 : vector<16x16xf32>
    %332 = arith.addf %327, %331 : vector<16x16xf32>
    %c0_244 = arith.constant 0 : index
    %c1_245 = arith.constant 1 : index
    %c3_246 = arith.constant 3 : index
    %333 = vector.load %arg6[%c0_244, %c1_245, %c3_246] : memref<2x22x22xf32, #tpu.memory_space<vmem>>, vector<1x16x16xf32>
    %334 = vector.shape_cast %333 : vector<1x16x16xf32> to vector<16x16xf32>
    %335 = vector.broadcast %194 : f32 to vector<16x16xf32>
    %336 = arith.mulf %335, %334 : vector<16x16xf32>
    %337 = arith.addf %332, %336 : vector<16x16xf32>
    %c0_247 = arith.constant 0 : index
    %c1_248 = arith.constant 1 : index
    %c4_249 = arith.constant 4 : index
    %338 = vector.load %arg6[%c0_247, %c1_248, %c4_249] : memref<2x22x22xf32, #tpu.memory_space<vmem>>, vector<1x16x16xf32>
    %339 = vector.shape_cast %338 : vector<1x16x16xf32> to vector<16x16xf32>
    %340 = vector.broadcast %195 : f32 to vector<16x16xf32>
    %341 = arith.mulf %340, %339 : vector<16x16xf32>
    %342 = arith.addf %337, %341 : vector<16x16xf32>
    %c0_250 = arith.constant 0 : index
    %c1_251 = arith.constant 1 : index
    %c5_252 = arith.constant 5 : index
    %343 = vector.load %arg6[%c0_250, %c1_251, %c5_252] : memref<2x22x22xf32, #tpu.memory_space<vmem>>, vector<1x16x16xf32>
    %344 = vector.shape_cast %343 : vector<1x16x16xf32> to vector<16x16xf32>
    %345 = vector.broadcast %196 : f32 to vector<16x16xf32>
    %346 = arith.mulf %345, %344 : vector<16x16xf32>
    %347 = arith.addf %342, %346 : vector<16x16xf32>
    %c0_253 = arith.constant 0 : index
    %c1_254 = arith.constant 1 : index
    %c6_255 = arith.constant 6 : index
    %348 = vector.load %arg6[%c0_253, %c1_254, %c6_255] : memref<2x22x22xf32, #tpu.memory_space<vmem>>, vector<1x16x16xf32>
    %349 = vector.shape_cast %348 : vector<1x16x16xf32> to vector<16x16xf32>
    %350 = vector.broadcast %197 : f32 to vector<16x16xf32>
    %351 = arith.mulf %350, %349 : vector<16x16xf32>
    %352 = arith.addf %347, %351 : vector<16x16xf32>
    %c0_256 = arith.constant 0 : index
    %c2_257 = arith.constant 2 : index
    %c0_258 = arith.constant 0 : index
    %353 = vector.load %arg6[%c0_256, %c2_257, %c0_258] : memref<2x22x22xf32, #tpu.memory_space<vmem>>, vector<1x16x16xf32>
    %354 = vector.shape_cast %353 : vector<1x16x16xf32> to vector<16x16xf32>
    %355 = vector.broadcast %198 : f32 to vector<16x16xf32>
    %356 = arith.mulf %355, %354 : vector<16x16xf32>
    %357 = arith.addf %352, %356 : vector<16x16xf32>
    %c0_259 = arith.constant 0 : index
    %c2_260 = arith.constant 2 : index
    %c1_261 = arith.constant 1 : index
    %358 = vector.load %arg6[%c0_259, %c2_260, %c1_261] : memref<2x22x22xf32, #tpu.memory_space<vmem>>, vector<1x16x16xf32>
    %359 = vector.shape_cast %358 : vector<1x16x16xf32> to vector<16x16xf32>
    %360 = vector.broadcast %199 : f32 to vector<16x16xf32>
    %361 = arith.mulf %360, %359 : vector<16x16xf32>
    %362 = arith.addf %357, %361 : vector<16x16xf32>
    %c0_262 = arith.constant 0 : index
    %c2_263 = arith.constant 2 : index
    %c2_264 = arith.constant 2 : index
    %363 = vector.load %arg6[%c0_262, %c2_263, %c2_264] : memref<2x22x22xf32, #tpu.memory_space<vmem>>, vector<1x16x16xf32>
    %364 = vector.shape_cast %363 : vector<1x16x16xf32> to vector<16x16xf32>
    %365 = vector.broadcast %200 : f32 to vector<16x16xf32>
    %366 = arith.mulf %365, %364 : vector<16x16xf32>
    %367 = arith.addf %362, %366 : vector<16x16xf32>
    %c0_265 = arith.constant 0 : index
    %c2_266 = arith.constant 2 : index
    %c3_267 = arith.constant 3 : index
    %368 = vector.load %arg6[%c0_265, %c2_266, %c3_267] : memref<2x22x22xf32, #tpu.memory_space<vmem>>, vector<1x16x16xf32>
    %369 = vector.shape_cast %368 : vector<1x16x16xf32> to vector<16x16xf32>
    %370 = vector.broadcast %201 : f32 to vector<16x16xf32>
    %371 = arith.mulf %370, %369 : vector<16x16xf32>
    %372 = arith.addf %367, %371 : vector<16x16xf32>
    %c0_268 = arith.constant 0 : index
    %c2_269 = arith.constant 2 : index
    %c4_270 = arith.constant 4 : index
    %373 = vector.load %arg6[%c0_268, %c2_269, %c4_270] : memref<2x22x22xf32, #tpu.memory_space<vmem>>, vector<1x16x16xf32>
    %374 = vector.shape_cast %373 : vector<1x16x16xf32> to vector<16x16xf32>
    %375 = vector.broadcast %202 : f32 to vector<16x16xf32>
    %376 = arith.mulf %375, %374 : vector<16x16xf32>
    %377 = arith.addf %372, %376 : vector<16x16xf32>
    %c0_271 = arith.constant 0 : index
    %c2_272 = arith.constant 2 : index
    %c5_273 = arith.constant 5 : index
    %378 = vector.load %arg6[%c0_271, %c2_272, %c5_273] : memref<2x22x22xf32, #tpu.memory_space<vmem>>, vector<1x16x16xf32>
    %379 = vector.shape_cast %378 : vector<1x16x16xf32> to vector<16x16xf32>
    %380 = vector.broadcast %203 : f32 to vector<16x16xf32>
    %381 = arith.mulf %380, %379 : vector<16x16xf32>
    %382 = arith.addf %377, %381 : vector<16x16xf32>
    %c0_274 = arith.constant 0 : index
    %c2_275 = arith.constant 2 : index
    %c6_276 = arith.constant 6 : index
    %383 = vector.load %arg6[%c0_274, %c2_275, %c6_276] : memref<2x22x22xf32, #tpu.memory_space<vmem>>, vector<1x16x16xf32>
    %384 = vector.shape_cast %383 : vector<1x16x16xf32> to vector<16x16xf32>
    %385 = vector.broadcast %204 : f32 to vector<16x16xf32>
    %386 = arith.mulf %385, %384 : vector<16x16xf32>
    %387 = arith.addf %382, %386 : vector<16x16xf32>
    %c0_277 = arith.constant 0 : index
    %c3_278 = arith.constant 3 : index
    %c0_279 = arith.constant 0 : index
    %388 = vector.load %arg6[%c0_277, %c3_278, %c0_279] : memref<2x22x22xf32, #tpu.memory_space<vmem>>, vector<1x16x16xf32>
    %389 = vector.shape_cast %388 : vector<1x16x16xf32> to vector<16x16xf32>
    %390 = vector.broadcast %205 : f32 to vector<16x16xf32>
    %391 = arith.mulf %390, %389 : vector<16x16xf32>
    %392 = arith.addf %387, %391 : vector<16x16xf32>
    %c0_280 = arith.constant 0 : index
    %c3_281 = arith.constant 3 : index
    %c1_282 = arith.constant 1 : index
    %393 = vector.load %arg6[%c0_280, %c3_281, %c1_282] : memref<2x22x22xf32, #tpu.memory_space<vmem>>, vector<1x16x16xf32>
    %394 = vector.shape_cast %393 : vector<1x16x16xf32> to vector<16x16xf32>
    %395 = vector.broadcast %206 : f32 to vector<16x16xf32>
    %396 = arith.mulf %395, %394 : vector<16x16xf32>
    %397 = arith.addf %392, %396 : vector<16x16xf32>
    %c0_283 = arith.constant 0 : index
    %c3_284 = arith.constant 3 : index
    %c2_285 = arith.constant 2 : index
    %398 = vector.load %arg6[%c0_283, %c3_284, %c2_285] : memref<2x22x22xf32, #tpu.memory_space<vmem>>, vector<1x16x16xf32>
    %399 = vector.shape_cast %398 : vector<1x16x16xf32> to vector<16x16xf32>
    %400 = vector.broadcast %207 : f32 to vector<16x16xf32>
    %401 = arith.mulf %400, %399 : vector<16x16xf32>
    %402 = arith.addf %397, %401 : vector<16x16xf32>
    %c0_286 = arith.constant 0 : index
    %c3_287 = arith.constant 3 : index
    %c3_288 = arith.constant 3 : index
    %403 = vector.load %arg6[%c0_286, %c3_287, %c3_288] : memref<2x22x22xf32, #tpu.memory_space<vmem>>, vector<1x16x16xf32>
    %404 = vector.shape_cast %403 : vector<1x16x16xf32> to vector<16x16xf32>
    %405 = vector.broadcast %208 : f32 to vector<16x16xf32>
    %406 = arith.mulf %405, %404 : vector<16x16xf32>
    %407 = arith.addf %402, %406 : vector<16x16xf32>
    %c0_289 = arith.constant 0 : index
    %c3_290 = arith.constant 3 : index
    %c4_291 = arith.constant 4 : index
    %408 = vector.load %arg6[%c0_289, %c3_290, %c4_291] : memref<2x22x22xf32, #tpu.memory_space<vmem>>, vector<1x16x16xf32>
    %409 = vector.shape_cast %408 : vector<1x16x16xf32> to vector<16x16xf32>
    %410 = vector.broadcast %209 : f32 to vector<16x16xf32>
    %411 = arith.mulf %410, %409 : vector<16x16xf32>
    %412 = arith.addf %407, %411 : vector<16x16xf32>
    %c0_292 = arith.constant 0 : index
    %c3_293 = arith.constant 3 : index
    %c5_294 = arith.constant 5 : index
    %413 = vector.load %arg6[%c0_292, %c3_293, %c5_294] : memref<2x22x22xf32, #tpu.memory_space<vmem>>, vector<1x16x16xf32>
    %414 = vector.shape_cast %413 : vector<1x16x16xf32> to vector<16x16xf32>
    %415 = vector.broadcast %210 : f32 to vector<16x16xf32>
    %416 = arith.mulf %415, %414 : vector<16x16xf32>
    %417 = arith.addf %412, %416 : vector<16x16xf32>
    %c0_295 = arith.constant 0 : index
    %c3_296 = arith.constant 3 : index
    %c6_297 = arith.constant 6 : index
    %418 = vector.load %arg6[%c0_295, %c3_296, %c6_297] : memref<2x22x22xf32, #tpu.memory_space<vmem>>, vector<1x16x16xf32>
    %419 = vector.shape_cast %418 : vector<1x16x16xf32> to vector<16x16xf32>
    %420 = vector.broadcast %211 : f32 to vector<16x16xf32>
    %421 = arith.mulf %420, %419 : vector<16x16xf32>
    %422 = arith.addf %417, %421 : vector<16x16xf32>
    %c0_298 = arith.constant 0 : index
    %c4_299 = arith.constant 4 : index
    %c0_300 = arith.constant 0 : index
    %423 = vector.load %arg6[%c0_298, %c4_299, %c0_300] : memref<2x22x22xf32, #tpu.memory_space<vmem>>, vector<1x16x16xf32>
    %424 = vector.shape_cast %423 : vector<1x16x16xf32> to vector<16x16xf32>
    %425 = vector.broadcast %212 : f32 to vector<16x16xf32>
    %426 = arith.mulf %425, %424 : vector<16x16xf32>
    %427 = arith.addf %422, %426 : vector<16x16xf32>
    %c0_301 = arith.constant 0 : index
    %c4_302 = arith.constant 4 : index
    %c1_303 = arith.constant 1 : index
    %428 = vector.load %arg6[%c0_301, %c4_302, %c1_303] : memref<2x22x22xf32, #tpu.memory_space<vmem>>, vector<1x16x16xf32>
    %429 = vector.shape_cast %428 : vector<1x16x16xf32> to vector<16x16xf32>
    %430 = vector.broadcast %213 : f32 to vector<16x16xf32>
    %431 = arith.mulf %430, %429 : vector<16x16xf32>
    %432 = arith.addf %427, %431 : vector<16x16xf32>
    %c0_304 = arith.constant 0 : index
    %c4_305 = arith.constant 4 : index
    %c2_306 = arith.constant 2 : index
    %433 = vector.load %arg6[%c0_304, %c4_305, %c2_306] : memref<2x22x22xf32, #tpu.memory_space<vmem>>, vector<1x16x16xf32>
    %434 = vector.shape_cast %433 : vector<1x16x16xf32> to vector<16x16xf32>
    %435 = vector.broadcast %214 : f32 to vector<16x16xf32>
    %436 = arith.mulf %435, %434 : vector<16x16xf32>
    %437 = arith.addf %432, %436 : vector<16x16xf32>
    %c0_307 = arith.constant 0 : index
    %c4_308 = arith.constant 4 : index
    %c3_309 = arith.constant 3 : index
    %438 = vector.load %arg6[%c0_307, %c4_308, %c3_309] : memref<2x22x22xf32, #tpu.memory_space<vmem>>, vector<1x16x16xf32>
    %439 = vector.shape_cast %438 : vector<1x16x16xf32> to vector<16x16xf32>
    %440 = vector.broadcast %215 : f32 to vector<16x16xf32>
    %441 = arith.mulf %440, %439 : vector<16x16xf32>
    %442 = arith.addf %437, %441 : vector<16x16xf32>
    %c0_310 = arith.constant 0 : index
    %c4_311 = arith.constant 4 : index
    %c4_312 = arith.constant 4 : index
    %443 = vector.load %arg6[%c0_310, %c4_311, %c4_312] : memref<2x22x22xf32, #tpu.memory_space<vmem>>, vector<1x16x16xf32>
    %444 = vector.shape_cast %443 : vector<1x16x16xf32> to vector<16x16xf32>
    %445 = vector.broadcast %216 : f32 to vector<16x16xf32>
    %446 = arith.mulf %445, %444 : vector<16x16xf32>
    %447 = arith.addf %442, %446 : vector<16x16xf32>
    %c0_313 = arith.constant 0 : index
    %c4_314 = arith.constant 4 : index
    %c5_315 = arith.constant 5 : index
    %448 = vector.load %arg6[%c0_313, %c4_314, %c5_315] : memref<2x22x22xf32, #tpu.memory_space<vmem>>, vector<1x16x16xf32>
    %449 = vector.shape_cast %448 : vector<1x16x16xf32> to vector<16x16xf32>
    %450 = vector.broadcast %217 : f32 to vector<16x16xf32>
    %451 = arith.mulf %450, %449 : vector<16x16xf32>
    %452 = arith.addf %447, %451 : vector<16x16xf32>
    %c0_316 = arith.constant 0 : index
    %c4_317 = arith.constant 4 : index
    %c6_318 = arith.constant 6 : index
    %453 = vector.load %arg6[%c0_316, %c4_317, %c6_318] : memref<2x22x22xf32, #tpu.memory_space<vmem>>, vector<1x16x16xf32>
    %454 = vector.shape_cast %453 : vector<1x16x16xf32> to vector<16x16xf32>
    %455 = vector.broadcast %218 : f32 to vector<16x16xf32>
    %456 = arith.mulf %455, %454 : vector<16x16xf32>
    %457 = arith.addf %452, %456 : vector<16x16xf32>
    %c0_319 = arith.constant 0 : index
    %c5_320 = arith.constant 5 : index
    %c0_321 = arith.constant 0 : index
    %458 = vector.load %arg6[%c0_319, %c5_320, %c0_321] : memref<2x22x22xf32, #tpu.memory_space<vmem>>, vector<1x16x16xf32>
    %459 = vector.shape_cast %458 : vector<1x16x16xf32> to vector<16x16xf32>
    %460 = vector.broadcast %219 : f32 to vector<16x16xf32>
    %461 = arith.mulf %460, %459 : vector<16x16xf32>
    %462 = arith.addf %457, %461 : vector<16x16xf32>
    %c0_322 = arith.constant 0 : index
    %c5_323 = arith.constant 5 : index
    %c1_324 = arith.constant 1 : index
    %463 = vector.load %arg6[%c0_322, %c5_323, %c1_324] : memref<2x22x22xf32, #tpu.memory_space<vmem>>, vector<1x16x16xf32>
    %464 = vector.shape_cast %463 : vector<1x16x16xf32> to vector<16x16xf32>
    %465 = vector.broadcast %220 : f32 to vector<16x16xf32>
    %466 = arith.mulf %465, %464 : vector<16x16xf32>
    %467 = arith.addf %462, %466 : vector<16x16xf32>
    %c0_325 = arith.constant 0 : index
    %c5_326 = arith.constant 5 : index
    %c2_327 = arith.constant 2 : index
    %468 = vector.load %arg6[%c0_325, %c5_326, %c2_327] : memref<2x22x22xf32, #tpu.memory_space<vmem>>, vector<1x16x16xf32>
    %469 = vector.shape_cast %468 : vector<1x16x16xf32> to vector<16x16xf32>
    %470 = vector.broadcast %221 : f32 to vector<16x16xf32>
    %471 = arith.mulf %470, %469 : vector<16x16xf32>
    %472 = arith.addf %467, %471 : vector<16x16xf32>
    %c0_328 = arith.constant 0 : index
    %c5_329 = arith.constant 5 : index
    %c3_330 = arith.constant 3 : index
    %473 = vector.load %arg6[%c0_328, %c5_329, %c3_330] : memref<2x22x22xf32, #tpu.memory_space<vmem>>, vector<1x16x16xf32>
    %474 = vector.shape_cast %473 : vector<1x16x16xf32> to vector<16x16xf32>
    %475 = vector.broadcast %222 : f32 to vector<16x16xf32>
    %476 = arith.mulf %475, %474 : vector<16x16xf32>
    %477 = arith.addf %472, %476 : vector<16x16xf32>
    %c0_331 = arith.constant 0 : index
    %c5_332 = arith.constant 5 : index
    %c4_333 = arith.constant 4 : index
    %478 = vector.load %arg6[%c0_331, %c5_332, %c4_333] : memref<2x22x22xf32, #tpu.memory_space<vmem>>, vector<1x16x16xf32>
    %479 = vector.shape_cast %478 : vector<1x16x16xf32> to vector<16x16xf32>
    %480 = vector.broadcast %223 : f32 to vector<16x16xf32>
    %481 = arith.mulf %480, %479 : vector<16x16xf32>
    %482 = arith.addf %477, %481 : vector<16x16xf32>
    %c0_334 = arith.constant 0 : index
    %c5_335 = arith.constant 5 : index
    %c5_336 = arith.constant 5 : index
    %483 = vector.load %arg6[%c0_334, %c5_335, %c5_336] : memref<2x22x22xf32, #tpu.memory_space<vmem>>, vector<1x16x16xf32>
    %484 = vector.shape_cast %483 : vector<1x16x16xf32> to vector<16x16xf32>
    %485 = vector.broadcast %224 : f32 to vector<16x16xf32>
    %486 = arith.mulf %485, %484 : vector<16x16xf32>
    %487 = arith.addf %482, %486 : vector<16x16xf32>
    %c0_337 = arith.constant 0 : index
    %c5_338 = arith.constant 5 : index
    %c6_339 = arith.constant 6 : index
    %488 = vector.load %arg6[%c0_337, %c5_338, %c6_339] : memref<2x22x22xf32, #tpu.memory_space<vmem>>, vector<1x16x16xf32>
    %489 = vector.shape_cast %488 : vector<1x16x16xf32> to vector<16x16xf32>
    %490 = vector.broadcast %225 : f32 to vector<16x16xf32>
    %491 = arith.mulf %490, %489 : vector<16x16xf32>
    %492 = arith.addf %487, %491 : vector<16x16xf32>
    %c0_340 = arith.constant 0 : index
    %c6_341 = arith.constant 6 : index
    %c0_342 = arith.constant 0 : index
    %493 = vector.load %arg6[%c0_340, %c6_341, %c0_342] : memref<2x22x22xf32, #tpu.memory_space<vmem>>, vector<1x16x16xf32>
    %494 = vector.shape_cast %493 : vector<1x16x16xf32> to vector<16x16xf32>
    %495 = vector.broadcast %226 : f32 to vector<16x16xf32>
    %496 = arith.mulf %495, %494 : vector<16x16xf32>
    %497 = arith.addf %492, %496 : vector<16x16xf32>
    %c0_343 = arith.constant 0 : index
    %c6_344 = arith.constant 6 : index
    %c1_345 = arith.constant 1 : index
    %498 = vector.load %arg6[%c0_343, %c6_344, %c1_345] : memref<2x22x22xf32, #tpu.memory_space<vmem>>, vector<1x16x16xf32>
    %499 = vector.shape_cast %498 : vector<1x16x16xf32> to vector<16x16xf32>
    %500 = vector.broadcast %227 : f32 to vector<16x16xf32>
    %501 = arith.mulf %500, %499 : vector<16x16xf32>
    %502 = arith.addf %497, %501 : vector<16x16xf32>
    %c0_346 = arith.constant 0 : index
    %c6_347 = arith.constant 6 : index
    %c2_348 = arith.constant 2 : index
    %503 = vector.load %arg6[%c0_346, %c6_347, %c2_348] : memref<2x22x22xf32, #tpu.memory_space<vmem>>, vector<1x16x16xf32>
    %504 = vector.shape_cast %503 : vector<1x16x16xf32> to vector<16x16xf32>
    %505 = vector.broadcast %228 : f32 to vector<16x16xf32>
    %506 = arith.mulf %505, %504 : vector<16x16xf32>
    %507 = arith.addf %502, %506 : vector<16x16xf32>
    %c0_349 = arith.constant 0 : index
    %c6_350 = arith.constant 6 : index
    %c3_351 = arith.constant 3 : index
    %508 = vector.load %arg6[%c0_349, %c6_350, %c3_351] : memref<2x22x22xf32, #tpu.memory_space<vmem>>, vector<1x16x16xf32>
    %509 = vector.shape_cast %508 : vector<1x16x16xf32> to vector<16x16xf32>
    %510 = vector.broadcast %229 : f32 to vector<16x16xf32>
    %511 = arith.mulf %510, %509 : vector<16x16xf32>
    %512 = arith.addf %507, %511 : vector<16x16xf32>
    %c0_352 = arith.constant 0 : index
    %c6_353 = arith.constant 6 : index
    %c4_354 = arith.constant 4 : index
    %513 = vector.load %arg6[%c0_352, %c6_353, %c4_354] : memref<2x22x22xf32, #tpu.memory_space<vmem>>, vector<1x16x16xf32>
    %514 = vector.shape_cast %513 : vector<1x16x16xf32> to vector<16x16xf32>
    %515 = vector.broadcast %230 : f32 to vector<16x16xf32>
    %516 = arith.mulf %515, %514 : vector<16x16xf32>
    %517 = arith.addf %512, %516 : vector<16x16xf32>
    %c0_355 = arith.constant 0 : index
    %c6_356 = arith.constant 6 : index
    %c5_357 = arith.constant 5 : index
    %518 = vector.load %arg6[%c0_355, %c6_356, %c5_357] : memref<2x22x22xf32, #tpu.memory_space<vmem>>, vector<1x16x16xf32>
    %519 = vector.shape_cast %518 : vector<1x16x16xf32> to vector<16x16xf32>
    %520 = vector.broadcast %231 : f32 to vector<16x16xf32>
    %521 = arith.mulf %520, %519 : vector<16x16xf32>
    %522 = arith.addf %517, %521 : vector<16x16xf32>
    %c0_358 = arith.constant 0 : index
    %c6_359 = arith.constant 6 : index
    %c6_360 = arith.constant 6 : index
    %523 = vector.load %arg6[%c0_358, %c6_359, %c6_360] : memref<2x22x22xf32, #tpu.memory_space<vmem>>, vector<1x16x16xf32>
    %524 = vector.shape_cast %523 : vector<1x16x16xf32> to vector<16x16xf32>
    %525 = vector.broadcast %232 : f32 to vector<16x16xf32>
    %526 = arith.mulf %525, %524 : vector<16x16xf32>
    %527 = arith.addf %522, %526 : vector<16x16xf32>
    %c1_361 = arith.constant 1 : index
    %c0_362 = arith.constant 0 : index
    %c0_363 = arith.constant 0 : index
    %528 = vector.load %arg6[%c1_361, %c0_362, %c0_363] : memref<2x22x22xf32, #tpu.memory_space<vmem>>, vector<1x16x16xf32>
    %529 = vector.shape_cast %528 : vector<1x16x16xf32> to vector<16x16xf32>
    %530 = vector.broadcast %233 : f32 to vector<16x16xf32>
    %531 = arith.mulf %530, %529 : vector<16x16xf32>
    %532 = arith.addf %527, %531 : vector<16x16xf32>
    %c1_364 = arith.constant 1 : index
    %c0_365 = arith.constant 0 : index
    %c1_366 = arith.constant 1 : index
    %533 = vector.load %arg6[%c1_364, %c0_365, %c1_366] : memref<2x22x22xf32, #tpu.memory_space<vmem>>, vector<1x16x16xf32>
    %534 = vector.shape_cast %533 : vector<1x16x16xf32> to vector<16x16xf32>
    %535 = vector.broadcast %234 : f32 to vector<16x16xf32>
    %536 = arith.mulf %535, %534 : vector<16x16xf32>
    %537 = arith.addf %532, %536 : vector<16x16xf32>
    %c1_367 = arith.constant 1 : index
    %c0_368 = arith.constant 0 : index
    %c2_369 = arith.constant 2 : index
    %538 = vector.load %arg6[%c1_367, %c0_368, %c2_369] : memref<2x22x22xf32, #tpu.memory_space<vmem>>, vector<1x16x16xf32>
    %539 = vector.shape_cast %538 : vector<1x16x16xf32> to vector<16x16xf32>
    %540 = vector.broadcast %235 : f32 to vector<16x16xf32>
    %541 = arith.mulf %540, %539 : vector<16x16xf32>
    %542 = arith.addf %537, %541 : vector<16x16xf32>
    %c1_370 = arith.constant 1 : index
    %c0_371 = arith.constant 0 : index
    %c3_372 = arith.constant 3 : index
    %543 = vector.load %arg6[%c1_370, %c0_371, %c3_372] : memref<2x22x22xf32, #tpu.memory_space<vmem>>, vector<1x16x16xf32>
    %544 = vector.shape_cast %543 : vector<1x16x16xf32> to vector<16x16xf32>
    %545 = vector.broadcast %236 : f32 to vector<16x16xf32>
    %546 = arith.mulf %545, %544 : vector<16x16xf32>
    %547 = arith.addf %542, %546 : vector<16x16xf32>
    %c1_373 = arith.constant 1 : index
    %c0_374 = arith.constant 0 : index
    %c4_375 = arith.constant 4 : index
    %548 = vector.load %arg6[%c1_373, %c0_374, %c4_375] : memref<2x22x22xf32, #tpu.memory_space<vmem>>, vector<1x16x16xf32>
    %549 = vector.shape_cast %548 : vector<1x16x16xf32> to vector<16x16xf32>
    %550 = vector.broadcast %237 : f32 to vector<16x16xf32>
    %551 = arith.mulf %550, %549 : vector<16x16xf32>
    %552 = arith.addf %547, %551 : vector<16x16xf32>
    %c1_376 = arith.constant 1 : index
    %c0_377 = arith.constant 0 : index
    %c5_378 = arith.constant 5 : index
    %553 = vector.load %arg6[%c1_376, %c0_377, %c5_378] : memref<2x22x22xf32, #tpu.memory_space<vmem>>, vector<1x16x16xf32>
    %554 = vector.shape_cast %553 : vector<1x16x16xf32> to vector<16x16xf32>
    %555 = vector.broadcast %238 : f32 to vector<16x16xf32>
    %556 = arith.mulf %555, %554 : vector<16x16xf32>
    %557 = arith.addf %552, %556 : vector<16x16xf32>
    %c1_379 = arith.constant 1 : index
    %c0_380 = arith.constant 0 : index
    %c6_381 = arith.constant 6 : index
    %558 = vector.load %arg6[%c1_379, %c0_380, %c6_381] : memref<2x22x22xf32, #tpu.memory_space<vmem>>, vector<1x16x16xf32>
    %559 = vector.shape_cast %558 : vector<1x16x16xf32> to vector<16x16xf32>
    %560 = vector.broadcast %239 : f32 to vector<16x16xf32>
    %561 = arith.mulf %560, %559 : vector<16x16xf32>
    %562 = arith.addf %557, %561 : vector<16x16xf32>
    %c1_382 = arith.constant 1 : index
    %c1_383 = arith.constant 1 : index
    %c0_384 = arith.constant 0 : index
    %563 = vector.load %arg6[%c1_382, %c1_383, %c0_384] : memref<2x22x22xf32, #tpu.memory_space<vmem>>, vector<1x16x16xf32>
    %564 = vector.shape_cast %563 : vector<1x16x16xf32> to vector<16x16xf32>
    %565 = vector.broadcast %240 : f32 to vector<16x16xf32>
    %566 = arith.mulf %565, %564 : vector<16x16xf32>
    %567 = arith.addf %562, %566 : vector<16x16xf32>
    %c1_385 = arith.constant 1 : index
    %c1_386 = arith.constant 1 : index
    %c1_387 = arith.constant 1 : index
    %568 = vector.load %arg6[%c1_385, %c1_386, %c1_387] : memref<2x22x22xf32, #tpu.memory_space<vmem>>, vector<1x16x16xf32>
    %569 = vector.shape_cast %568 : vector<1x16x16xf32> to vector<16x16xf32>
    %570 = vector.broadcast %241 : f32 to vector<16x16xf32>
    %571 = arith.mulf %570, %569 : vector<16x16xf32>
    %572 = arith.addf %567, %571 : vector<16x16xf32>
    %c1_388 = arith.constant 1 : index
    %c1_389 = arith.constant 1 : index
    %c2_390 = arith.constant 2 : index
    %573 = vector.load %arg6[%c1_388, %c1_389, %c2_390] : memref<2x22x22xf32, #tpu.memory_space<vmem>>, vector<1x16x16xf32>
    %574 = vector.shape_cast %573 : vector<1x16x16xf32> to vector<16x16xf32>
    %575 = vector.broadcast %242 : f32 to vector<16x16xf32>
    %576 = arith.mulf %575, %574 : vector<16x16xf32>
    %577 = arith.addf %572, %576 : vector<16x16xf32>
    %c1_391 = arith.constant 1 : index
    %c1_392 = arith.constant 1 : index
    %c3_393 = arith.constant 3 : index
    %578 = vector.load %arg6[%c1_391, %c1_392, %c3_393] : memref<2x22x22xf32, #tpu.memory_space<vmem>>, vector<1x16x16xf32>
    %579 = vector.shape_cast %578 : vector<1x16x16xf32> to vector<16x16xf32>
    %580 = vector.broadcast %243 : f32 to vector<16x16xf32>
    %581 = arith.mulf %580, %579 : vector<16x16xf32>
    %582 = arith.addf %577, %581 : vector<16x16xf32>
    %c1_394 = arith.constant 1 : index
    %c1_395 = arith.constant 1 : index
    %c4_396 = arith.constant 4 : index
    %583 = vector.load %arg6[%c1_394, %c1_395, %c4_396] : memref<2x22x22xf32, #tpu.memory_space<vmem>>, vector<1x16x16xf32>
    %584 = vector.shape_cast %583 : vector<1x16x16xf32> to vector<16x16xf32>
    %585 = vector.broadcast %244 : f32 to vector<16x16xf32>
    %586 = arith.mulf %585, %584 : vector<16x16xf32>
    %587 = arith.addf %582, %586 : vector<16x16xf32>
    %c1_397 = arith.constant 1 : index
    %c1_398 = arith.constant 1 : index
    %c5_399 = arith.constant 5 : index
    %588 = vector.load %arg6[%c1_397, %c1_398, %c5_399] : memref<2x22x22xf32, #tpu.memory_space<vmem>>, vector<1x16x16xf32>
    %589 = vector.shape_cast %588 : vector<1x16x16xf32> to vector<16x16xf32>
    %590 = vector.broadcast %245 : f32 to vector<16x16xf32>
    %591 = arith.mulf %590, %589 : vector<16x16xf32>
    %592 = arith.addf %587, %591 : vector<16x16xf32>
    %c1_400 = arith.constant 1 : index
    %c1_401 = arith.constant 1 : index
    %c6_402 = arith.constant 6 : index
    %593 = vector.load %arg6[%c1_400, %c1_401, %c6_402] : memref<2x22x22xf32, #tpu.memory_space<vmem>>, vector<1x16x16xf32>
    %594 = vector.shape_cast %593 : vector<1x16x16xf32> to vector<16x16xf32>
    %595 = vector.broadcast %246 : f32 to vector<16x16xf32>
    %596 = arith.mulf %595, %594 : vector<16x16xf32>
    %597 = arith.addf %592, %596 : vector<16x16xf32>
    %c1_403 = arith.constant 1 : index
    %c2_404 = arith.constant 2 : index
    %c0_405 = arith.constant 0 : index
    %598 = vector.load %arg6[%c1_403, %c2_404, %c0_405] : memref<2x22x22xf32, #tpu.memory_space<vmem>>, vector<1x16x16xf32>
    %599 = vector.shape_cast %598 : vector<1x16x16xf32> to vector<16x16xf32>
    %600 = vector.broadcast %247 : f32 to vector<16x16xf32>
    %601 = arith.mulf %600, %599 : vector<16x16xf32>
    %602 = arith.addf %597, %601 : vector<16x16xf32>
    %c1_406 = arith.constant 1 : index
    %c2_407 = arith.constant 2 : index
    %c1_408 = arith.constant 1 : index
    %603 = vector.load %arg6[%c1_406, %c2_407, %c1_408] : memref<2x22x22xf32, #tpu.memory_space<vmem>>, vector<1x16x16xf32>
    %604 = vector.shape_cast %603 : vector<1x16x16xf32> to vector<16x16xf32>
    %605 = vector.broadcast %248 : f32 to vector<16x16xf32>
    %606 = arith.mulf %605, %604 : vector<16x16xf32>
    %607 = arith.addf %602, %606 : vector<16x16xf32>
    %c1_409 = arith.constant 1 : index
    %c2_410 = arith.constant 2 : index
    %c2_411 = arith.constant 2 : index
    %608 = vector.load %arg6[%c1_409, %c2_410, %c2_411] : memref<2x22x22xf32, #tpu.memory_space<vmem>>, vector<1x16x16xf32>
    %609 = vector.shape_cast %608 : vector<1x16x16xf32> to vector<16x16xf32>
    %610 = vector.broadcast %249 : f32 to vector<16x16xf32>
    %611 = arith.mulf %610, %609 : vector<16x16xf32>
    %612 = arith.addf %607, %611 : vector<16x16xf32>
    %c1_412 = arith.constant 1 : index
    %c2_413 = arith.constant 2 : index
    %c3_414 = arith.constant 3 : index
    %613 = vector.load %arg6[%c1_412, %c2_413, %c3_414] : memref<2x22x22xf32, #tpu.memory_space<vmem>>, vector<1x16x16xf32>
    %614 = vector.shape_cast %613 : vector<1x16x16xf32> to vector<16x16xf32>
    %615 = vector.broadcast %250 : f32 to vector<16x16xf32>
    %616 = arith.mulf %615, %614 : vector<16x16xf32>
    %617 = arith.addf %612, %616 : vector<16x16xf32>
    %c1_415 = arith.constant 1 : index
    %c2_416 = arith.constant 2 : index
    %c4_417 = arith.constant 4 : index
    %618 = vector.load %arg6[%c1_415, %c2_416, %c4_417] : memref<2x22x22xf32, #tpu.memory_space<vmem>>, vector<1x16x16xf32>
    %619 = vector.shape_cast %618 : vector<1x16x16xf32> to vector<16x16xf32>
    %620 = vector.broadcast %251 : f32 to vector<16x16xf32>
    %621 = arith.mulf %620, %619 : vector<16x16xf32>
    %622 = arith.addf %617, %621 : vector<16x16xf32>
    %c1_418 = arith.constant 1 : index
    %c2_419 = arith.constant 2 : index
    %c5_420 = arith.constant 5 : index
    %623 = vector.load %arg6[%c1_418, %c2_419, %c5_420] : memref<2x22x22xf32, #tpu.memory_space<vmem>>, vector<1x16x16xf32>
    %624 = vector.shape_cast %623 : vector<1x16x16xf32> to vector<16x16xf32>
    %625 = vector.broadcast %252 : f32 to vector<16x16xf32>
    %626 = arith.mulf %625, %624 : vector<16x16xf32>
    %627 = arith.addf %622, %626 : vector<16x16xf32>
    %c1_421 = arith.constant 1 : index
    %c2_422 = arith.constant 2 : index
    %c6_423 = arith.constant 6 : index
    %628 = vector.load %arg6[%c1_421, %c2_422, %c6_423] : memref<2x22x22xf32, #tpu.memory_space<vmem>>, vector<1x16x16xf32>
    %629 = vector.shape_cast %628 : vector<1x16x16xf32> to vector<16x16xf32>
    %630 = vector.broadcast %253 : f32 to vector<16x16xf32>
    %631 = arith.mulf %630, %629 : vector<16x16xf32>
    %632 = arith.addf %627, %631 : vector<16x16xf32>
    %c1_424 = arith.constant 1 : index
    %c3_425 = arith.constant 3 : index
    %c0_426 = arith.constant 0 : index
    %633 = vector.load %arg6[%c1_424, %c3_425, %c0_426] : memref<2x22x22xf32, #tpu.memory_space<vmem>>, vector<1x16x16xf32>
    %634 = vector.shape_cast %633 : vector<1x16x16xf32> to vector<16x16xf32>
    %635 = vector.broadcast %254 : f32 to vector<16x16xf32>
    %636 = arith.mulf %635, %634 : vector<16x16xf32>
    %637 = arith.addf %632, %636 : vector<16x16xf32>
    %c1_427 = arith.constant 1 : index
    %c3_428 = arith.constant 3 : index
    %c1_429 = arith.constant 1 : index
    %638 = vector.load %arg6[%c1_427, %c3_428, %c1_429] : memref<2x22x22xf32, #tpu.memory_space<vmem>>, vector<1x16x16xf32>
    %639 = vector.shape_cast %638 : vector<1x16x16xf32> to vector<16x16xf32>
    %640 = vector.broadcast %255 : f32 to vector<16x16xf32>
    %641 = arith.mulf %640, %639 : vector<16x16xf32>
    %642 = arith.addf %637, %641 : vector<16x16xf32>
    %c1_430 = arith.constant 1 : index
    %c3_431 = arith.constant 3 : index
    %c2_432 = arith.constant 2 : index
    %643 = vector.load %arg6[%c1_430, %c3_431, %c2_432] : memref<2x22x22xf32, #tpu.memory_space<vmem>>, vector<1x16x16xf32>
    %644 = vector.shape_cast %643 : vector<1x16x16xf32> to vector<16x16xf32>
    %645 = vector.broadcast %256 : f32 to vector<16x16xf32>
    %646 = arith.mulf %645, %644 : vector<16x16xf32>
    %647 = arith.addf %642, %646 : vector<16x16xf32>
    %c1_433 = arith.constant 1 : index
    %c3_434 = arith.constant 3 : index
    %c3_435 = arith.constant 3 : index
    %648 = vector.load %arg6[%c1_433, %c3_434, %c3_435] : memref<2x22x22xf32, #tpu.memory_space<vmem>>, vector<1x16x16xf32>
    %649 = vector.shape_cast %648 : vector<1x16x16xf32> to vector<16x16xf32>
    %650 = vector.broadcast %257 : f32 to vector<16x16xf32>
    %651 = arith.mulf %650, %649 : vector<16x16xf32>
    %652 = arith.addf %647, %651 : vector<16x16xf32>
    %c1_436 = arith.constant 1 : index
    %c3_437 = arith.constant 3 : index
    %c4_438 = arith.constant 4 : index
    %653 = vector.load %arg6[%c1_436, %c3_437, %c4_438] : memref<2x22x22xf32, #tpu.memory_space<vmem>>, vector<1x16x16xf32>
    %654 = vector.shape_cast %653 : vector<1x16x16xf32> to vector<16x16xf32>
    %655 = vector.broadcast %258 : f32 to vector<16x16xf32>
    %656 = arith.mulf %655, %654 : vector<16x16xf32>
    %657 = arith.addf %652, %656 : vector<16x16xf32>
    %c1_439 = arith.constant 1 : index
    %c3_440 = arith.constant 3 : index
    %c5_441 = arith.constant 5 : index
    %658 = vector.load %arg6[%c1_439, %c3_440, %c5_441] : memref<2x22x22xf32, #tpu.memory_space<vmem>>, vector<1x16x16xf32>
    %659 = vector.shape_cast %658 : vector<1x16x16xf32> to vector<16x16xf32>
    %660 = vector.broadcast %259 : f32 to vector<16x16xf32>
    %661 = arith.mulf %660, %659 : vector<16x16xf32>
    %662 = arith.addf %657, %661 : vector<16x16xf32>
    %c1_442 = arith.constant 1 : index
    %c3_443 = arith.constant 3 : index
    %c6_444 = arith.constant 6 : index
    %663 = vector.load %arg6[%c1_442, %c3_443, %c6_444] : memref<2x22x22xf32, #tpu.memory_space<vmem>>, vector<1x16x16xf32>
    %664 = vector.shape_cast %663 : vector<1x16x16xf32> to vector<16x16xf32>
    %665 = vector.broadcast %260 : f32 to vector<16x16xf32>
    %666 = arith.mulf %665, %664 : vector<16x16xf32>
    %667 = arith.addf %662, %666 : vector<16x16xf32>
    %c1_445 = arith.constant 1 : index
    %c4_446 = arith.constant 4 : index
    %c0_447 = arith.constant 0 : index
    %668 = vector.load %arg6[%c1_445, %c4_446, %c0_447] : memref<2x22x22xf32, #tpu.memory_space<vmem>>, vector<1x16x16xf32>
    %669 = vector.shape_cast %668 : vector<1x16x16xf32> to vector<16x16xf32>
    %670 = vector.broadcast %261 : f32 to vector<16x16xf32>
    %671 = arith.mulf %670, %669 : vector<16x16xf32>
    %672 = arith.addf %667, %671 : vector<16x16xf32>
    %c1_448 = arith.constant 1 : index
    %c4_449 = arith.constant 4 : index
    %c1_450 = arith.constant 1 : index
    %673 = vector.load %arg6[%c1_448, %c4_449, %c1_450] : memref<2x22x22xf32, #tpu.memory_space<vmem>>, vector<1x16x16xf32>
    %674 = vector.shape_cast %673 : vector<1x16x16xf32> to vector<16x16xf32>
    %675 = vector.broadcast %262 : f32 to vector<16x16xf32>
    %676 = arith.mulf %675, %674 : vector<16x16xf32>
    %677 = arith.addf %672, %676 : vector<16x16xf32>
    %c1_451 = arith.constant 1 : index
    %c4_452 = arith.constant 4 : index
    %c2_453 = arith.constant 2 : index
    %678 = vector.load %arg6[%c1_451, %c4_452, %c2_453] : memref<2x22x22xf32, #tpu.memory_space<vmem>>, vector<1x16x16xf32>
    %679 = vector.shape_cast %678 : vector<1x16x16xf32> to vector<16x16xf32>
    %680 = vector.broadcast %263 : f32 to vector<16x16xf32>
    %681 = arith.mulf %680, %679 : vector<16x16xf32>
    %682 = arith.addf %677, %681 : vector<16x16xf32>
    %c1_454 = arith.constant 1 : index
    %c4_455 = arith.constant 4 : index
    %c3_456 = arith.constant 3 : index
    %683 = vector.load %arg6[%c1_454, %c4_455, %c3_456] : memref<2x22x22xf32, #tpu.memory_space<vmem>>, vector<1x16x16xf32>
    %684 = vector.shape_cast %683 : vector<1x16x16xf32> to vector<16x16xf32>
    %685 = vector.broadcast %264 : f32 to vector<16x16xf32>
    %686 = arith.mulf %685, %684 : vector<16x16xf32>
    %687 = arith.addf %682, %686 : vector<16x16xf32>
    %c1_457 = arith.constant 1 : index
    %c4_458 = arith.constant 4 : index
    %c4_459 = arith.constant 4 : index
    %688 = vector.load %arg6[%c1_457, %c4_458, %c4_459] : memref<2x22x22xf32, #tpu.memory_space<vmem>>, vector<1x16x16xf32>
    %689 = vector.shape_cast %688 : vector<1x16x16xf32> to vector<16x16xf32>
    %690 = vector.broadcast %265 : f32 to vector<16x16xf32>
    %691 = arith.mulf %690, %689 : vector<16x16xf32>
    %692 = arith.addf %687, %691 : vector<16x16xf32>
    %c1_460 = arith.constant 1 : index
    %c4_461 = arith.constant 4 : index
    %c5_462 = arith.constant 5 : index
    %693 = vector.load %arg6[%c1_460, %c4_461, %c5_462] : memref<2x22x22xf32, #tpu.memory_space<vmem>>, vector<1x16x16xf32>
    %694 = vector.shape_cast %693 : vector<1x16x16xf32> to vector<16x16xf32>
    %695 = vector.broadcast %266 : f32 to vector<16x16xf32>
    %696 = arith.mulf %695, %694 : vector<16x16xf32>
    %697 = arith.addf %692, %696 : vector<16x16xf32>
    %c1_463 = arith.constant 1 : index
    %c4_464 = arith.constant 4 : index
    %c6_465 = arith.constant 6 : index
    %698 = vector.load %arg6[%c1_463, %c4_464, %c6_465] : memref<2x22x22xf32, #tpu.memory_space<vmem>>, vector<1x16x16xf32>
    %699 = vector.shape_cast %698 : vector<1x16x16xf32> to vector<16x16xf32>
    %700 = vector.broadcast %267 : f32 to vector<16x16xf32>
    %701 = arith.mulf %700, %699 : vector<16x16xf32>
    %702 = arith.addf %697, %701 : vector<16x16xf32>
    %c1_466 = arith.constant 1 : index
    %c5_467 = arith.constant 5 : index
    %c0_468 = arith.constant 0 : index
    %703 = vector.load %arg6[%c1_466, %c5_467, %c0_468] : memref<2x22x22xf32, #tpu.memory_space<vmem>>, vector<1x16x16xf32>
    %704 = vector.shape_cast %703 : vector<1x16x16xf32> to vector<16x16xf32>
    %705 = vector.broadcast %268 : f32 to vector<16x16xf32>
    %706 = arith.mulf %705, %704 : vector<16x16xf32>
    %707 = arith.addf %702, %706 : vector<16x16xf32>
    %c1_469 = arith.constant 1 : index
    %c5_470 = arith.constant 5 : index
    %c1_471 = arith.constant 1 : index
    %708 = vector.load %arg6[%c1_469, %c5_470, %c1_471] : memref<2x22x22xf32, #tpu.memory_space<vmem>>, vector<1x16x16xf32>
    %709 = vector.shape_cast %708 : vector<1x16x16xf32> to vector<16x16xf32>
    %710 = vector.broadcast %269 : f32 to vector<16x16xf32>
    %711 = arith.mulf %710, %709 : vector<16x16xf32>
    %712 = arith.addf %707, %711 : vector<16x16xf32>
    %c1_472 = arith.constant 1 : index
    %c5_473 = arith.constant 5 : index
    %c2_474 = arith.constant 2 : index
    %713 = vector.load %arg6[%c1_472, %c5_473, %c2_474] : memref<2x22x22xf32, #tpu.memory_space<vmem>>, vector<1x16x16xf32>
    %714 = vector.shape_cast %713 : vector<1x16x16xf32> to vector<16x16xf32>
    %715 = vector.broadcast %270 : f32 to vector<16x16xf32>
    %716 = arith.mulf %715, %714 : vector<16x16xf32>
    %717 = arith.addf %712, %716 : vector<16x16xf32>
    %c1_475 = arith.constant 1 : index
    %c5_476 = arith.constant 5 : index
    %c3_477 = arith.constant 3 : index
    %718 = vector.load %arg6[%c1_475, %c5_476, %c3_477] : memref<2x22x22xf32, #tpu.memory_space<vmem>>, vector<1x16x16xf32>
    %719 = vector.shape_cast %718 : vector<1x16x16xf32> to vector<16x16xf32>
    %720 = vector.broadcast %271 : f32 to vector<16x16xf32>
    %721 = arith.mulf %720, %719 : vector<16x16xf32>
    %722 = arith.addf %717, %721 : vector<16x16xf32>
    %c1_478 = arith.constant 1 : index
    %c5_479 = arith.constant 5 : index
    %c4_480 = arith.constant 4 : index
    %723 = vector.load %arg6[%c1_478, %c5_479, %c4_480] : memref<2x22x22xf32, #tpu.memory_space<vmem>>, vector<1x16x16xf32>
    %724 = vector.shape_cast %723 : vector<1x16x16xf32> to vector<16x16xf32>
    %725 = vector.broadcast %272 : f32 to vector<16x16xf32>
    %726 = arith.mulf %725, %724 : vector<16x16xf32>
    %727 = arith.addf %722, %726 : vector<16x16xf32>
    %c1_481 = arith.constant 1 : index
    %c5_482 = arith.constant 5 : index
    %c5_483 = arith.constant 5 : index
    %728 = vector.load %arg6[%c1_481, %c5_482, %c5_483] : memref<2x22x22xf32, #tpu.memory_space<vmem>>, vector<1x16x16xf32>
    %729 = vector.shape_cast %728 : vector<1x16x16xf32> to vector<16x16xf32>
    %730 = vector.broadcast %273 : f32 to vector<16x16xf32>
    %731 = arith.mulf %730, %729 : vector<16x16xf32>
    %732 = arith.addf %727, %731 : vector<16x16xf32>
    %c1_484 = arith.constant 1 : index
    %c5_485 = arith.constant 5 : index
    %c6_486 = arith.constant 6 : index
    %733 = vector.load %arg6[%c1_484, %c5_485, %c6_486] : memref<2x22x22xf32, #tpu.memory_space<vmem>>, vector<1x16x16xf32>
    %734 = vector.shape_cast %733 : vector<1x16x16xf32> to vector<16x16xf32>
    %735 = vector.broadcast %274 : f32 to vector<16x16xf32>
    %736 = arith.mulf %735, %734 : vector<16x16xf32>
    %737 = arith.addf %732, %736 : vector<16x16xf32>
    %c1_487 = arith.constant 1 : index
    %c6_488 = arith.constant 6 : index
    %c0_489 = arith.constant 0 : index
    %738 = vector.load %arg6[%c1_487, %c6_488, %c0_489] : memref<2x22x22xf32, #tpu.memory_space<vmem>>, vector<1x16x16xf32>
    %739 = vector.shape_cast %738 : vector<1x16x16xf32> to vector<16x16xf32>
    %740 = vector.broadcast %275 : f32 to vector<16x16xf32>
    %741 = arith.mulf %740, %739 : vector<16x16xf32>
    %742 = arith.addf %737, %741 : vector<16x16xf32>
    %c1_490 = arith.constant 1 : index
    %c6_491 = arith.constant 6 : index
    %c1_492 = arith.constant 1 : index
    %743 = vector.load %arg6[%c1_490, %c6_491, %c1_492] : memref<2x22x22xf32, #tpu.memory_space<vmem>>, vector<1x16x16xf32>
    %744 = vector.shape_cast %743 : vector<1x16x16xf32> to vector<16x16xf32>
    %745 = vector.broadcast %276 : f32 to vector<16x16xf32>
    %746 = arith.mulf %745, %744 : vector<16x16xf32>
    %747 = arith.addf %742, %746 : vector<16x16xf32>
    %c1_493 = arith.constant 1 : index
    %c6_494 = arith.constant 6 : index
    %c2_495 = arith.constant 2 : index
    %748 = vector.load %arg6[%c1_493, %c6_494, %c2_495] : memref<2x22x22xf32, #tpu.memory_space<vmem>>, vector<1x16x16xf32>
    %749 = vector.shape_cast %748 : vector<1x16x16xf32> to vector<16x16xf32>
    %750 = vector.broadcast %277 : f32 to vector<16x16xf32>
    %751 = arith.mulf %750, %749 : vector<16x16xf32>
    %752 = arith.addf %747, %751 : vector<16x16xf32>
    %c1_496 = arith.constant 1 : index
    %c6_497 = arith.constant 6 : index
    %c3_498 = arith.constant 3 : index
    %753 = vector.load %arg6[%c1_496, %c6_497, %c3_498] : memref<2x22x22xf32, #tpu.memory_space<vmem>>, vector<1x16x16xf32>
    %754 = vector.shape_cast %753 : vector<1x16x16xf32> to vector<16x16xf32>
    %755 = vector.broadcast %278 : f32 to vector<16x16xf32>
    %756 = arith.mulf %755, %754 : vector<16x16xf32>
    %757 = arith.addf %752, %756 : vector<16x16xf32>
    %c1_499 = arith.constant 1 : index
    %c6_500 = arith.constant 6 : index
    %c4_501 = arith.constant 4 : index
    %758 = vector.load %arg6[%c1_499, %c6_500, %c4_501] : memref<2x22x22xf32, #tpu.memory_space<vmem>>, vector<1x16x16xf32>
    %759 = vector.shape_cast %758 : vector<1x16x16xf32> to vector<16x16xf32>
    %760 = vector.broadcast %279 : f32 to vector<16x16xf32>
    %761 = arith.mulf %760, %759 : vector<16x16xf32>
    %762 = arith.addf %757, %761 : vector<16x16xf32>
    %c1_502 = arith.constant 1 : index
    %c6_503 = arith.constant 6 : index
    %c5_504 = arith.constant 5 : index
    %763 = vector.load %arg6[%c1_502, %c6_503, %c5_504] : memref<2x22x22xf32, #tpu.memory_space<vmem>>, vector<1x16x16xf32>
    %764 = vector.shape_cast %763 : vector<1x16x16xf32> to vector<16x16xf32>
    %765 = vector.broadcast %280 : f32 to vector<16x16xf32>
    %766 = arith.mulf %765, %764 : vector<16x16xf32>
    %767 = arith.addf %762, %766 : vector<16x16xf32>
    %c1_505 = arith.constant 1 : index
    %c6_506 = arith.constant 6 : index
    %c6_507 = arith.constant 6 : index
    %768 = vector.load %arg6[%c1_505, %c6_506, %c6_507] : memref<2x22x22xf32, #tpu.memory_space<vmem>>, vector<1x16x16xf32>
    %769 = vector.shape_cast %768 : vector<1x16x16xf32> to vector<16x16xf32>
    %770 = vector.broadcast %281 : f32 to vector<16x16xf32>
    %771 = arith.mulf %770, %769 : vector<16x16xf32>
    %772 = arith.addf %767, %771 : vector<16x16xf32>
    %c0_508 = arith.constant 0 : index
    %773 = memref.load %arg2[%c0_508] : memref<1xf32, #tpu.memory_space<smem>>
    %774 = vector.broadcast %773 : f32 to vector<16x16xf32>
    %775 = arith.addf %772, %774 : vector<16x16xf32>
    %776 = arith.negf %775 : vector<16x16xf32>
    %777 = math.exp %776 : vector<16x16xf32>
    %cst_509 = arith.constant 1.000000e+00 : f32
    %778 = vector.broadcast %cst_509 : f32 to vector<16x16xf32>
    %779 = arith.addf %778, %777 : vector<16x16xf32>
    %780 = arith.divf %778, %779 : vector<16x16xf32>
    %c0_510 = arith.constant 0 : index
    %c0_511 = arith.constant 0 : index
    %781 = vector.load %arg7[%c0_510, %c0_511] : memref<16x16xf32, #tpu.memory_space<vmem>>, vector<16x16xf32>
    tpu.vector_store %arg7[%c0_510, %c0_511], %780 {strides = array<i32>} : memref<16x16xf32, #tpu.memory_space<vmem>>, vector<16x16xf32>,
    %c0_512 = arith.constant 0 : index
    %c0_513 = arith.constant 0 : index
    %782 = vector.load %arg7[%c0_512, %c0_513] : memref<16x16xf32, #tpu.memory_space<vmem>>, vector<1x16xf32>
    %783 = vector.shape_cast %782 : vector<1x16xf32> to vector<16xf32>
    %c0_514 = arith.constant 0 : index
    %c0_515 = arith.constant 0 : index
    %784 = vector.load %arg8[%c0_514, %c0_515] : memref<2x128xf32, #tpu.memory_space<vmem>>, vector<1x16xf32>
    %785 = vector.shape_cast %784 : vector<1x16xf32> to vector<16xf32>
    %786 = vector.shape_cast %783 : vector<16xf32> to vector<1x16xf32>
    tpu.vector_store %arg8[%c0_514, %c0_515], %786 {strides = array<i32>} : memref<2x128xf32, #tpu.memory_space<vmem>>, vector<1x16xf32>,
    %c1_516 = arith.constant 1 : index
    %c0_517 = arith.constant 0 : index
    %787 = vector.load %arg7[%c1_516, %c0_517] : memref<16x16xf32, #tpu.memory_space<vmem>>, vector<1x16xf32>
    %788 = vector.shape_cast %787 : vector<1x16xf32> to vector<16xf32>
    %c0_518 = arith.constant 0 : index
    %c16_519 = arith.constant 16 : index
    %789 = vector.load %arg8[%c0_518, %c16_519] : memref<2x128xf32, #tpu.memory_space<vmem>>, vector<1x16xf32>
    %790 = vector.shape_cast %789 : vector<1x16xf32> to vector<16xf32>
    %791 = vector.shape_cast %788 : vector<16xf32> to vector<1x16xf32>
    tpu.vector_store %arg8[%c0_518, %c16_519], %791 {strides = array<i32>} : memref<2x128xf32, #tpu.memory_space<vmem>>, vector<1x16xf32>,
    %c2_520 = arith.constant 2 : index
    %c0_521 = arith.constant 0 : index
    %792 = vector.load %arg7[%c2_520, %c0_521] : memref<16x16xf32, #tpu.memory_space<vmem>>, vector<1x16xf32>
    %793 = vector.shape_cast %792 : vector<1x16xf32> to vector<16xf32>
    %c0_522 = arith.constant 0 : index
    %c32_523 = arith.constant 32 : index
    %794 = vector.load %arg8[%c0_522, %c32_523] : memref<2x128xf32, #tpu.memory_space<vmem>>, vector<1x16xf32>
    %795 = vector.shape_cast %794 : vector<1x16xf32> to vector<16xf32>
    %796 = vector.shape_cast %793 : vector<16xf32> to vector<1x16xf32>
    tpu.vector_store %arg8[%c0_522, %c32_523], %796 {strides = array<i32>} : memref<2x128xf32, #tpu.memory_space<vmem>>, vector<1x16xf32>,
    %c3_524 = arith.constant 3 : index
    %c0_525 = arith.constant 0 : index
    %797 = vector.load %arg7[%c3_524, %c0_525] : memref<16x16xf32, #tpu.memory_space<vmem>>, vector<1x16xf32>
    %798 = vector.shape_cast %797 : vector<1x16xf32> to vector<16xf32>
    %c0_526 = arith.constant 0 : index
    %c48_527 = arith.constant 48 : index
    %799 = vector.load %arg8[%c0_526, %c48_527] : memref<2x128xf32, #tpu.memory_space<vmem>>, vector<1x16xf32>
    %800 = vector.shape_cast %799 : vector<1x16xf32> to vector<16xf32>
    %801 = vector.shape_cast %798 : vector<16xf32> to vector<1x16xf32>
    tpu.vector_store %arg8[%c0_526, %c48_527], %801 {strides = array<i32>} : memref<2x128xf32, #tpu.memory_space<vmem>>, vector<1x16xf32>,
    %c4_528 = arith.constant 4 : index
    %c0_529 = arith.constant 0 : index
    %802 = vector.load %arg7[%c4_528, %c0_529] : memref<16x16xf32, #tpu.memory_space<vmem>>, vector<1x16xf32>
    %803 = vector.shape_cast %802 : vector<1x16xf32> to vector<16xf32>
    %c0_530 = arith.constant 0 : index
    %c64_531 = arith.constant 64 : index
    %804 = vector.load %arg8[%c0_530, %c64_531] : memref<2x128xf32, #tpu.memory_space<vmem>>, vector<1x16xf32>
    %805 = vector.shape_cast %804 : vector<1x16xf32> to vector<16xf32>
    %806 = vector.shape_cast %803 : vector<16xf32> to vector<1x16xf32>
    tpu.vector_store %arg8[%c0_530, %c64_531], %806 {strides = array<i32>} : memref<2x128xf32, #tpu.memory_space<vmem>>, vector<1x16xf32>,
    %c5_532 = arith.constant 5 : index
    %c0_533 = arith.constant 0 : index
    %807 = vector.load %arg7[%c5_532, %c0_533] : memref<16x16xf32, #tpu.memory_space<vmem>>, vector<1x16xf32>
    %808 = vector.shape_cast %807 : vector<1x16xf32> to vector<16xf32>
    %c0_534 = arith.constant 0 : index
    %c80_535 = arith.constant 80 : index
    %809 = vector.load %arg8[%c0_534, %c80_535] : memref<2x128xf32, #tpu.memory_space<vmem>>, vector<1x16xf32>
    %810 = vector.shape_cast %809 : vector<1x16xf32> to vector<16xf32>
    %811 = vector.shape_cast %808 : vector<16xf32> to vector<1x16xf32>
    tpu.vector_store %arg8[%c0_534, %c80_535], %811 {strides = array<i32>} : memref<2x128xf32, #tpu.memory_space<vmem>>, vector<1x16xf32>,
    %c6_536 = arith.constant 6 : index
    %c0_537 = arith.constant 0 : index
    %812 = vector.load %arg7[%c6_536, %c0_537] : memref<16x16xf32, #tpu.memory_space<vmem>>, vector<1x16xf32>
    %813 = vector.shape_cast %812 : vector<1x16xf32> to vector<16xf32>
    %c0_538 = arith.constant 0 : index
    %c96_539 = arith.constant 96 : index
    %814 = vector.load %arg8[%c0_538, %c96_539] : memref<2x128xf32, #tpu.memory_space<vmem>>, vector<1x16xf32>
    %815 = vector.shape_cast %814 : vector<1x16xf32> to vector<16xf32>
    %816 = vector.shape_cast %813 : vector<16xf32> to vector<1x16xf32>
    tpu.vector_store %arg8[%c0_538, %c96_539], %816 {strides = array<i32>} : memref<2x128xf32, #tpu.memory_space<vmem>>, vector<1x16xf32>,
    %c7_540 = arith.constant 7 : index
    %c0_541 = arith.constant 0 : index
    %817 = vector.load %arg7[%c7_540, %c0_541] : memref<16x16xf32, #tpu.memory_space<vmem>>, vector<1x16xf32>
    %818 = vector.shape_cast %817 : vector<1x16xf32> to vector<16xf32>
    %c0_542 = arith.constant 0 : index
    %c112_543 = arith.constant 112 : index
    %819 = vector.load %arg8[%c0_542, %c112_543] : memref<2x128xf32, #tpu.memory_space<vmem>>, vector<1x16xf32>
    %820 = vector.shape_cast %819 : vector<1x16xf32> to vector<16xf32>
    %821 = vector.shape_cast %818 : vector<16xf32> to vector<1x16xf32>
    tpu.vector_store %arg8[%c0_542, %c112_543], %821 {strides = array<i32>} : memref<2x128xf32, #tpu.memory_space<vmem>>, vector<1x16xf32>,
    %c8_544 = arith.constant 8 : index
    %c0_545 = arith.constant 0 : index
    %822 = vector.load %arg7[%c8_544, %c0_545] : memref<16x16xf32, #tpu.memory_space<vmem>>, vector<1x16xf32>
    %823 = vector.shape_cast %822 : vector<1x16xf32> to vector<16xf32>
    %c1_546 = arith.constant 1 : index
    %c0_547 = arith.constant 0 : index
    %824 = vector.load %arg8[%c1_546, %c0_547] : memref<2x128xf32, #tpu.memory_space<vmem>>, vector<1x16xf32>
    %825 = vector.shape_cast %824 : vector<1x16xf32> to vector<16xf32>
    %826 = vector.shape_cast %823 : vector<16xf32> to vector<1x16xf32>
    tpu.vector_store %arg8[%c1_546, %c0_547], %826 {strides = array<i32>} : memref<2x128xf32, #tpu.memory_space<vmem>>, vector<1x16xf32>,
    %c9_548 = arith.constant 9 : index
    %c0_549 = arith.constant 0 : index
    %827 = vector.load %arg7[%c9_548, %c0_549] : memref<16x16xf32, #tpu.memory_space<vmem>>, vector<1x16xf32>
    %828 = vector.shape_cast %827 : vector<1x16xf32> to vector<16xf32>
    %c1_550 = arith.constant 1 : index
    %c16_551 = arith.constant 16 : index
    %829 = vector.load %arg8[%c1_550, %c16_551] : memref<2x128xf32, #tpu.memory_space<vmem>>, vector<1x16xf32>
    %830 = vector.shape_cast %829 : vector<1x16xf32> to vector<16xf32>
    %831 = vector.shape_cast %828 : vector<16xf32> to vector<1x16xf32>
    tpu.vector_store %arg8[%c1_550, %c16_551], %831 {strides = array<i32>} : memref<2x128xf32, #tpu.memory_space<vmem>>, vector<1x16xf32>,
    %c10_552 = arith.constant 10 : index
    %c0_553 = arith.constant 0 : index
    %832 = vector.load %arg7[%c10_552, %c0_553] : memref<16x16xf32, #tpu.memory_space<vmem>>, vector<1x16xf32>
    %833 = vector.shape_cast %832 : vector<1x16xf32> to vector<16xf32>
    %c1_554 = arith.constant 1 : index
    %c32_555 = arith.constant 32 : index
    %834 = vector.load %arg8[%c1_554, %c32_555] : memref<2x128xf32, #tpu.memory_space<vmem>>, vector<1x16xf32>
    %835 = vector.shape_cast %834 : vector<1x16xf32> to vector<16xf32>
    %836 = vector.shape_cast %833 : vector<16xf32> to vector<1x16xf32>
    tpu.vector_store %arg8[%c1_554, %c32_555], %836 {strides = array<i32>} : memref<2x128xf32, #tpu.memory_space<vmem>>, vector<1x16xf32>,
    %c11_556 = arith.constant 11 : index
    %c0_557 = arith.constant 0 : index
    %837 = vector.load %arg7[%c11_556, %c0_557] : memref<16x16xf32, #tpu.memory_space<vmem>>, vector<1x16xf32>
    %838 = vector.shape_cast %837 : vector<1x16xf32> to vector<16xf32>
    %c1_558 = arith.constant 1 : index
    %c48_559 = arith.constant 48 : index
    %839 = vector.load %arg8[%c1_558, %c48_559] : memref<2x128xf32, #tpu.memory_space<vmem>>, vector<1x16xf32>
    %840 = vector.shape_cast %839 : vector<1x16xf32> to vector<16xf32>
    %841 = vector.shape_cast %838 : vector<16xf32> to vector<1x16xf32>
    tpu.vector_store %arg8[%c1_558, %c48_559], %841 {strides = array<i32>} : memref<2x128xf32, #tpu.memory_space<vmem>>, vector<1x16xf32>,
    %c12_560 = arith.constant 12 : index
    %c0_561 = arith.constant 0 : index
    %842 = vector.load %arg7[%c12_560, %c0_561] : memref<16x16xf32, #tpu.memory_space<vmem>>, vector<1x16xf32>
    %843 = vector.shape_cast %842 : vector<1x16xf32> to vector<16xf32>
    %c1_562 = arith.constant 1 : index
    %c64_563 = arith.constant 64 : index
    %844 = vector.load %arg8[%c1_562, %c64_563] : memref<2x128xf32, #tpu.memory_space<vmem>>, vector<1x16xf32>
    %845 = vector.shape_cast %844 : vector<1x16xf32> to vector<16xf32>
    %846 = vector.shape_cast %843 : vector<16xf32> to vector<1x16xf32>
    tpu.vector_store %arg8[%c1_562, %c64_563], %846 {strides = array<i32>} : memref<2x128xf32, #tpu.memory_space<vmem>>, vector<1x16xf32>,
    %c13_564 = arith.constant 13 : index
    %c0_565 = arith.constant 0 : index
    %847 = vector.load %arg7[%c13_564, %c0_565] : memref<16x16xf32, #tpu.memory_space<vmem>>, vector<1x16xf32>
    %848 = vector.shape_cast %847 : vector<1x16xf32> to vector<16xf32>
    %c1_566 = arith.constant 1 : index
    %c80_567 = arith.constant 80 : index
    %849 = vector.load %arg8[%c1_566, %c80_567] : memref<2x128xf32, #tpu.memory_space<vmem>>, vector<1x16xf32>
    %850 = vector.shape_cast %849 : vector<1x16xf32> to vector<16xf32>
    %851 = vector.shape_cast %848 : vector<16xf32> to vector<1x16xf32>
    tpu.vector_store %arg8[%c1_566, %c80_567], %851 {strides = array<i32>} : memref<2x128xf32, #tpu.memory_space<vmem>>, vector<1x16xf32>,
    %c14_568 = arith.constant 14 : index
    %c0_569 = arith.constant 0 : index
    %852 = vector.load %arg7[%c14_568, %c0_569] : memref<16x16xf32, #tpu.memory_space<vmem>>, vector<1x16xf32>
    %853 = vector.shape_cast %852 : vector<1x16xf32> to vector<16xf32>
    %c1_570 = arith.constant 1 : index
    %c96_571 = arith.constant 96 : index
    %854 = vector.load %arg8[%c1_570, %c96_571] : memref<2x128xf32, #tpu.memory_space<vmem>>, vector<1x16xf32>
    %855 = vector.shape_cast %854 : vector<1x16xf32> to vector<16xf32>
    %856 = vector.shape_cast %853 : vector<16xf32> to vector<1x16xf32>
    tpu.vector_store %arg8[%c1_570, %c96_571], %856 {strides = array<i32>} : memref<2x128xf32, #tpu.memory_space<vmem>>, vector<1x16xf32>,
    %c15_572 = arith.constant 15 : index
    %c0_573 = arith.constant 0 : index
    %857 = vector.load %arg7[%c15_572, %c0_573] : memref<16x16xf32, #tpu.memory_space<vmem>>, vector<1x16xf32>
    %858 = vector.shape_cast %857 : vector<1x16xf32> to vector<16xf32>
    %c1_574 = arith.constant 1 : index
    %c112_575 = arith.constant 112 : index
    %859 = vector.load %arg8[%c1_574, %c112_575] : memref<2x128xf32, #tpu.memory_space<vmem>>, vector<1x16xf32>
    %860 = vector.shape_cast %859 : vector<1x16xf32> to vector<16xf32>
    %861 = vector.shape_cast %858 : vector<16xf32> to vector<1x16xf32>
    tpu.vector_store %arg8[%c1_574, %c112_575], %861 {strides = array<i32>} : memref<2x128xf32, #tpu.memory_space<vmem>>, vector<1x16xf32>,
    %c0_576 = arith.constant 0 : index
    %c0_577 = arith.constant 0 : index
    %862 = vector.load %arg8[%c0_576, %c0_577] : memref<2x128xf32, #tpu.memory_space<vmem>>, vector<2x128xf32>
    %c0_578 = arith.constant 0 : index
    %c0_579 = arith.constant 0 : index
    %c0_580 = arith.constant 0 : index
    %863 = vector.load %arg3[%c0_578, %c0_579, %c0_580] : memref<1x8x128xf32, #tpu.memory_space<vmem>>, vector<1x2x128xf32>
    %864 = vector.shape_cast %863 : vector<1x2x128xf32> to vector<2x128xf32>
    %865 = arith.mulf %864, %862 : vector<2x128xf32>
    %c0_581 = arith.constant 0 : index
    %c0_582 = arith.constant 0 : index
    %c0_583 = arith.constant 0 : index
    %866 = vector.load %arg4[%c0_581, %c0_582, %c0_583] : memref<1x8x128xf32, #tpu.memory_space<vmem>>, vector<1x2x128xf32>
    %867 = vector.shape_cast %866 : vector<1x2x128xf32> to vector<2x128xf32>
    %868 = vector.shape_cast %865 : vector<2x128xf32> to vector<1x2x128xf32>
    tpu.vector_store %arg4[%c0_581, %c0_582, %c0_583], %868 {strides = array<i32>} : memref<1x8x128xf32, #tpu.memory_space<vmem>>, vector<1x2x128xf32>,
    %c0_584 = arith.constant 0 : index
    %c2_585 = arith.constant 2 : index
    %c0_586 = arith.constant 0 : index
    %869 = vector.load %arg3[%c0_584, %c2_585, %c0_586] : memref<1x8x128xf32, #tpu.memory_space<vmem>>, vector<1x2x128xf32>
    %870 = vector.shape_cast %869 : vector<1x2x128xf32> to vector<2x128xf32>
    %871 = arith.mulf %870, %862 : vector<2x128xf32>
    %c0_587 = arith.constant 0 : index
    %c2_588 = arith.constant 2 : index
    %c0_589 = arith.constant 0 : index
    %872 = vector.load %arg4[%c0_587, %c2_588, %c0_589] : memref<1x8x128xf32, #tpu.memory_space<vmem>>, vector<1x2x128xf32>
    %873 = vector.shape_cast %872 : vector<1x2x128xf32> to vector<2x128xf32>
    %874 = vector.shape_cast %871 : vector<2x128xf32> to vector<1x2x128xf32>
    tpu.vector_store %arg4[%c0_587, %c2_588, %c0_589], %874 {strides = array<i32>} : memref<1x8x128xf32, #tpu.memory_space<vmem>>, vector<1x2x128xf32>,
    %c0_590 = arith.constant 0 : index
    %c4_591 = arith.constant 4 : index
    %c0_592 = arith.constant 0 : index
    %875 = vector.load %arg3[%c0_590, %c4_591, %c0_592] : memref<1x8x128xf32, #tpu.memory_space<vmem>>, vector<1x2x128xf32>
    %876 = vector.shape_cast %875 : vector<1x2x128xf32> to vector<2x128xf32>
    %877 = arith.mulf %876, %862 : vector<2x128xf32>
    %c0_593 = arith.constant 0 : index
    %c4_594 = arith.constant 4 : index
    %c0_595 = arith.constant 0 : index
    %878 = vector.load %arg4[%c0_593, %c4_594, %c0_595] : memref<1x8x128xf32, #tpu.memory_space<vmem>>, vector<1x2x128xf32>
    %879 = vector.shape_cast %878 : vector<1x2x128xf32> to vector<2x128xf32>
    %880 = vector.shape_cast %877 : vector<2x128xf32> to vector<1x2x128xf32>
    tpu.vector_store %arg4[%c0_593, %c4_594, %c0_595], %880 {strides = array<i32>} : memref<1x8x128xf32, #tpu.memory_space<vmem>>, vector<1x2x128xf32>,
    %c0_596 = arith.constant 0 : index
    %c6_597 = arith.constant 6 : index
    %c0_598 = arith.constant 0 : index
    %881 = vector.load %arg3[%c0_596, %c6_597, %c0_598] : memref<1x8x128xf32, #tpu.memory_space<vmem>>, vector<1x2x128xf32>
    %882 = vector.shape_cast %881 : vector<1x2x128xf32> to vector<2x128xf32>
    %883 = arith.mulf %882, %862 : vector<2x128xf32>
    %c0_599 = arith.constant 0 : index
    %c6_600 = arith.constant 6 : index
    %c0_601 = arith.constant 0 : index
    %884 = vector.load %arg4[%c0_599, %c6_600, %c0_601] : memref<1x8x128xf32, #tpu.memory_space<vmem>>, vector<1x2x128xf32>
    %885 = vector.shape_cast %884 : vector<1x2x128xf32> to vector<2x128xf32>
    %886 = vector.shape_cast %883 : vector<2x128xf32> to vector<1x2x128xf32>
    tpu.vector_store %arg4[%c0_599, %c6_600, %c0_601], %886 {strides = array<i32>} : memref<1x8x128xf32, #tpu.memory_space<vmem>>, vector<1x2x128xf32>,
    return
  }
  func.func @transform_0(%arg0: i32) -> i32 {
    %c0_i32 = arith.constant 0 : i32
    %c0_i32_0 = arith.constant 0 : i32
    return %c0_i32 : i32
  }
  func.func @transform_1(%arg0: i32) -> i32 {
    %c0_i32 = arith.constant 0 : i32
    %c0_i32_0 = arith.constant 0 : i32
    return %c0_i32 : i32
  }
  func.func @transform_2(%arg0: i32) -> (i32, i32, i32) {
    %c0_i32 = arith.constant 0 : i32
    %c0_i32_0 = arith.constant 0 : i32
    %c0_i32_1 = arith.constant 0 : i32
    return %arg0, %c0_i32, %c0_i32_0 : i32, i32, i32
  }
  func.func @transform_3(%arg0: i32) -> (i32, i32, i32) {
    %c0_i32 = arith.constant 0 : i32
    %c0_i32_0 = arith.constant 0 : i32
    %c0_i32_1 = arith.constant 0 : i32
    return %arg0, %c0_i32, %c0_i32_0 : i32, i32, i32
  }
}

</mosaic_0001>

<bundles_post_ra>
// kernel: tpu_custom_call.1
= control target key start
LH: loop header
LB: loop body
LE: loop exit
PB: predicated region body
PF: predicated region fallthrough
CT: control target
= control target key end

     0   :  { %s3290_s0 = inlined_call_operand.vmem [shape: f32[98], index: 0, kind: input, shape index: {}]   ;;  %s3291_s1 = inlined_call_operand.<no memory space> [shape: f32[1], index: 1, kind: input, shape index: {}]   ;;  %s3292_s2 = inlined_call_operand.hbm [shape: f32[2,8,128], index: 2, kind: input, shape index: {}]   ;;  %s3293_s3 = inlined_call_operand.hbm [shape: f32[2,8,128], index: 3, kind: output, shape index: {}]  }
   0x1   :  { %8 = sst [smem:[#allocation6]] %s3291_s1 }
   0x2   :  { %9 = vsyncpa [#allocation10], 0 }
   0x3   :  { %10 = vsyncpa [#allocation8], 0 }
   0x4   :  { %12 = vsyncpa [#allocation8 + $0x1], 0 }
   0x5   :  { %13 = vsyncpa [#allocation9], 0 }
   0x6   :  { %15 = vsyncpa [#allocation9 + $0x1], 0  ;;  %s2294_s14 = smov 0   ;;  %s2296_s15 = smov 0  }
   0x7   :  { %s2298_s16 = smov 0   ;;  %s2300_s17 = smov 0  }
   0x8 LB: > { %s2315_s1 = sadd.s32 4294967295, %s2244_s17   ;;  %s1929_s18 = sadd.s32 4294967294, %s2244_s17   ;;  %s2244_s17 = sphi %s2300_s17, %s3314_s17   ;;  %s2240_s16 = sphi %s2298_s16, %s3313_s16   ;;  %s2236_s15 = sphi %s2296_s15, %s3312_s15   ;;  %s2232_s14 = sphi %s2294_s14, %s3311_s14  }
   0x9   : > { %p83_p0 = scmp.ne.s32.totalorder %s2236_s15, %s2232_s14  ;;  %p3294_p1 = scmp.eq.s32.totalorder %s2315_s1, 0 }
   0xa   : > { %p113_p3 = scmp.eq.s32.totalorder %s1929_s18, 1  ;;  %p1930_p5 = scmp.ge.s32.totalorder %s2244_s17, 1 }
   0xb   : > { %p2324_p4 = por %p3294_p1, %p83_p0  ;;  %p120_p7 = scmp.lt.s32.totalorder %s2244_s17, 3 }
   0xc   : > { %p2329_p6 = por %p113_p3, %p83_p0  ;;  %s133_s23 = sshll.u32 %s3290_s0, 4  ;;  %s134_s23 = int_to_ptr.vmem [resolvable:$true] %s133_s23 }
   0xd   : > { %s3297_s19 = scalar_select %p2324_p4, 1, 0 }
   0xe   : > { %s3298_s20 = scalar_select %p2329_p6, 1, 0 }
   0xf   : > { %p2337_p8 = pnand %p1930_p5, %p120_p7  ;;  %s2345_s25 = sadd.s32 1, %s2244_s17  }
  0x10   : > { %s67_s27 = ssub.s32 %s2244_s17, %s2345_s25  ;;  %s70_s29 = sadd.s32 1, %s2240_s16 }
  0x11   : > { %p2050_p10 = pneg %p2337_p8  ;;  %p2355_p12 = scmp.eq.s32.totalorder %s67_s27, 0 }
  0x12   : > { %p77_p13 = scmp.ne.s32.totalorder %s2240_s16, %s2236_s15  ;;  %s2129_s30 = scalar_lea.vmem %s134_s23, 16 }
  0x13   : > { %p2349_p11 = pnand %p2050_p10, %p3294_p1  ;;  %p2130_p0 = scmp.ne.s32.totalorder %s134_s23, %s2129_s30 }
  0x14   : > { %p2137_p9 = scmp.lt.s32.totalorder %s134_s23, %s134_s23  ;;  %p2138_p2 = scmp.lt.s32.totalorder %s2129_s30, %s2129_s30 }
  0x15   : > { %p2131_p3 = pneg %p2349_p11 }
  0x16   : > { %p2139_p10 = por %p2138_p2, %p2137_p9 }
  0x17   : > { %p2132_p5 = pnand %p2131_p3, %p2130_p0 }
  0x19   : > { %p2133_p7 = pneg %p2132_p5 }
  0x1b   : > { %p2140_p1 = pnand %p2139_p10, %p2133_p7 }
  0x1d   : > { %2143 = shalt.err (!%p2140_p1)
}
  0x1e   : > { %s2246_s4 = smov [#allocation7]   ;;  %p78_p2 = scmp.eq.s32.totalorder %s2244_s17, 0 }
  0x1f   : > { %2053 = dma.vmem_to_smem (!%p2349_p11), %s134_s23, 16, %s2246_s4, [#allocation10]  }
  0x20   : > { %s2369_s5 = scalar_select %p2355_p12, %s2240_s16, %s70_s29  }
  0x21   : > { %p3302_p1 = scmp.eq.s32.totalorder %s2315_s1, 1  ;;  %p2063_p0 = scmp.lt.s32.totalorder %s2244_s17, 2 }
  0x22   : > { %s147_s7 = sand.u32 1, %s2240_s16   ;;  %p79_p3 = por %p78_p2, %p77_p13 }
  0x23   : > { %p2377_p9 = por %p3302_p1, %p77_p13  ;;  %s1933_s8 = sshll.u32 %s147_s7, 3 }
  0x24   : > { %s1934_s9 = sshll.u32 %s2244_s17, 7  ;;  %s151_s13 = scalar_lea.vmem [#allocation11], %s1933_s8 }
  0x25   : > { %s3303_s6 = scalar_select %p2377_p9, 1, 0 }
  0x26   : > { %s2390_s12 = scalar_lea.hbm %s3292_s2, %s1934_s9  ;;  %s158_s18 = sshll.u32 %s151_s13, 4  ;;  %s2396_s18 = int_to_ptr.vmem [resolvable:$true] %s158_s18 }
  0x27   : > { %p2392_p11 = pnand %p2063_p0, %p79_p3  ;;  %s148_s22 = scalar_lea.sflag [#allocation8], %s147_s7 }
  0x28   : > { %s2144_s23 = scalar_lea.hbm %s2390_s12, 128  ;;  %s2149_s28 = scalar_lea.hbm %s3292_s2, 256 }
  0x29   : > { %p2145_p12 = scmp.ne.s32.totalorder %s2390_s12, %s2144_s23  ;;  %p2146_p13 = pneg %p2392_p11 }
  0x2a   : > { %p2150_p10 = scmp.lt.u32.totalorder %s2390_s12, %s3292_s2  ;;  %p2151_p2 = scmp.lt.u32.totalorder %s2149_s28, %s2144_s23 }
  0x2b   : > { %p2147_p5 = pnand %p2146_p13, %p2145_p12  ;;  %p2153_p0 = scmp.lt.u32.totalorder %s2144_s23, %s2390_s12 }
  0x2c   : > { %p2152_p1 = por %p2151_p2, %p2150_p10 }
  0x2d   : > { %p2148_p7 = pneg %p2147_p5 }
  0x2e   : > { %p2154_p3 = por %p2153_p0, %p2152_p1 }
  0x30   : > { %p2155_p6 = pnand %p2154_p3, %p2148_p7 }
  0x32   : > { %2158 = shalt.err (!%p2155_p6)
}
  0x33   : > { %s2159_s4 = scalar_lea.vmem %s2396_s18, 128  ;;  %s2247_s7 = smov [#allocation11]  }
  0x34   : > { %p2160_p12 = scmp.ne.s32.totalorder %s2396_s18, %s2159_s4  ;;  %s2164_s8 = sshll.u32 %s2247_s7, 4  ;;  %s2165_s8 = int_to_ptr.vmem [resolvable:$false] %s2164_s8 }
  0x35   : > { %s2166_s9 = scalar_lea.vmem %s2165_s8, 256  ;;  %p2167_p4 = scmp.lt.s32.totalorder %s2396_s18, %s2165_s8 }
  0x36   : > { %p2162_p5 = pnand %p2160_p12, %p2146_p13  ;;  %p2168_p10 = scmp.lt.s32.totalorder %s2166_s9, %s2159_s4 }
  0x38   : > { %p2163_p9 = pneg %p2162_p5  ;;  %p2169_p2 = por %p2168_p10, %p2167_p4 }
  0x3a   : > { %p2170_p1 = pnand %p2169_p2, %p2163_p9 }
  0x3c   : > { %2173 = shalt.err (!%p2170_p1)
}
  0x3d   : > { %2057 = dma.hbm_to_vmem [thread:$0]  (!%p2392_p11), %s2390_s12, 128, %s2396_s18, %s148_s22  }
  0x3e   : > { %167 = sbr.rel (%p2337_p8) target bundleno = 890 (0x37a), region = 32  ;;  %p3305_p6 = scmp.eq.s32.totalorder (!%p2337_p8), %s2315_s1, 0 }
  0x45   : > { %2219 = dma.done.wait (%p3305_p6), [#allocation10], 16   ;;  %p3306_p13 = pmov %p3305_p6 }
  0x46   : > { %s2430_s10 = sand.u32 1, %s2236_s15   ;;  %p3307_p4 = scmp.ne.s32.totalorder %s3297_s19, 0 }
  0x47   : > { %2221 = vsyncadd (%p3306_p13), [#allocation10], 4294967280  ;;  %s1937_s11 = sshll.u32 %s2430_s10, 3  ;;  %s174_s13 = scalar_lea.sflag [#allocation8], %s2430_s10 }
  0x48   : > { %s2436_s12 = scalar_lea.vmem [#allocation11], %s1937_s11 }
  0x49   : > { %2223 = dma.done.wait (%p3307_p4), %s174_s13, 128  }
  0x4a   : > { %2225 = vsyncadd (%p3307_p4), %s174_s13, 4294967168 }
  0x4b   : > { %182 = sfence }
  0x4c   : > { %v201_v0 = vld [vmem:[%s2436_s12] sm:$0x3]  ;;  %v202_v1 = vld [vmem:[%s2436_s12 + $0x2] sm:$0x3]  ;;  %v205_v2 = vld [vmem:[%s2436_s12 + $0x4] sm:$0x3] }
  0x4d   : > { %v203_v3 = vmax.f32 %v201_v0, %v202_v1  ;;  %v204_v4 = vadd.f32 %v202_v1, %v201_v0  ;;  %vm215_vm0 = vcmask 179200   ;;  %v208_v5 = vld [vmem:[%s2436_s12 + $0x6] sm:$0x3]  ;;  %v2248_v6 = vmov 0.0   ;;  %s2249_s19 = smov 99   ;;  %s2250_s24 = smov 3  }
  0x4e   : > { %216 = vst.msk [vmem:[#allocation3] sm:$0xff] %vm215_vm0, %v2248_v6  ;;  %217 = vst.msk [vmem:[#allocation3 + $0x8] sm:$0xff] %vm215_vm0, %v2248_v6  ;;  %s2251_s18 = smov 83   ;;  %s2252_s21 = smov 115   ;;  %vm218_vm1 = vcmask 177152   ;;  %vm228_vm2 = vcmask 147480  }
  0x4f   : > { %220 = vst.msk [vmem:[#allocation3 + $0x18] sm:$0xff] %vm215_vm0, %v2248_v6  ;;  %221 = vst.msk [vmem:[#allocation3 + $0x20] sm:$0xff] %vm215_vm0, %v2248_v6  ;;  %v206_v7 = vmax.f32 %v203_v3, %v205_v2  ;;  %v207_v8 = vadd.f32 %v205_v2, %v204_v4  ;;  %s2253_s22 = smov 51   ;;  %s2254_s23 = smov 67   ;;  %vm1721_vm3 = vcmask 130048   ;;  %vm1725_vm4 = vcmask 122880  }
  0x50   : > { %s2255_s26 = smov 19   ;;  %s2256_s27 = smov 35   ;;  %219 = vst.msk [vmem:[#allocation3 + $0x10] sm:$0x3f] %vm218_vm1, %v2248_v6  ;;  %222 = vst.msk [vmem:[#allocation3 + $0x28] sm:$0x3f] %vm218_vm1, %v2248_v6 }
  0x51   : > { %v209_v9 = vmax.f32 %v206_v7, %v208_v5  ;;  %v210_v10 = vadd.f32 %v208_v5, %v207_v8  ;;  %s2482_s28 = sld [smem:[#allocation7 + $0x1]]  ;;  %s2486_s29 = sld [smem:[#allocation7 + $0x2]]  ;;  %vm1732_vm5 = vcmask 254080   ;;  %vm1739_vm6 = vcmask 385280  }
  0x52   : > { %s2491_s30 = sld [smem:[#allocation7 + $0x3]]  ;;  %s2499_s4 = sld [smem:[#allocation7 + $0x4]]  ;;  %vm1746_vm7 = vcmask 516480   ;;  %vm1753_vm8 = vcmask 647680   ;;  %vm1760_vm9 = vcmask 778880   ;;  %vm1767_vm10 = vcmask 910080  }
  0x53   : > { %211 = vst [vmem:[#allocation2] sm:$0x3] %v209_v9  ;;  %v212_v11 = vmul.f32 0.25, %v210_v10  ;;  %s2257_s7 = smov 127   ;;  %s2506_s8 = sld [smem:[#allocation7 + $0x5]]  ;;  %vm1774_vm11 = vcmask 1041280  }
  0x54   : > { %s2258_s9 = smov 126   ;;  %s2513_s13 = sld [smem:[#allocation7 + $0x6]] }
  0x55   : > { %214 = vst [vmem:[#allocation2 + $0x2] sm:$0x3] %v212_v11  ;;  %p3308_p9 = scmp.ne.s32.totalorder %s3303_s6, 0 }
  0x57   : > { %v522_v52 = vstv %s2482_s28  ;;  %v535_v57 = vstv %s2486_s29  ;;  %s2559_s28 = sld [smem:[#allocation7 + $0xc]]  ;;  %s2568_s29 = sld [smem:[#allocation7 + $0xd]] }
  0x58   : > { %v548_v61 = vstv %s2491_s30  ;;  %v561_v1 = vstv %s2499_s4  ;;  %s2579_s30 = sld [smem:[#allocation7 + $0xf]]  ;;  %s2588_s4 = sld [smem:[#allocation7 + $0x10]] }
  0x59   : > { %v574_v5 = vstv %s2506_s8  ;;  %s2599_s8 = sld [smem:[#allocation7 + $0x11]] }
  0x5a   : > { %v236_v12 = vld [vmem:[#allocation2] sm:$0x1]  ;;  %v278_v20 = vld [vmem:[#allocation2 + $0x1] sm:$0x1]  ;;  %v587_v11 = vstv %s2513_s13  ;;  %s2606_s13 = sld [smem:[#allocation7 + $0x12]] }
  0x5b   : > { %v223_v13 = vld [vmem:[#allocation2] sm:$0x1]  ;;  %238 = vrot.lane.b32.xlu1 %v236_v12, %s2249_s19  ;;  %v272_v21 = vld [vmem:[#allocation2 + $0x1] sm:$0x1] }
  0x5c   : > { %225 = vrot.lane.b32.xlu0 %v223_v13, %s2250_s24  ;;  %v242_v14 = vld [vmem:[#allocation2] sm:$0x1]  ;;  %v290_v22 = vld [vmem:[#allocation2 + $0x1] sm:$0x1]  ;;  %v320_v28 = vld [vmem:[#allocation2 + $0x2] sm:$0x1] }
  0x5d   : > { %v230_v15 = vld [vmem:[#allocation2] sm:$0x1]  ;;  %v284_v23 = vld [vmem:[#allocation2 + $0x1] sm:$0x1]  ;;  %v327_v29 = vld [vmem:[#allocation2 + $0x2] sm:$0x1] }
  0x5e   : > { %v254_v16 = vld [vmem:[#allocation2] sm:$0x1]  ;;  %v302_v24 = vld [vmem:[#allocation2 + $0x1] sm:$0x1]  ;;  %v333_v30 = vld [vmem:[#allocation2 + $0x2] sm:$0x1] }
  0x5f   : > { %244 = vrot.lane.b32.xlu1 %v242_v14, %s2251_s18  ;;  %v248_v17 = vld [vmem:[#allocation2] sm:$0x1]  ;;  %v296_v25 = vld [vmem:[#allocation2 + $0x1] sm:$0x1]  ;;  %v339_v31 = vld [vmem:[#allocation2 + $0x2] sm:$0x1] }
  0x60   : > { %232 = vrot.lane.b32.xlu0 %v230_v15, %s2252_s21  ;;  %v266_v18 = vld [vmem:[#allocation2] sm:$0x1]  ;;  %v314_v26 = vld [vmem:[#allocation2 + $0x1] sm:$0x1]  ;;  %v345_v32 = vld [vmem:[#allocation2 + $0x2] sm:$0x1] }
  0x61   : > { %v260_v19 = vld [vmem:[#allocation2] sm:$0x1]  ;;  %v308_v27 = vld [vmem:[#allocation2 + $0x1] sm:$0x1]  ;;  %v351_v33 = vld [vmem:[#allocation2 + $0x2] sm:$0x1] }
  0x62   : > { %v357_v34 = vld [vmem:[#allocation2 + $0x2] sm:$0x1]  ;;  %v369_v36 = vld [vmem:[#allocation2 + $0x3] sm:$0x1] }
  0x63   : > { %256 = vrot.lane.b32.xlu1 %v254_v16, %s2253_s22  ;;  %v363_v35 = vld [vmem:[#allocation2 + $0x2] sm:$0x1]  ;;  %v375_v37 = vld [vmem:[#allocation2 + $0x3] sm:$0x1] }
  0x64   : > { %250 = vrot.lane.b32.xlu0 %v248_v17, %s2254_s23  ;;  %v381_v38 = vld [vmem:[#allocation2 + $0x3] sm:$0x1] }
  0x65   : > { %v387_v39 = vld [vmem:[#allocation2 + $0x3] sm:$0x1] }
  0x66   : > { %v393_v40 = vld [vmem:[#allocation2 + $0x3] sm:$0x1] }
  0x67   : > { %268 = vrot.lane.b32.xlu1 %v266_v18, %s2255_s26  ;;  %v399_v41 = vld [vmem:[#allocation2 + $0x3] sm:$0x1] }
  0x68   : > { %262 = vrot.lane.b32.xlu0 %v260_v19, %s2256_s27  ;;  %v405_v42 = vld [vmem:[#allocation2 + $0x3] sm:$0x1] }
  0x69   : > { %v411_v43 = vld [vmem:[#allocation2 + $0x3] sm:$0x1] }
  0x6b   : > { %280 = vrot.lane.b32.xlu1 %v278_v20, %s2252_s21 }
  0x6c   : > { %274 = vrot.lane.b32.xlu0 %v272_v21, %s2250_s24 }
  0x6f   : > { %292 = vrot.lane.b32.xlu1 %v290_v22, %s2251_s18 }
  0x70   : > { %286 = vrot.lane.b32.xlu0 %v284_v23, %s2249_s19 }
  0x73   : > { %304 = vrot.lane.b32.xlu1 %v302_v24, %s2253_s22 }
  0x74   : > { %298 = vrot.lane.b32.xlu0 %v296_v25, %s2254_s23 }
  0x77   : > { %316 = vrot.lane.b32.xlu1 %v314_v26, %s2255_s26 }
  0x78   : > { %310 = vrot.lane.b32.xlu0 %v308_v27, %s2256_s27 }
  0x7b   : > { %329 = vrot.lane.b32.xlu1 %v327_v29, %s2252_s21 }
  0x7c   : > { %322 = vrot.lane.b32.xlu0 %v320_v28, %s2250_s24 }
  0x7f   : > { %341 = vrot.lane.b32.xlu1 %v339_v31, %s2251_s18 }
  0x80   : > { %335 = vrot.lane.b32.xlu0 %v333_v30, %s2249_s19 }
  0x83   : > { %353 = vrot.lane.b32.xlu1 %v351_v33, %s2253_s22 }
  0x84   : > { %347 = vrot.lane.b32.xlu0 %v345_v32, %s2254_s23 }
  0x87   : > { %365 = vrot.lane.b32.xlu1 %v363_v35, %s2255_s26 }
  0x88   : > { %359 = vrot.lane.b32.xlu0 %v357_v34, %s2256_s27 }
  0x8b   : > { %377 = vrot.lane.b32.xlu1 %v375_v37, %s2252_s21  ;;  %s2530_s21 = sld [smem:[#allocation7 + $0x9]] }
  0x8c   : > { %371 = vrot.lane.b32.xlu0 %v369_v36, %s2250_s24  ;;  %s2520_s24 = sld [smem:[#allocation7 + $0x8]] }
  0x8f   : > { %389 = vrot.lane.b32.xlu1 %v387_v39, %s2251_s18  ;;  %s2260_s18 = smov 124  }
  0x90   : > { %383 = vrot.lane.b32.xlu0 %v381_v38, %s2249_s19  ;;  %s2259_s19 = smov 125   ;;  %v659_v38 = vstv %s2559_s28  ;;  %s2645_s28 = sld [smem:[#allocation7 + $0x18]] }
  0x91   : > { %v620_v22 = vstv %s2530_s21  ;;  %s2620_s21 = sld [smem:[#allocation7 + $0x14]] }
  0x92   : > { %v607_v17 = vstv %s2520_s24  ;;  %s2613_s24 = sld [smem:[#allocation7 + $0x13]] }
  0x93   : > { %401 = vrot.lane.b32.xlu1 %v399_v41, %s2253_s22  ;;  %s2261_s22 = smov 123  }
  0x94   : > { %395 = vrot.lane.b32.xlu0 %v393_v40, %s2254_s23  ;;  %s2541_s23 = sld [smem:[#allocation7 + $0xa]] }
  0x97   : > { %413 = vrot.lane.b32.xlu1 %v411_v43, %s2255_s26  ;;  %s2262_s26 = smov 122   ;;  %v672_v43 = vstv %s2568_s29  ;;  %s2652_s29 = sld [smem:[#allocation7 + $0x19]] }
  0x98   : > { %407 = vrot.lane.b32.xlu0 %v405_v42, %s2256_s27  ;;  %s2550_s27 = sld [smem:[#allocation7 + $0xb]] }
  0x9a   : > { %v633_v27 = vstv %s2541_s23  ;;  %s2629_s23 = sld [smem:[#allocation7 + $0x16]] }
  0x9e   : > { %v646_v32 = vstv %s2550_s27  ;;  %s2636_s27 = sld [smem:[#allocation7 + $0x17]] }
  0xcd   : > { %v239_v44 = vpop.permute.xlu1 %238 }
  0xce   : > { %v226_v45 = vpop.permute.xlu0 %225  ;;  %241 = vst.msk [vmem:[#allocation3 + $0x5] sm:$0x1] %vm228_vm2, %v239_v44 }
  0xcf   : > { %229 = vst.msk [vmem:[#allocation3 + $0x3] sm:$0x1] %vm228_vm2, %v226_v45 }
  0xd1   : > { %v245_v46 = vpop.permute.xlu1 %244 }
  0xd2   : > { %v233_v47 = vpop.permute.xlu0 %232  ;;  %247 = vst.msk [vmem:[#allocation3 + $0x6] sm:$0x1] %vm228_vm2, %v245_v46 }
  0xd3   : > { %235 = vst.msk [vmem:[#allocation3 + $0x4] sm:$0x1] %vm228_vm2, %v233_v47 }
  0xd5   : > { %v257_v48 = vpop.permute.xlu1 %256 }
  0xd6   : > { %v251_v49 = vpop.permute.xlu0 %250  ;;  %259 = vst.msk [vmem:[#allocation3 + $0x8] sm:$0x1] %vm228_vm2, %v257_v48 }
  0xd7   : > { %253 = vst.msk [vmem:[#allocation3 + $0x7] sm:$0x1] %vm228_vm2, %v251_v49  ;;  %v692_v49 = vstv %s2579_s30  ;;  %s2659_s30 = sld [smem:[#allocation7 + $0x1a]] }
  0xd9   : > { %v269_v50 = vpop.permute.xlu1 %268 }
  0xda   : > { %v263_v51 = vpop.permute.xlu0 %262  ;;  %271 = vst.msk [vmem:[#allocation3 + $0xa] sm:$0x1] %vm228_vm2, %v269_v50 }
  0xdb   : > { %265 = vst.msk [vmem:[#allocation3 + $0x9] sm:$0x1] %vm228_vm2, %v263_v51 }
  0xdd   : > { %v281_v54 = vpop.permute.xlu1 %280 }
  0xde   : > { %v2493_v53 = vld [vmem:[#allocation3] sm:$0xff]  ;;  %v275_v55 = vpop.permute.xlu0 %274  ;;  %283 = vst.msk [vmem:[#allocation3 + $0xc] sm:$0x1] %vm228_vm2, %v281_v54 }
  0xdf   : > { %277 = vst.msk [vmem:[#allocation3 + $0xb] sm:$0x1] %vm228_vm2, %v275_v55  ;;  %v523_v56 = vmul.f32 %v522_v52, %v2493_v53  ;;  %v536_v60 = vmul.f32 %v535_v57, %v2493_v53  ;;  %v549_v0 = vmul.f32 %v548_v61, %v2493_v53  ;;  %v562_v4 = vmul.f32 %v561_v1, %v2493_v53  ;;  %v2538_v16 = vld [vmem:[#allocation3 + $0x1] sm:$0xff] }
  0xe0   : > { %v575_v9 = vmul.f32 %v574_v5, %v2493_v53  ;;  %v588_v14 = vmul.f32 %v587_v11, %v2493_v53  ;;  %v608_v20 = vmul.f32 %v607_v17, %v2538_v16  ;;  %v621_v25 = vmul.f32 %v620_v22, %v2538_v16 }
  0xe1   : > { %527 = vrot.lane.b32.xlu0 %v523_v56, %s2257_s7  ;;  %v293_v58 = vpop.permute.xlu1 %292  ;;  %v634_v30 = vmul.f32 %v633_v27, %v2538_v16  ;;  %v647_v35 = vmul.f32 %v646_v32, %v2538_v16  ;;  %v660_v41 = vmul.f32 %v659_v38, %v2538_v16  ;;  %v673_v46 = vmul.f32 %v672_v43, %v2538_v16 }
  0xe2   : > { %v287_v59 = vpop.permute.xlu0 %286  ;;  %295 = vst.msk [vmem:[#allocation3 + $0xe] sm:$0x1] %vm228_vm2, %v293_v58  ;;  %v2596_v48 = vld [vmem:[#allocation3 + $0x2] sm:$0xff]  ;;  %v718_v56 = vstv %s2599_s8  ;;  %s2675_s8 = sld [smem:[#allocation7 + $0x1d]] }
  0xe3   : > { %289 = vst.msk [vmem:[#allocation3 + $0xd] sm:$0x1] %vm228_vm2, %v287_v59  ;;  %v693_v50 = vmul.f32 %v692_v49, %v2596_v48  ;;  %v731_v59 = vstv %s2606_s13  ;;  %s2682_s13 = sld [smem:[#allocation7 + $0x1e]] }
  0xe5   : > { %540 = vrot.lane.b32.xlu0 %v536_v60, %s2258_s9  ;;  %v305_v62 = vpop.permute.xlu1 %304  ;;  %v732_v60 = vmul.f32 %v731_v59, %v2596_v48 }
  0xe6   : > { %v299_v63 = vpop.permute.xlu0 %298  ;;  %307 = vst.msk [vmem:[#allocation3 + $0x10] sm:$0x1] %vm228_vm2, %v305_v62 }
  0xe7   : > { %301 = vst.msk [vmem:[#allocation3 + $0xf] sm:$0x1] %vm228_vm2, %v299_v63  ;;  %v744_v63 = vstv %s2613_s24  ;;  %s2691_s24 = sld [smem:[#allocation7 + $0x1f]] }
  0xe9   : > { %553 = vrot.lane.b32.xlu0 %v549_v0, %s2259_s19  ;;  %v317_v2 = vpop.permute.xlu1 %316  ;;  %v745_v0 = vmul.f32 %v744_v63, %v2596_v48 }
  0xea   : > { %v311_v3 = vpop.permute.xlu0 %310  ;;  %319 = vst.msk [vmem:[#allocation3 + $0x12] sm:$0x1] %vm228_vm2, %v317_v2  ;;  %v757_v2 = vstv %s2620_s21  ;;  %s2698_s21 = sld [smem:[#allocation7 + $0x20]] }
  0xeb   : > { %313 = vst.msk [vmem:[#allocation3 + $0x11] sm:$0x1] %vm228_vm2, %v311_v3  ;;  %v758_v3 = vmul.f32 %v757_v2, %v2596_v48 }
  0xed   : > { %566 = vrot.lane.b32.xlu0 %v562_v4, %s2260_s18  ;;  %v330_v8 = vpop.permute.xlu1 %329 }
  0xee   : > { %v2523_v6 = vld [vmem:[#allocation3 + $0x8] sm:$0xff]  ;;  %v323_v7 = vpop.permute.xlu0 %322  ;;  %332 = vst.msk [vmem:[#allocation3 + $0x1c] sm:$0x1] %vm228_vm2, %v330_v8 }
  0xef   : > { %v524_v10 = vmul.f32 %v522_v52, %v2523_v6  ;;  %326 = vst.msk [vmem:[#allocation3 + $0x1b] sm:$0x1] %vm228_vm2, %v323_v7  ;;  %v537_v15 = vmul.f32 %v535_v57, %v2523_v6  ;;  %v550_v21 = vmul.f32 %v548_v61, %v2523_v6  ;;  %v563_v26 = vmul.f32 %v561_v1, %v2523_v6  ;;  %v2576_v37 = vld [vmem:[#allocation3 + $0x9] sm:$0xff] }
  0xf0   : > { %v576_v31 = vmul.f32 %v574_v5, %v2523_v6  ;;  %v589_v36 = vmul.f32 %v587_v11, %v2523_v6  ;;  %v609_v42 = vmul.f32 %v607_v17, %v2576_v37  ;;  %v622_v47 = vmul.f32 %v620_v22, %v2576_v37  ;;  %v2642_v5 = vld [vmem:[#allocation3 + $0x3] sm:$0xff] }
  0xf1   : > { %579 = vrot.lane.b32.xlu0 %v575_v9, %s2261_s22  ;;  %529 = vrot.lane.b32.xlu1 %v524_v10, %s2257_s7  ;;  %v342_v13 = vpop.permute.xlu1 %341  ;;  %v635_v51 = vmul.f32 %v633_v27, %v2576_v37  ;;  %v705_v52 = vstv %s2588_s4  ;;  %v648_v55 = vmul.f32 %v646_v32, %v2576_v37  ;;  %v719_v57 = vmul.f32 %v718_v56, %v2596_v48  ;;  %s2666_s4 = sld [smem:[#allocation7 + $0x1b]]  ;;  %v2688_v27 = vld [vmem:[#allocation3 + $0x4] sm:$0xff] }
  0xf2   : > { %v336_v12 = vpop.permute.xlu0 %335  ;;  %344 = vst.msk [vmem:[#allocation3 + $0x1e] sm:$0x1] %vm228_vm2, %v342_v13  ;;  %v706_v54 = vmul.f32 %v705_v52, %v2596_v48  ;;  %v661_v58 = vmul.f32 %v659_v38, %v2576_v37  ;;  %v674_v61 = vmul.f32 %v672_v43, %v2576_v37  ;;  %v2626_v62 = vld [vmem:[#allocation3 + $0xa] sm:$0xff]  ;;  %v777_v7 = vstv %s2629_s23  ;;  %s2705_s23 = sld [smem:[#allocation7 + $0x21]] }
  0xf3   : > { %338 = vst.msk [vmem:[#allocation3 + $0x1d] sm:$0x1] %vm228_vm2, %v336_v12  ;;  %v694_v1 = vmul.f32 %v692_v49, %v2626_v62  ;;  %v707_v4 = vmul.f32 %v705_v52, %v2626_v62  ;;  %v778_v8 = vmul.f32 %v777_v7, %v2642_v5  ;;  %v720_v9 = vmul.f32 %v718_v56, %v2626_v62 }
  0xf4   : > { %v790_v10 = vstv %s2636_s27  ;;  %v733_v12 = vmul.f32 %v731_v59, %v2626_v62  ;;  %v803_v13 = vstv %s2645_s28  ;;  %v816_v17 = vstv %s2652_s29  ;;  %s2712_s27 = sld [smem:[#allocation7 + $0x22]]  ;;  %s2721_s28 = sld [smem:[#allocation7 + $0x24]] }
  0xf5   : > { %592 = vrot.lane.b32.xlu0 %v588_v14, %s2262_s26  ;;  %542 = vrot.lane.b32.xlu1 %v537_v15, %s2258_s9  ;;  %v354_v19 = vpop.permute.xlu1 %353  ;;  %v791_v11 = vmul.f32 %v790_v10, %v2642_v5  ;;  %v804_v14 = vmul.f32 %v803_v13, %v2642_v5  ;;  %v746_v15 = vmul.f32 %v744_v63, %v2626_v62  ;;  %v901_v38 = vstv %s2698_s21  ;;  %s2728_s29 = sld [smem:[#allocation7 + $0x25]]  ;;  %s2764_s21 = sld [smem:[#allocation7 + $0x29]] }
  0xf6   : > { %v348_v18 = vpop.permute.xlu0 %347  ;;  %356 = vst.msk [vmem:[#allocation3 + $0x20] sm:$0x1] %vm228_vm2, %v354_v19  ;;  %v759_v19 = vmul.f32 %v757_v2, %v2626_v62 }
  0xf7   : > { %350 = vst.msk [vmem:[#allocation3 + $0x1f] sm:$0x1] %vm228_vm2, %v348_v18  ;;  %v817_v18 = vmul.f32 %v816_v17, %v2642_v5 }
  0xf9   : > { %612 = vrot.lane.b32.xlu0 %v608_v20, %s2257_s7  ;;  %555 = vrot.lane.b32.xlu1 %v550_v21, %s2259_s19  ;;  %v366_v24 = vpop.permute.xlu1 %365  ;;  %v2672_v20 = vld [vmem:[#allocation3 + $0xb] sm:$0xff]  ;;  %v829_v21 = vstv %s2659_s30  ;;  %s2730_s30 = sld [smem:[#allocation7]] }
  0xfa   : > { %v360_v23 = vpop.permute.xlu0 %359  ;;  %368 = vst.msk [vmem:[#allocation3 + $0x22] sm:$0x1] %vm228_vm2, %v366_v24  ;;  %v830_v22 = vmul.f32 %v829_v21, %v2642_v5  ;;  %v842_v24 = vstv %s2666_s4  ;;  %s2739_s4 = sld [smem:[#allocation7 + $0x26]] }
  0xfb   : > { %362 = vst.msk [vmem:[#allocation3 + $0x21] sm:$0x1] %vm228_vm2, %v360_v23  ;;  %v779_v23 = vmul.f32 %v777_v7, %v2672_v20  ;;  %v960_v56 = vstv %s2728_s29  ;;  %s2799_s29 = sld [smem:[#allocation7 + $0x2e]] }
  0xfd   : > { %625 = vrot.lane.b32.xlu0 %v621_v25, %s2258_s9  ;;  %568 = vrot.lane.b32.xlu1 %v563_v26, %s2260_s18  ;;  %v378_v29 = vpop.permute.xlu1 %377  ;;  %v843_v25 = vmul.f32 %v842_v24, %v2642_v5  ;;  %v792_v26 = vmul.f32 %v790_v10, %v2672_v20 }
  0xfe   : > { %v372_v28 = vpop.permute.xlu0 %371  ;;  %380 = vst.msk [vmem:[#allocation3 + $0x24] sm:$0x1] %vm228_vm2, %v378_v29 }
  0xff   : > { %374 = vst.msk [vmem:[#allocation3 + $0x23] sm:$0x1] %vm228_vm2, %v372_v28  ;;  %v862_v28 = vstv %s2675_s8  ;;  %s2746_s8 = sld [smem:[#allocation7 + $0x27]] }
 0x100   : > { %v863_v29 = vmul.f32 %v862_v28, %v2688_v27  ;;  %v973_v63 = vstv %s2739_s4  ;;  %s2808_s4 = sld [smem:[#allocation7 + $0xe]] }
 0x101   : > { %638 = vrot.lane.b32.xlu0 %v634_v30, %s2259_s19  ;;  %581 = vrot.lane.b32.xlu1 %v576_v31, %s2261_s22  ;;  %v390_v34 = vpop.permute.xlu1 %389  ;;  %v805_v30 = vmul.f32 %v803_v13, %v2672_v20  ;;  %v875_v31 = vstv %s2682_s13  ;;  %s2755_s13 = sld [smem:[#allocation7 + $0x28]] }
 0x102   : > { %v384_v33 = vpop.permute.xlu0 %383  ;;  %392 = vst.msk [vmem:[#allocation3 + $0x26] sm:$0x1] %vm228_vm2, %v390_v34  ;;  %v876_v32 = vmul.f32 %v875_v31, %v2688_v27  ;;  %v888_v34 = vstv %s2691_s24  ;;  %s2757_s24 = sld [smem:[#allocation7 + $0x7]] }
 0x103   : > { %386 = vst.msk [vmem:[#allocation3 + $0x25] sm:$0x1] %vm228_vm2, %v384_v33  ;;  %v818_v33 = vmul.f32 %v816_v17, %v2672_v20 }
 0x105   : > { %651 = vrot.lane.b32.xlu0 %v647_v35, %s2260_s18  ;;  %594 = vrot.lane.b32.xlu1 %v589_v36, %s2262_s26  ;;  %v402_v40 = vpop.permute.xlu1 %401  ;;  %v889_v35 = vmul.f32 %v888_v34, %v2688_v27  ;;  %v831_v36 = vmul.f32 %v829_v21, %v2672_v20  ;;  %v986_v7 = vstv %s2746_s8  ;;  %s2816_s8 = sld [smem:[#allocation7 + $0x30]] }
 0x106   : > { %v396_v39 = vpop.permute.xlu0 %395  ;;  %404 = vst.msk [vmem:[#allocation3 + $0x28] sm:$0x1] %vm228_vm2, %v402_v40  ;;  %v844_v40 = vmul.f32 %v842_v24, %v2672_v20 }
 0x107   : > { %398 = vst.msk [vmem:[#allocation3 + $0x27] sm:$0x1] %vm228_vm2, %v396_v39  ;;  %v902_v39 = vmul.f32 %v901_v38, %v2688_v27 }
 0x109   : > { %664 = vrot.lane.b32.xlu0 %v660_v41, %s2261_s22  ;;  %614 = vrot.lane.b32.xlu1 %v609_v42, %s2257_s7  ;;  %v414_v45 = vpop.permute.xlu1 %413  ;;  %v2718_v41 = vld [vmem:[#allocation3 + $0xc] sm:$0xff]  ;;  %v914_v42 = vstv %s2705_s23  ;;  %s2773_s23 = sld [smem:[#allocation7 + $0x2b]] }
 0x10a   : > { %v408_v44 = vpop.permute.xlu0 %407  ;;  %416 = vst.msk [vmem:[#allocation3 + $0x2a] sm:$0x1] %vm228_vm2, %v414_v45  ;;  %v915_v43 = vmul.f32 %v914_v42, %v2688_v27  ;;  %v927_v45 = vstv %s2712_s27  ;;  %v877_v49 = vmul.f32 %v875_v31, %v2718_v41  ;;  %s2782_s27 = sld [smem:[#allocation7 + $0x2c]] }
 0x10b   : > { %410 = vst.msk [vmem:[#allocation3 + $0x29] sm:$0x1] %vm228_vm2, %v408_v44  ;;  %v864_v44 = vmul.f32 %v862_v28, %v2718_v41 }
 0x10d   : > { %677 = vrot.lane.b32.xlu0 %v673_v46, %s2262_s26  ;;  %627 = vrot.lane.b32.xlu1 %v622_v47, %s2258_s9  ;;  %v928_v47 = vmul.f32 %v927_v45, %v2688_v27 }
 0x111   : > { %697 = vrot.lane.b32.xlu0 %v693_v50, %s2257_s7  ;;  %640 = vrot.lane.b32.xlu1 %v635_v51, %s2259_s19  ;;  %v2736_v50 = vld [vmem:[#allocation3 + $0x5] sm:$0xff]  ;;  %v947_v51 = vstv %s2721_s28  ;;  %s2792_s28 = sld [smem:[#allocation7 + $0x2d]] }
 0x112   : > { %v961_v59 = vmul.f32 %v960_v56, %v2736_v50  ;;  %v974_v2 = vmul.f32 %v973_v63, %v2736_v50  ;;  %v987_v10 = vmul.f32 %v986_v7, %v2736_v50 }
 0x115   : > { %710 = vrot.lane.b32.xlu0 %v706_v54, %s2258_s9  ;;  %653 = vrot.lane.b32.xlu1 %v648_v55, %s2260_s18  ;;  %v948_v54 = vmul.f32 %v947_v51, %v2736_v50  ;;  %v890_v55 = vmul.f32 %v888_v34, %v2718_v41 }
 0x119   : > { %723 = vrot.lane.b32.xlu0 %v719_v57, %s2259_s19  ;;  %666 = vrot.lane.b32.xlu1 %v661_v58, %s2261_s22  ;;  %v517_v57 = vstv %s2730_s30  ;;  %s2806_s30 = sld [smem:[#allocation7 + $0x2f]] }
 0x11d   : > { %736 = vrot.lane.b32.xlu0 %v732_v60, %s2260_s18  ;;  %679 = vrot.lane.b32.xlu1 %v674_v61, %s2262_s26  ;;  %v903_v60 = vmul.f32 %v901_v38, %v2718_v41  ;;  %v518_v61 = vmul.f32 %v517_v57, %v2493_v53 }
 0x121   : > { %749 = vrot.lane.b32.xlu0 %v745_v0, %s2261_s22  ;;  %699 = vrot.lane.b32.xlu1 %v694_v1, %s2257_s7 }
 0x125   : > { %762 = vrot.lane.b32.xlu0 %v758_v3, %s2262_s26  ;;  %712 = vrot.lane.b32.xlu1 %v707_v4, %s2258_s9  ;;  %v916_v3 = vmul.f32 %v914_v42, %v2718_v41  ;;  %v1045_v42 = vstv %s2782_s27  ;;  %s2857_s27 = sld [smem:[#allocation7 + $0x36]] }
 0x129   : > { %782 = vrot.lane.b32.xlu0 %v778_v8, %s2257_s7  ;;  %725 = vrot.lane.b32.xlu1 %v720_v9, %s2259_s19 }
 0x12d   : > { %795 = vrot.lane.b32.xlu0 %v791_v11, %s2258_s9  ;;  %738 = vrot.lane.b32.xlu1 %v733_v12, %s2260_s18  ;;  %v929_v11 = vmul.f32 %v927_v45, %v2718_v41  ;;  %v2770_v12 = vld [vmem:[#allocation3 + $0xd] sm:$0xff] }
 0x12e   : > { %v962_v31 = vmul.f32 %v960_v56, %v2770_v12 }
 0x131   : > { %808 = vrot.lane.b32.xlu0 %v804_v14, %s2259_s19  ;;  %751 = vrot.lane.b32.xlu1 %v746_v15, %s2261_s22  ;;  %v999_v14 = vstv %s2755_s13  ;;  %v602_v15 = vstv %s2757_s24  ;;  %s2825_s13 = sld [smem:[#allocation7 + $0x32]]  ;;  %s2834_s24 = sld [smem:[#allocation7 + $0x33]] }
 0x132   : > { %v1000_v21 = vmul.f32 %v999_v14, %v2736_v50 }
 0x135   : > { %821 = vrot.lane.b32.xlu0 %v817_v18, %s2260_s18  ;;  %764 = vrot.lane.b32.xlu1 %v759_v19, %s2262_s26 }
 0x139   : > { %834 = vrot.lane.b32.xlu0 %v830_v22, %s2261_s22  ;;  %784 = vrot.lane.b32.xlu1 %v779_v23, %s2257_s7  ;;  %v949_v22 = vmul.f32 %v947_v51, %v2770_v12  ;;  %v603_v23 = vmul.f32 %v602_v15, %v2538_v16  ;;  %v519_v16 = vmul.f32 %v517_v57, %v2523_v6 }
 0x13a   : > { %v1001_v57 = vmul.f32 %v999_v14, %v2770_v12 }
 0x13d   : > { %847 = vrot.lane.b32.xlu0 %v843_v25, %s2262_s26  ;;  %797 = vrot.lane.b32.xlu1 %v792_v26, %s2258_s9  ;;  %v1012_v25 = vstv %s2764_s21  ;;  %s2843_s21 = sld [smem:[#allocation7 + $0x34]] }
 0x141   : > { %867 = vrot.lane.b32.xlu0 %v863_v29, %s2257_s7  ;;  %810 = vrot.lane.b32.xlu1 %v805_v30, %s2259_s19  ;;  %v1013_v30 = vmul.f32 %v1012_v25, %v2736_v50 }
 0x145   : > { %880 = vrot.lane.b32.xlu0 %v876_v32, %s2258_s9  ;;  %823 = vrot.lane.b32.xlu1 %v818_v33, %s2260_s18  ;;  %v2788_v32 = vld [vmem:[#allocation3 + $0x6] sm:$0xff]  ;;  %v1032_v33 = vstv %s2773_s23  ;;  %s2850_s23 = sld [smem:[#allocation7 + $0x35]] }
 0x146   : > { %v1033_v38 = vmul.f32 %v1032_v33, %v2788_v32  ;;  %v1046_v45 = vmul.f32 %v1045_v42, %v2788_v32 }
 0x149   : > { %893 = vrot.lane.b32.xlu0 %v889_v35, %s2259_s19  ;;  %836 = vrot.lane.b32.xlu1 %v831_v36, %s2261_s22 }
 0x14d   : > { %906 = vrot.lane.b32.xlu0 %v902_v39, %s2260_s18  ;;  %849 = vrot.lane.b32.xlu1 %v844_v40, %s2262_s26  ;;  %v975_v39 = vmul.f32 %v973_v63, %v2770_v12 }
 0x151   : > { %919 = vrot.lane.b32.xlu0 %v915_v43, %s2261_s22  ;;  %869 = vrot.lane.b32.xlu1 %v864_v44, %s2257_s7 }
 0x153   : > { %v528_v46 = vpop.permute.xlu0 %527 }
 0x154   : > { %v533_v0 = vadd.f32 %v528_v46, %v518_v61  ;;  %v988_v46 = vmul.f32 %v986_v7, %v2770_v12  ;;  %v1071_v61 = vstv %s2799_s29  ;;  %s2867_s29 = sld [smem:[#allocation7 + $0x37]] }
 0x155   : > { %932 = vrot.lane.b32.xlu0 %v928_v47, %s2262_s26  ;;  %882 = vrot.lane.b32.xlu1 %v877_v49, %s2258_s9  ;;  %v1058_v49 = vstv %s2792_s28  ;;  %s2859_s28 = sld [smem:[#allocation7 + $0x15]] }
 0x156   : > { %v1059_v56 = vmul.f32 %v1058_v49, %v2788_v32 }
 0x157   : > { %v541_v52 = vpop.permute.xlu0 %540 }
 0x158   : > { %v546_v4 = vadd.f32 %v541_v52, %v533_v0 }
 0x159   : > { %952 = vrot.lane.b32.xlu0 %v948_v54, %s2257_s7  ;;  %895 = vrot.lane.b32.xlu1 %v890_v55, %s2259_s19 }
 0x15b   : > { %v554_v58 = vpop.permute.xlu0 %553 }
 0x15c   : > { %v559_v53 = vadd.f32 %v554_v58, %v546_v4  ;;  %v604_v58 = vmul.f32 %v602_v15, %v2576_v37  ;;  %v1014_v4 = vmul.f32 %v1012_v25, %v2770_v12  ;;  %v2822_v37 = vld [vmem:[#allocation3 + $0xe] sm:$0xff]  ;;  %v2840_v25 = vld [vmem:[#allocation3 + $0x18] sm:$0xff] }
 0x15d   : > { %965 = vrot.lane.b32.xlu0 %v961_v59, %s2258_s9  ;;  %908 = vrot.lane.b32.xlu1 %v903_v60, %s2260_s18 }
 0x15f   : > { %v567_v1 = vpop.permute.xlu0 %566 }
 0x160   : > { %v572_v13 = vadd.f32 %v567_v1, %v559_v53  ;;  %v1084_v53 = vstv %s2806_s30  ;;  %s2876_s30 = sld [smem:[#allocation7 + $0x39]] }
 0x161   : > { %978 = vrot.lane.b32.xlu0 %v974_v2, %s2259_s19  ;;  %921 = vrot.lane.b32.xlu1 %v916_v3, %s2261_s22  ;;  %v1072_v3 = vmul.f32 %v1071_v61, %v2788_v32  ;;  %v1085_v14 = vmul.f32 %v1084_v53, %v2788_v32 }
 0x163   : > { %v530_v8 = vpop.permute.xlu1 %529  ;;  %v580_v9 = vpop.permute.xlu0 %579 }
 0x164   : > { %v585_v17 = vadd.f32 %v580_v9, %v572_v13  ;;  %v534_v34 = vadd.f32 %v530_v8, %v519_v16  ;;  %v687_v8 = vstv %s2808_s4  ;;  %v1034_v13 = vmul.f32 %v1032_v33, %v2822_v37  ;;  %s2885_s4 = sld [smem:[#allocation7 + $0x3a]] }
 0x165   : > { %991 = vrot.lane.b32.xlu0 %v987_v10, %s2260_s18  ;;  %934 = vrot.lane.b32.xlu1 %v929_v11, %s2262_s26  ;;  %v688_v15 = vmul.f32 %v687_v8, %v2596_v48  ;;  %v1130_v33 = vstv %s2834_s24  ;;  %s2908_s24 = sld [smem:[#allocation7 + $0x3d]] }
 0x167   : > { %v543_v18 = vpop.permute.xlu1 %542  ;;  %v593_v19 = vpop.permute.xlu0 %592 }
 0x168   : > { %v598_v24 = vadd.f32 %v593_v19, %v585_v17  ;;  %v547_v40 = vadd.f32 %v543_v18, %v534_v34  ;;  %v1097_v18 = vstv %s2816_s8  ;;  %s2894_s8 = sld [smem:[#allocation7 + $0x3b]] }
 0x169   : > { %1004 = vrot.lane.b32.xlu0 %v1000_v21, %s2261_s22  ;;  %954 = vrot.lane.b32.xlu1 %v949_v22, %s2257_s7 }
 0x16a   : > { %v605_v26 = vadd.f32 %v603_v23, %v598_v24  ;;  %v1047_v23 = vmul.f32 %v1045_v42, %v2822_v37  ;;  %v1098_v24 = vmul.f32 %v1097_v18, %v2788_v32  ;;  %v1143_v42 = vstv %s2843_s21  ;;  %s2910_s21 = sld [smem:[#allocation7 + $0x1c]] }
 0x16b   : > { %v556_v28 = vpop.permute.xlu1 %555  ;;  %v613_v29 = vpop.permute.xlu0 %612 }
 0x16c   : > { %v560_v6 = vadd.f32 %v556_v28, %v547_v40  ;;  %v618_v51 = vadd.f32 %v613_v29, %v605_v26  ;;  %v1117_v26 = vstv %s2825_s13  ;;  %s2901_s13 = sld [smem:[#allocation7 + $0x3c]] }
 0x16d   : > { %1017 = vrot.lane.b32.xlu0 %v1013_v30, %s2262_s26  ;;  %967 = vrot.lane.b32.xlu1 %v962_v31, %s2258_s9  ;;  %v1060_v30 = vmul.f32 %v1058_v49, %v2822_v37  ;;  %v1118_v31 = vmul.f32 %v1117_v26, %v2840_v25  ;;  %v689_v49 = vmul.f32 %v687_v8, %v2626_v62 }
 0x16f   : > { %v569_v35 = vpop.permute.xlu1 %568  ;;  %v626_v36 = vpop.permute.xlu0 %625 }
 0x170   : > { %v573_v47 = vadd.f32 %v569_v35, %v560_v6  ;;  %v631_v59 = vadd.f32 %v626_v36, %v618_v51 }
 0x171   : > { %1037 = vrot.lane.b32.xlu0 %v1033_v38, %s2257_s7  ;;  %980 = vrot.lane.b32.xlu1 %v975_v39, %s2259_s19  ;;  %v1073_v38 = vmul.f32 %v1071_v61, %v2822_v37  ;;  %v1131_v39 = vmul.f32 %v1130_v33, %v2840_v25  ;;  %v1169_v61 = vstv %s2857_s27  ;;  %s2927_s27 = sld [smem:[#allocation7 + $0x40]] }
 0x173   : > { %v582_v43 = vpop.permute.xlu1 %581  ;;  %v639_v44 = vpop.permute.xlu0 %638 }
 0x174   : > { %v586_v52 = vadd.f32 %v582_v43, %v573_v47  ;;  %v644_v63 = vadd.f32 %v639_v44, %v631_v59  ;;  %v1144_v47 = vmul.f32 %v1143_v42, %v2840_v25  ;;  %v1099_v59 = vmul.f32 %v1097_v18, %v2822_v37 }
 0x175   : > { %1050 = vrot.lane.b32.xlu0 %v1046_v45, %s2258_s9  ;;  %993 = vrot.lane.b32.xlu1 %v988_v46, %s2260_s18  ;;  %v1086_v46 = vmul.f32 %v1084_v53, %v2822_v37  ;;  %v1202_v18 = vstv %s2876_s30  ;;  %s2952_s30 = sld [smem:[#allocation7 + $0x43]] }
 0x177   : > { %v595_v54 = vpop.permute.xlu1 %594  ;;  %v652_v55 = vpop.permute.xlu0 %651 }
 0x178   : > { %v599_v60 = vadd.f32 %v595_v54, %v586_v52  ;;  %v657_v7 = vadd.f32 %v652_v55, %v644_v63  ;;  %v1156_v54 = vstv %s2850_s23  ;;  %v2874_v63 = vld [vmem:[#allocation3 + $0x20] sm:$0xff]  ;;  %s2918_s23 = sld [smem:[#allocation7 + $0x3e]] }
 0x179   : > { %1063 = vrot.lane.b32.xlu0 %v1059_v56, %s2259_s19  ;;  %1006 = vrot.lane.b32.xlu1 %v1001_v57, %s2261_s22 }
 0x17a   : > { %v606_v0 = vadd.f32 %v604_v58, %v599_v60  ;;  %v1157_v60 = vmul.f32 %v1156_v54, %v2840_v25 }
 0x17b   : > { %v615_v1 = vpop.permute.xlu1 %614  ;;  %v665_v2 = vpop.permute.xlu0 %664 }
 0x17c   : > { %v670_v9 = vadd.f32 %v665_v2, %v657_v7  ;;  %v619_v48 = vadd.f32 %v615_v1, %v606_v0  ;;  %v772_v0 = vstv %s2859_s28  ;;  %v1119_v7 = vmul.f32 %v1117_v26, %v2874_v63  ;;  %s2936_s28 = sld [smem:[#allocation7 + $0x41]] }
 0x17d   : > { %1076 = vrot.lane.b32.xlu0 %v1072_v3, %s2260_s18  ;;  %1019 = vrot.lane.b32.xlu1 %v1014_v4, %s2262_s26  ;;  %v1170_v4 = vmul.f32 %v1169_v61, %v2840_v25  ;;  %v773_v53 = vmul.f32 %v772_v0, %v2642_v5  ;;  %v1215_v26 = vstv %s2885_s4  ;;  %s2959_s4 = sld [smem:[#allocation7 + $0x44]] }
 0x17f   : > { %v628_v10 = vpop.permute.xlu1 %627  ;;  %v678_v11 = vpop.permute.xlu0 %677 }
 0x180   : > { %v683_v17 = vadd.f32 %v678_v11, %v670_v9  ;;  %v632_v16 = vadd.f32 %v628_v10, %v619_v48  ;;  %v1182_v9 = vstv %s2867_s29  ;;  %s2945_s29 = sld [smem:[#allocation7 + $0x42]] }
 0x181   : > { %1039 = vrot.lane.b32.xlu1 %v1034_v13, %s2257_s7  ;;  %1089 = vrot.lane.b32.xlu0 %v1085_v14, %s2261_s22  ;;  %v1132_v14 = vmul.f32 %v1130_v33, %v2874_v63  ;;  %v1228_v33 = vstv %s2894_s8  ;;  %s2961_s8 = sld [smem:[#allocation7 + $0x23]] }
 0x182   : > { %v690_v19 = vadd.f32 %v688_v15, %v683_v17  ;;  %v1183_v15 = vmul.f32 %v1182_v9, %v2840_v25  ;;  %v2891_v17 = vld [vmem:[#allocation3 + $0x19] sm:$0xff] }
 0x183   : > { %v641_v21 = vpop.permute.xlu1 %640  ;;  %v698_v22 = vpop.permute.xlu0 %697 }
 0x184   : > { %v645_v34 = vadd.f32 %v641_v21, %v632_v16  ;;  %v703_v6 = vadd.f32 %v698_v22, %v690_v19  ;;  %v1145_v22 = vmul.f32 %v1143_v42, %v2874_v63  ;;  %v774_v42 = vmul.f32 %v772_v0, %v2672_v20 }
 0x185   : > { %1052 = vrot.lane.b32.xlu1 %v1047_v23, %s2258_s9  ;;  %1102 = vrot.lane.b32.xlu0 %v1098_v24, %s2262_s26  ;;  %v1203_v23 = vmul.f32 %v1202_v18, %v2891_v17 }
 0x187   : > { %v654_v28 = vpop.permute.xlu1 %653  ;;  %v711_v29 = vpop.permute.xlu0 %710 }
 0x188   : > { %v658_v40 = vadd.f32 %v654_v28, %v645_v34  ;;  %v716_v51 = vadd.f32 %v711_v29, %v703_v6 }
 0x189   : > { %1065 = vrot.lane.b32.xlu1 %v1060_v30, %s2259_s19  ;;  %1122 = vrot.lane.b32.xlu0 %v1118_v31, %s2257_s7  ;;  %v1158_v30 = vmul.f32 %v1156_v54, %v2874_v63  ;;  %v1216_v31 = vmul.f32 %v1215_v26, %v2891_v17  ;;  %v2924_v54 = vld [vmem:[#allocation3 + $0x21] sm:$0xff] }
 0x18b   : > { %v667_v35 = vpop.permute.xlu1 %666  ;;  %v724_v36 = vpop.permute.xlu0 %723 }
 0x18c   : > { %v671_v43 = vadd.f32 %v667_v35, %v658_v40  ;;  %v729_v55 = vadd.f32 %v724_v36, %v716_v51  ;;  %v1229_v40 = vmul.f32 %v1228_v33, %v2891_v17  ;;  %v1184_v51 = vmul.f32 %v1182_v9, %v2874_v63 }
 0x18d   : > { %1078 = vrot.lane.b32.xlu1 %v1073_v38, %s2260_s18  ;;  %1135 = vrot.lane.b32.xlu0 %v1131_v39, %s2258_s9  ;;  %v1171_v39 = vmul.f32 %v1169_v61, %v2874_v63  ;;  %v1287_v9 = vstv %s2927_s27  ;;  %s3003_s27 = sld [smem:[#allocation7 + $0x4a]] }
 0x18f   : > { %v680_v44 = vpop.permute.xlu1 %679  ;;  %v737_v45 = vpop.permute.xlu0 %736 }
 0x190   : > { %v684_v52 = vadd.f32 %v680_v44, %v671_v43  ;;  %v742_v62 = vadd.f32 %v737_v45, %v729_v55  ;;  %v1241_v44 = vstv %s2901_s13  ;;  %v1254_v55 = vstv %s2908_s24  ;;  %s2969_s13 = sld [smem:[#allocation7 + $0x45]]  ;;  %s2978_s24 = sld [smem:[#allocation7 + $0x47]] }
 0x191   : > { %1091 = vrot.lane.b32.xlu1 %v1086_v46, %s2261_s22  ;;  %1148 = vrot.lane.b32.xlu0 %v1144_v47, %s2259_s19 }
 0x192   : > { %v691_v56 = vadd.f32 %v689_v49, %v684_v52  ;;  %v1242_v52 = vmul.f32 %v1241_v44, %v2891_v17 }
 0x193   : > { %v700_v57 = vpop.permute.xlu1 %699  ;;  %v750_v58 = vpop.permute.xlu0 %749 }
 0x194   : > { %v755_v1 = vadd.f32 %v750_v58, %v742_v62  ;;  %v704_v5 = vadd.f32 %v700_v57, %v691_v56  ;;  %v857_v56 = vstv %s2910_s21  ;;  %v1255_v62 = vmul.f32 %v1254_v55, %v2891_v17  ;;  %s2987_s21 = sld [smem:[#allocation7 + $0x48]] }
 0x195   : > { %1104 = vrot.lane.b32.xlu1 %v1099_v59, %s2262_s26  ;;  %1161 = vrot.lane.b32.xlu0 %v1157_v60, %s2260_s18  ;;  %v1204_v60 = vmul.f32 %v1202_v18, %v2924_v54  ;;  %v858_v61 = vmul.f32 %v857_v56, %v2688_v27  ;;  %v1300_v18 = vstv %s2936_s28  ;;  %s3010_s28 = sld [smem:[#allocation7 + $0x4b]] }
 0x197   : > { %v713_v2 = vpop.permute.xlu1 %712  ;;  %v763_v3 = vpop.permute.xlu0 %762 }
 0x198   : > { %v768_v8 = vadd.f32 %v763_v3, %v755_v1  ;;  %v717_v24 = vadd.f32 %v713_v2, %v704_v5  ;;  %v1267_v1 = vstv %s2918_s23  ;;  %s2996_s23 = sld [smem:[#allocation7 + $0x49]] }
 0x199   : > { %1174 = vrot.lane.b32.xlu0 %v1170_v4, %s2261_s22  ;;  %1124 = vrot.lane.b32.xlu1 %v1119_v7, %s2257_s7  ;;  %v1217_v7 = vmul.f32 %v1215_v26, %v2924_v54  ;;  %v1313_v26 = vstv %s2945_s29  ;;  %s3012_s29 = sld [smem:[#allocation7 + $0x2a]] }
 0x19a   : > { %v775_v10 = vadd.f32 %v773_v53, %v768_v8  ;;  %v1268_v53 = vmul.f32 %v1267_v1, %v2891_v17  ;;  %v2942_v8 = vld [vmem:[#allocation3 + $0x1a] sm:$0xff] }
 0x19b   : > { %v726_v11 = vpop.permute.xlu1 %725  ;;  %v783_v13 = vpop.permute.xlu0 %782 }
 0x19c   : > { %v730_v48 = vadd.f32 %v726_v11, %v717_v24  ;;  %v788_v34 = vadd.f32 %v783_v13, %v775_v10  ;;  %v1230_v13 = vmul.f32 %v1228_v33, %v2924_v54  ;;  %v859_v33 = vmul.f32 %v857_v56, %v2718_v41 }
 0x19d   : > { %1137 = vrot.lane.b32.xlu1 %v1132_v14, %s2258_s9  ;;  %1187 = vrot.lane.b32.xlu0 %v1183_v15, %s2262_s26  ;;  %v1288_v14 = vmul.f32 %v1287_v9, %v2942_v8 }
 0x19f   : > { %v739_v19 = vpop.permute.xlu1 %738  ;;  %v796_v21 = vpop.permute.xlu0 %795 }
 0x1a0   : > { %v743_v16 = vadd.f32 %v739_v19, %v730_v48  ;;  %v801_v6 = vadd.f32 %v796_v21, %v788_v34 }
 0x1a1   : > { %1150 = vrot.lane.b32.xlu1 %v1145_v22, %s2259_s19  ;;  %1207 = vrot.lane.b32.xlu0 %v1203_v23, %s2257_s7  ;;  %v1243_v22 = vmul.f32 %v1241_v44, %v2924_v54  ;;  %v1301_v23 = vmul.f32 %v1300_v18, %v2942_v8  ;;  %v2975_v44 = vld [vmem:[#allocation3 + $0x22] sm:$0xff] }
 0x1a3   : > { %v752_v28 = vpop.permute.xlu1 %751  ;;  %v809_v29 = vpop.permute.xlu0 %808 }
 0x1a4   : > { %v756_v35 = vadd.f32 %v752_v28, %v743_v16  ;;  %v814_v45 = vadd.f32 %v809_v29, %v801_v6  ;;  %v1314_v16 = vmul.f32 %v1313_v26, %v2942_v8  ;;  %v1269_v6 = vmul.f32 %v1267_v1, %v2924_v54 }
 0x1a5   : > { %1163 = vrot.lane.b32.xlu1 %v1158_v30, %s2260_s18  ;;  %1220 = vrot.lane.b32.xlu0 %v1216_v31, %s2258_s9  ;;  %v1256_v31 = vmul.f32 %v1254_v55, %v2924_v54  ;;  %v1372_v1 = vstv %s2978_s24  ;;  %s3054_s24 = sld [smem:[#allocation7 + $0x51]] }
 0x1a7   : > { %v765_v36 = vpop.permute.xlu1 %764  ;;  %v822_v38 = vpop.permute.xlu0 %821 }
 0x1a8   : > { %v769_v43 = vadd.f32 %v765_v36, %v756_v35  ;;  %v827_v20 = vadd.f32 %v822_v38, %v814_v45  ;;  %v1326_v36 = vstv %s2952_s30  ;;  %v1339_v45 = vstv %s2959_s4  ;;  %s3020_s30 = sld [smem:[#allocation7 + $0x4c]]  ;;  %s3029_s4 = sld [smem:[#allocation7 + $0x4e]] }
 0x1a9   : > { %1176 = vrot.lane.b32.xlu1 %v1171_v39, %s2261_s22  ;;  %1233 = vrot.lane.b32.xlu0 %v1229_v40, %s2259_s19 }
 0x1aa   : > { %v776_v46 = vadd.f32 %v774_v42, %v769_v43  ;;  %v1327_v43 = vmul.f32 %v1326_v36, %v2942_v8 }
 0x1ab   : > { %v785_v47 = vpop.permute.xlu1 %784  ;;  %v835_v49 = vpop.permute.xlu0 %834 }
 0x1ac   : > { %v840_v57 = vadd.f32 %v835_v49, %v827_v20  ;;  %v789_v27 = vadd.f32 %v785_v47, %v776_v46  ;;  %v942_v46 = vstv %s2961_s8  ;;  %v1340_v20 = vmul.f32 %v1339_v45, %v2942_v8  ;;  %s3038_s8 = sld [smem:[#allocation7 + $0x4f]] }
 0x1ad   : > { %1189 = vrot.lane.b32.xlu1 %v1184_v51, %s2262_s26  ;;  %1246 = vrot.lane.b32.xlu0 %v1242_v52, %s2260_s18  ;;  %v1289_v52 = vmul.f32 %v1287_v9, %v2975_v44  ;;  %v943_v55 = vmul.f32 %v942_v46, %v2736_v50  ;;  %v1385_v9 = vstv %s2987_s21  ;;  %s3061_s21 = sld [smem:[#allocation7 + $0x52]] }
 0x1af   : > { %v798_v58 = vpop.permute.xlu1 %797  ;;  %v848_v59 = vpop.permute.xlu0 %847 }
 0x1b0   : > { %v853_v0 = vadd.f32 %v848_v59, %v840_v57  ;;  %v802_v15 = vadd.f32 %v798_v58, %v789_v27  ;;  %v1352_v57 = vstv %s2969_s13  ;;  %s3047_s13 = sld [smem:[#allocation7 + $0x50]] }
 0x1b1   : > { %1209 = vrot.lane.b32.xlu1 %v1204_v60, %s2257_s7  ;;  %1259 = vrot.lane.b32.xlu0 %v1255_v62, %s2261_s22  ;;  %v1302_v62 = vmul.f32 %v1300_v18, %v2975_v44  ;;  %v1398_v18 = vstv %s2996_s23  ;;  %s3065_s23 = sld [smem:[#allocation7 + $0x31]] }
 0x1b2   : > { %v860_v2 = vadd.f32 %v858_v61, %v853_v0  ;;  %v1353_v61 = vmul.f32 %v1352_v57, %v2942_v8  ;;  %v2993_v0 = vld [vmem:[#allocation3 + $0x1b] sm:$0xff] }
 0x1b3   : > { %v811_v3 = vpop.permute.xlu1 %810  ;;  %v868_v4 = vpop.permute.xlu0 %867 }
 0x1b4   : > { %v815_v5 = vadd.f32 %v811_v3, %v802_v15  ;;  %v873_v48 = vadd.f32 %v868_v4, %v860_v2  ;;  %v1315_v4 = vmul.f32 %v1313_v26, %v2975_v44  ;;  %v944_v26 = vmul.f32 %v942_v46, %v2770_v12 }
 0x1b5   : > { %1222 = vrot.lane.b32.xlu1 %v1217_v7, %s2258_s9  ;;  %1272 = vrot.lane.b32.xlu0 %v1268_v53, %s2262_s26  ;;  %v1373_v7 = vmul.f32 %v1372_v1, %v2993_v0 }
 0x1b7   : > { %v824_v10 = vpop.permute.xlu1 %823  ;;  %v881_v11 = vpop.permute.xlu0 %880 }
 0x1b8   : > { %v828_v24 = vadd.f32 %v824_v10, %v815_v5  ;;  %v886_v34 = vadd.f32 %v881_v11, %v873_v48 }
 0x1b9   : > { %1235 = vrot.lane.b32.xlu1 %v1230_v13, %s2259_s19  ;;  %1292 = vrot.lane.b32.xlu0 %v1288_v14, %s2257_s7  ;;  %v1328_v13 = vmul.f32 %v1326_v36, %v2975_v44  ;;  %v1386_v14 = vmul.f32 %v1385_v9, %v2993_v0  ;;  %v3026_v36 = vld [vmem:[#allocation3 + $0x23] sm:$0xff] }
 0x1bb   : > { %v837_v19 = vpop.permute.xlu1 %836  ;;  %v894_v21 = vpop.permute.xlu0 %893 }
 0x1bc   : > { %v841_v28 = vadd.f32 %v837_v19, %v828_v24  ;;  %v899_v38 = vadd.f32 %v894_v21, %v886_v34  ;;  %v1399_v24 = vmul.f32 %v1398_v18, %v2993_v0  ;;  %v1354_v34 = vmul.f32 %v1352_v57, %v2975_v44 }
 0x1bd   : > { %1248 = vrot.lane.b32.xlu1 %v1243_v22, %s2260_s18  ;;  %1305 = vrot.lane.b32.xlu0 %v1301_v23, %s2258_s9  ;;  %v1341_v23 = vmul.f32 %v1339_v45, %v2975_v44  ;;  %v1457_v57 = vstv %s3029_s4  ;;  %s3105_s4 = sld [smem:[#allocation7 + $0x58]] }
 0x1bf   : > { %v850_v29 = vpop.permute.xlu1 %849  ;;  %v907_v30 = vpop.permute.xlu0 %906 }
 0x1c0   : > { %v854_v35 = vadd.f32 %v850_v29, %v841_v28  ;;  %v912_v41 = vadd.f32 %v907_v30, %v899_v38  ;;  %v1411_v29 = vstv %s3003_s27  ;;  %v1424_v38 = vstv %s3010_s28  ;;  %s3071_s27 = sld [smem:[#allocation7 + $0x53]]  ;;  %s3080_s28 = sld [smem:[#allocation7 + $0x55]] }
 0x1c1   : > { %1261 = vrot.lane.b32.xlu1 %v1256_v31, %s2261_s22  ;;  %1318 = vrot.lane.b32.xlu0 %v1314_v16, %s2259_s19 }
 0x1c2   : > { %v861_v39 = vadd.f32 %v859_v33, %v854_v35  ;;  %v1412_v35 = vmul.f32 %v1411_v29, %v2993_v0 }
 0x1c3   : > { %v870_v40 = vpop.permute.xlu1 %869  ;;  %v920_v42 = vpop.permute.xlu0 %919 }
 0x1c4   : > { %v925_v47 = vadd.f32 %v920_v42, %v912_v41  ;;  %v874_v50 = vadd.f32 %v870_v40, %v861_v39  ;;  %v1027_v39 = vstv %s3012_s29  ;;  %v1425_v41 = vmul.f32 %v1424_v38, %v2993_v0  ;;  %s3089_s29 = sld [smem:[#allocation7 + $0x56]] }
 0x1c5   : > { %1274 = vrot.lane.b32.xlu1 %v1269_v6, %s2262_s26  ;;  %1331 = vrot.lane.b32.xlu0 %v1327_v43, %s2260_s18  ;;  %v1374_v43 = vmul.f32 %v1372_v1, %v3026_v36  ;;  %v1028_v45 = vmul.f32 %v1027_v39, %v2788_v32  ;;  %v1470_v1 = vstv %s3038_s8  ;;  %s3112_s8 = sld [smem:[#allocation7 + $0x59]] }
 0x1c7   : > { %v883_v49 = vpop.permute.xlu1 %882  ;;  %v933_v51 = vpop.permute.xlu0 %932 }
 0x1c8   : > { %v938_v56 = vadd.f32 %v933_v51, %v925_v47  ;;  %v887_v53 = vadd.f32 %v883_v49, %v874_v50  ;;  %v1437_v47 = vstv %s3020_s30  ;;  %s3098_s30 = sld [smem:[#allocation7 + $0x57]] }
 0x1c9   : > { %1294 = vrot.lane.b32.xlu1 %v1289_v52, %s2257_s7  ;;  %1344 = vrot.lane.b32.xlu0 %v1340_v20, %s2261_s22  ;;  %v1387_v20 = vmul.f32 %v1385_v9, %v3026_v36  ;;  %v1483_v9 = vstv %s3047_s13  ;;  %s3116_s13 = sld [smem:[#allocation7 + $0x38]] }
 0x1ca   : > { %v945_v58 = vadd.f32 %v943_v55, %v938_v56  ;;  %v1438_v55 = vmul.f32 %v1437_v47, %v2993_v0  ;;  %v3044_v56 = vld [vmem:[#allocation3 + $0x1c] sm:$0xff] }
 0x1cb   : > { %v896_v59 = vpop.permute.xlu1 %895  ;;  %v953_v60 = vpop.permute.xlu0 %952 }
 0x1cc   : > { %v900_v27 = vadd.f32 %v896_v59, %v887_v53  ;;  %v958_v5 = vadd.f32 %v953_v60, %v945_v58  ;;  %v1400_v60 = vmul.f32 %v1398_v18, %v3026_v36  ;;  %v1029_v18 = vmul.f32 %v1027_v39, %v2822_v37 }
 0x1cd   : > { %1307 = vrot.lane.b32.xlu1 %v1302_v62, %s2258_s9  ;;  %1357 = vrot.lane.b32.xlu0 %v1353_v61, %s2262_s26  ;;  %v1458_v62 = vmul.f32 %v1457_v57, %v3044_v56 }
 0x1cf   : > { %v909_v2 = vpop.permute.xlu1 %908  ;;  %v966_v3 = vpop.permute.xlu0 %965 }
 0x1d0   : > { %v913_v15 = vadd.f32 %v909_v2, %v900_v27  ;;  %v971_v48 = vadd.f32 %v966_v3, %v958_v5 }
 0x1d1   : > { %1320 = vrot.lane.b32.xlu1 %v1315_v4, %s2259_s19  ;;  %1377 = vrot.lane.b32.xlu0 %v1373_v7, %s2257_s7  ;;  %v1413_v4 = vmul.f32 %v1411_v29, %v3026_v36  ;;  %v1471_v7 = vmul.f32 %v1470_v1, %v3044_v56  ;;  %v3077_v29 = vld [vmem:[#allocation3 + $0x24] sm:$0xff] }
 0x1d3   : > { %v922_v10 = vpop.permute.xlu1 %921  ;;  %v979_v11 = vpop.permute.xlu0 %978 }
 0x1d4   : > { %v926_v19 = vadd.f32 %v922_v10, %v913_v15  ;;  %v984_v30 = vadd.f32 %v979_v11, %v971_v48  ;;  %v1484_v15 = vmul.f32 %v1483_v9, %v3044_v56  ;;  %v1439_v48 = vmul.f32 %v1437_v47, %v3026_v36  ;;  %v3095_v47 = vld [vmem:[#allocation3 + $0x1d] sm:$0xff] }
 0x1d5   : > { %1333 = vrot.lane.b32.xlu1 %v1328_v13, %s2260_s18  ;;  %1390 = vrot.lane.b32.xlu0 %v1386_v14, %s2258_s9  ;;  %v1426_v14 = vmul.f32 %v1424_v38, %v3026_v36 }
 0x1d7   : > { %v935_v21 = vpop.permute.xlu1 %934  ;;  %v992_v22 = vpop.permute.xlu0 %991 }
 0x1d8   : > { %v939_v28 = vadd.f32 %v935_v21, %v926_v19  ;;  %v997_v12 = vadd.f32 %v992_v22, %v984_v30  ;;  %v1496_v21 = vstv %s3054_s24  ;;  %v1509_v30 = vstv %s3061_s21  ;;  %s3122_s24 = sld [smem:[#allocation7 + $0x5a]]  ;;  %s3131_s21 = sld [smem:[#allocation7 + $0x5c]] }
 0x1d9   : > { %1346 = vrot.lane.b32.xlu1 %v1341_v23, %s2261_s22  ;;  %1403 = vrot.lane.b32.xlu0 %v1399_v24, %s2259_s19 }
 0x1da   : > { %v946_v31 = vadd.f32 %v944_v26, %v939_v28  ;;  %v1497_v28 = vmul.f32 %v1496_v21, %v3044_v56 }
 0x1db   : > { %v955_v16 = vpop.permute.xlu1 %954  ;;  %v1005_v33 = vpop.permute.xlu0 %1004 }
 0x1dc   : > { %v1010_v40 = vadd.f32 %v1005_v33, %v997_v12  ;;  %v959_v32 = vadd.f32 %v955_v16, %v946_v31  ;;  %v1112_v31 = vstv %s3065_s23  ;;  %v1510_v12 = vmul.f32 %v1509_v30, %v3044_v56  ;;  %s3140_s23 = sld [smem:[#allocation7 + $0x5d]] }
 0x1dd   : > { %1359 = vrot.lane.b32.xlu1 %v1354_v34, %s2262_s26  ;;  %1416 = vrot.lane.b32.xlu0 %v1412_v35, %s2260_s18  ;;  %v1459_v35 = vmul.f32 %v1457_v57, %v3077_v29  ;;  %v1113_v38 = vmul.f32 %v1112_v31, %v2840_v25  ;;  %v1542_v25 = vstv %s3080_s28  ;;  %s3156_s28 = sld [smem:[#allocation7 + $0x5f]] }
 0x1df   : > { %v968_v42 = vpop.permute.xlu1 %967  ;;  %v1018_v6 = vpop.permute.xlu0 %1017 }
 0x1e0   : > { %v1023_v46 = vadd.f32 %v1018_v6, %v1010_v40  ;;  %v972_v61 = vadd.f32 %v968_v42, %v959_v32  ;;  %v1522_v40 = vstv %s3071_s27  ;;  %s3149_s27 = sld [smem:[#allocation7 + $0x5e]] }
 0x1e1   : > { %1379 = vrot.lane.b32.xlu1 %v1374_v43, %s2257_s7  ;;  %1429 = vrot.lane.b32.xlu0 %v1425_v41, %s2261_s22  ;;  %v1472_v41 = vmul.f32 %v1470_v1, %v3077_v29 }
 0x1e2   : > { %v1030_v49 = vadd.f32 %v1028_v45, %v1023_v46  ;;  %v1523_v45 = vmul.f32 %v1522_v40, %v3044_v56 }
 0x1e3   : > { %v981_v51 = vpop.permute.xlu1 %980  ;;  %v1038_v52 = vpop.permute.xlu0 %1037 }
 0x1e4   : > { %v985_v50 = vadd.f32 %v981_v51, %v972_v61  ;;  %v1043_v27 = vadd.f32 %v1038_v52, %v1030_v49  ;;  %v1498_v61 = vmul.f32 %v1496_v21, %v3077_v29 }
 0x1e5   : > { %1392 = vrot.lane.b32.xlu1 %v1387_v20, %s2258_s9  ;;  %1442 = vrot.lane.b32.xlu0 %v1438_v55, %s2262_s26  ;;  %v1485_v20 = vmul.f32 %v1483_v9, %v3077_v29  ;;  %v1543_v55 = vmul.f32 %v1542_v25, %v3095_v47  ;;  %v1511_v9 = vmul.f32 %v1509_v30, %v3077_v29 }
 0x1e7   : > { %v994_v58 = vpop.permute.xlu1 %993  ;;  %v1051_v59 = vpop.permute.xlu0 %1050 }
 0x1e8   : > { %v998_v53 = vadd.f32 %v994_v58, %v985_v50  ;;  %v1056_v5 = vadd.f32 %v1051_v59, %v1043_v27  ;;  %v1555_v58 = vstv %s3089_s29  ;;  %s3163_s29 = sld [smem:[#allocation7 + $0x60]] }
 0x1e9   : > { %1405 = vrot.lane.b32.xlu1 %v1400_v60, %s2259_s19  ;;  %1462 = vrot.lane.b32.xlu0 %v1458_v62, %s2257_s7  ;;  %v1556_v1 = vmul.f32 %v1555_v58, %v3095_v47 }
 0x1eb   : > { %v1007_v2 = vpop.permute.xlu1 %1006  ;;  %v1064_v3 = vpop.permute.xlu0 %1063 }
 0x1ec   : > { %v1011_v10 = vadd.f32 %v1007_v2, %v998_v53  ;;  %v1069_v22 = vadd.f32 %v1064_v3, %v1056_v5  ;;  %v1568_v3 = vstv %s3098_s30  ;;  %s3167_s30 = sld [smem:[#allocation7 + $0x3f]] }
 0x1ed   : > { %1418 = vrot.lane.b32.xlu1 %v1413_v4, %s2260_s18  ;;  %1475 = vrot.lane.b32.xlu0 %v1471_v7, %s2258_s9  ;;  %v1569_v27 = vmul.f32 %v1568_v3, %v3095_v47 }
 0x1ef   : > { %v1020_v11 = vpop.permute.xlu1 %1019  ;;  %v1077_v13 = vpop.permute.xlu0 %1076 }
 0x1f0   : > { %v1024_v19 = vadd.f32 %v1020_v11, %v1011_v10  ;;  %v1082_v37 = vadd.f32 %v1077_v13, %v1069_v22  ;;  %v1114_v11 = vmul.f32 %v1112_v31, %v2874_v63  ;;  %v1594_v63 = vstv %s3112_s8  ;;  %s2264_s8 = smov 32  }
 0x1f1   : > { %1431 = vrot.lane.b32.xlu1 %v1426_v14, %s2261_s22  ;;  %1488 = vrot.lane.b32.xlu0 %v1484_v15, %s2259_s19  ;;  %v1581_v14 = vstv %s3105_s4  ;;  %v1595_v30 = vmul.f32 %v1594_v63, %v3095_v47  ;;  %s3173_s4 = sld [smem:[#allocation7 + $0x61]] }
 0x1f2   : > { %v1031_v23 = vadd.f32 %v1029_v18, %v1024_v19  ;;  %v1524_v19 = vmul.f32 %v1522_v40, %v3077_v29  ;;  %v1582_v21 = vmul.f32 %v1581_v14, %v3095_v47 }
 0x1f3   : > { %v1040_v24 = vpop.permute.xlu1 %1039  ;;  %v1090_v26 = vpop.permute.xlu0 %1089 }
 0x1f4   : > { %v1095_v16 = vadd.f32 %v1090_v26, %v1082_v37  ;;  %v1044_v49 = vadd.f32 %v1040_v24, %v1031_v23  ;;  %v3128_v23 = vld [vmem:[#allocation3 + $0x25] sm:$0xff]  ;;  %v1197_v24 = vstv %s3116_s13  ;;  %s2265_s13 = smov 48  }
 0x1f5   : > { %1444 = vrot.lane.b32.xlu1 %v1439_v48, %s2262_s26  ;;  %1501 = vrot.lane.b32.xlu0 %v1497_v28, %s2260_s18  ;;  %v1544_v37 = vmul.f32 %v1542_v25, %v3128_v23 }
 0x1f7   : > { %v1053_v33 = vpop.permute.xlu1 %1052  ;;  %v1103_v34 = vpop.permute.xlu0 %1102 }
 0x1f8   : > { %v1108_v39 = vadd.f32 %v1103_v34, %v1095_v16  ;;  %v1057_v57 = vadd.f32 %v1053_v33, %v1044_v49  ;;  %v1198_v16 = vmul.f32 %v1197_v24, %v2891_v17  ;;  %v1607_v34 = vstv %s3122_s24  ;;  %s2266_s24 = smov 64  }
 0x1f9   : > { %1464 = vrot.lane.b32.xlu1 %v1459_v35, %s2257_s7  ;;  %1514 = vrot.lane.b32.xlu0 %v1510_v12, %s2261_s22  ;;  %v1608_v40 = vmul.f32 %v1607_v34, %v3095_v47  ;;  %v1627_v17 = vstv %s3131_s21  ;;  %v1640_v49 = vstv %s3140_s23  ;;  %s2267_s21 = smov 80   ;;  %s2268_s23 = smov 96  }
 0x1fa   : > { %v1115_v42 = vadd.f32 %v1113_v38, %v1108_v39  ;;  %v1557_v39 = vmul.f32 %v1555_v58, %v3128_v23 }
 0x1fb   : > { %v1066_v6 = vpop.permute.xlu1 %1065  ;;  %v1123_v43 = vpop.permute.xlu0 %1122 }
 0x1fc   : > { %v1128_v46 = vadd.f32 %v1123_v43, %v1115_v42  ;;  %v1070_v59 = vadd.f32 %v1066_v6, %v1057_v57  ;;  %v3146_v6 = vld [vmem:[#allocation3 + $0x1e] sm:$0xff]  ;;  %v1653_v57 = vstv %s3149_s27  ;;  %s2269_s27 = smov 112  }
 0x1fd   : > { %1477 = vrot.lane.b32.xlu1 %v1472_v41, %s2258_s9  ;;  %1527 = vrot.lane.b32.xlu0 %v1523_v45, %s2262_s26  ;;  %v1570_v45 = vmul.f32 %v1568_v3, %v3128_v23  ;;  %v1666_v3 = vstv %s3156_s28  ;;  %s2039_s28 = sshll.u32 %s2315_s1, 7  ;;  %s1834_s1 = scalar_lea.sflag [#allocation9], %s2430_s10 }
 0x1ff   : > { %v1079_v51 = vpop.permute.xlu1 %1078  ;;  %v1136_v52 = vpop.permute.xlu0 %1135 }
 0x200   : > { %v1141_v32 = vadd.f32 %v1136_v52, %v1128_v46  ;;  %v1083_v50 = vadd.f32 %v1079_v51, %v1070_v59  ;;  %v1628_v46 = vmul.f32 %v1627_v17, %v3146_v6 }
 0x201   : > { %1490 = vrot.lane.b32.xlu1 %v1485_v20, %s2259_s19  ;;  %1547 = vrot.lane.b32.xlu0 %v1543_v55, %s2257_s7  ;;  %v1583_v20 = vmul.f32 %v1581_v14, %v3128_v23  ;;  %v1641_v55 = vmul.f32 %v1640_v49, %v3146_v6  ;;  %v1282_v14 = vstv %s3167_s30 }
 0x203   : > { %v1092_v60 = vpop.permute.xlu1 %1091  ;;  %v1149_v62 = vpop.permute.xlu0 %1148 }
 0x204   : > { %v1154_v2 = vadd.f32 %v1149_v62, %v1141_v32  ;;  %v1096_v4 = vadd.f32 %v1092_v60, %v1083_v50  ;;  %v1596_v62 = vmul.f32 %v1594_v63, %v3128_v23  ;;  %v1199_v50 = vmul.f32 %v1197_v24, %v2924_v54  ;;  %v3179_v54 = vld [vmem:[#allocation3 + $0x26] sm:$0xff] }
 0x205   : > { %1503 = vrot.lane.b32.xlu1 %v1498_v61, %s2260_s18  ;;  %1560 = vrot.lane.b32.xlu0 %v1556_v1, %s2258_s9  ;;  %v1654_v61 = vmul.f32 %v1653_v57, %v3146_v6  ;;  %v1692_v24 = vstv %s3173_s4 }
 0x207   : > { %v1105_v7 = vpop.permute.xlu1 %1104  ;;  %v1162_v53 = vpop.permute.xlu0 %1161 }
 0x208   : > { %v1109_v10 = vadd.f32 %v1105_v7, %v1096_v4  ;;  %v1167_v13 = vadd.f32 %v1162_v53, %v1154_v2 }
 0x209   : > { %1516 = vrot.lane.b32.xlu1 %v1511_v9, %s2261_s22  ;;  %1573 = vrot.lane.b32.xlu0 %v1569_v27, %s2259_s19  ;;  %v1609_v27 = vmul.f32 %v1607_v34, %v3128_v23 }
 0x20a   : > { %v1116_v15 = vadd.f32 %v1114_v11, %v1109_v10  ;;  %v1667_v10 = vmul.f32 %v1666_v3, %v3146_v6 }
 0x20b   : > { %v1125_v18 = vpop.permute.xlu1 %1124  ;;  %v1175_v5 = vpop.permute.xlu0 %1174 }
 0x20c   : > { %v1129_v22 = vadd.f32 %v1125_v18, %v1116_v15  ;;  %v1180_v26 = vadd.f32 %v1175_v5, %v1167_v13  ;;  %v1679_v13 = vstv %s3163_s29  ;;  %s200_s29 = scalar_lea.vmem [#allocation12], %s1937_s11 }
 0x20d   : > { %1529 = vrot.lane.b32.xlu1 %v1524_v19, %s2262_s26  ;;  %1586 = vrot.lane.b32.xlu0 %v1582_v21, %s2260_s18  ;;  %v1629_v19 = vmul.f32 %v1627_v17, %v3179_v54  ;;  %v1680_v21 = vmul.f32 %v1679_v13, %v3146_v6  ;;  %s1847_s30 = sshll.u32 %s200_s29, 4  ;;  %s3248_s30 = int_to_ptr.vmem [resolvable:$true] %s1847_s30 }
 0x20e   : > { %s2174_s11 = scalar_lea.vmem %s3248_s30, 128 }
 0x20f   : > { %v1138_v48 = vpop.permute.xlu1 %1137  ;;  %v1188_v28 = vpop.permute.xlu0 %1187  ;;  %p2175_p8 = scmp.ne.s32.totalorder %s3248_s30, %s2174_s11 }
 0x210   : > { %v1142_v31 = vadd.f32 %v1138_v48, %v1129_v22  ;;  %v1193_v33 = vadd.f32 %v1188_v28, %v1180_v26  ;;  %v1283_v22 = vmul.f32 %v1282_v14, %v2942_v8 }
 0x211   : > { %1549 = vrot.lane.b32.xlu1 %v1544_v37, %s2257_s7  ;;  %1599 = vrot.lane.b32.xlu0 %v1595_v30, %s2261_s22  ;;  %v1642_v37 = vmul.f32 %v1640_v49, %v3179_v54  ;;  %v1693_v30 = vmul.f32 %v1692_v24, %v3146_v6  ;;  %v1284_v49 = vmul.f32 %v1282_v14, %v2975_v44  ;;  %p2176_p11 = pnand %p2175_p8, %p3308_p9 }
 0x212   : > { %v1200_v35 = vadd.f32 %v1198_v16, %v1193_v33  ;;  %v1655_v33 = vmul.f32 %v1653_v57, %v3179_v54  ;;  %v1694_v57 = vmul.f32 %v1692_v24, %v3179_v54 }
 0x213   : > { %v1151_v12 = vpop.permute.xlu1 %1150  ;;  %v1208_v38 = vpop.permute.xlu0 %1207  ;;  %p2177_p7 = pneg %p2176_p11 }
 0x214   : > { %v1155_v42 = vadd.f32 %v1151_v12, %v1142_v31  ;;  %v1213_v32 = vadd.f32 %v1208_v38, %v1200_v35 }
 0x215   : > { %1562 = vrot.lane.b32.xlu1 %v1557_v39, %s2258_s9  ;;  %1612 = vrot.lane.b32.xlu0 %v1608_v40, %s2262_s26  ;;  %v1668_v39 = vmul.f32 %v1666_v3, %v3179_v54 }
 0x217   : > { %v1164_v43 = vpop.permute.xlu1 %1163  ;;  %v1221_v41 = vpop.permute.xlu0 %1220 }
 0x218   : > { %v1168_v25 = vadd.f32 %v1164_v43, %v1155_v42  ;;  %v1226_v1 = vadd.f32 %v1221_v41, %v1213_v32 }
 0x219   : > { %1575 = vrot.lane.b32.xlu1 %v1570_v45, %s2259_s19  ;;  %1632 = vrot.lane.b32.xlu0 %v1628_v46, %s2257_s7  ;;  %v1681_v45 = vmul.f32 %v1679_v13, %v3179_v54 }
 0x21b   : > { %v1177_v51 = vpop.permute.xlu1 %1176  ;;  %v1234_v52 = vpop.permute.xlu0 %1233 }
 0x21c   : > { %v1181_v58 = vadd.f32 %v1177_v51, %v1168_v25  ;;  %v1239_v4 = vadd.f32 %v1234_v52, %v1226_v1 }
 0x21d   : > { %1588 = vrot.lane.b32.xlu1 %v1583_v20, %s2260_s18  ;;  %1645 = vrot.lane.b32.xlu0 %v1641_v55, %s2258_s9 }
 0x21f   : > { %v1190_v59 = vpop.permute.xlu1 %1189  ;;  %v1247_v60 = vpop.permute.xlu0 %1246 }
 0x220   : > { %v1194_v2 = vadd.f32 %v1190_v59, %v1181_v58  ;;  %v1252_v11 = vadd.f32 %v1247_v60, %v1239_v4 }
 0x221   : > { %1601 = vrot.lane.b32.xlu1 %v1596_v62, %s2261_s22  ;;  %1658 = vrot.lane.b32.xlu0 %v1654_v61, %s2259_s19 }
 0x222   : > { %v1201_v7 = vadd.f32 %v1199_v50, %v1194_v2 }
 0x223   : > { %v1210_v53 = vpop.permute.xlu1 %1209  ;;  %v1260_v9 = vpop.permute.xlu0 %1259 }
 0x224   : > { %v1265_v15 = vadd.f32 %v1260_v9, %v1252_v11  ;;  %v1214_v31 = vadd.f32 %v1210_v53, %v1201_v7 }
 0x225   : > { %1614 = vrot.lane.b32.xlu1 %v1609_v27, %s2262_s26  ;;  %1671 = vrot.lane.b32.xlu0 %v1667_v10, %s2260_s18 }
 0x227   : > { %v1223_v18 = vpop.permute.xlu1 %1222  ;;  %v1273_v5 = vpop.permute.xlu0 %1272 }
 0x228   : > { %v1278_v63 = vadd.f32 %v1273_v5, %v1265_v15  ;;  %v1227_v34 = vadd.f32 %v1223_v18, %v1214_v31 }
 0x229   : > { %1634 = vrot.lane.b32.xlu1 %v1629_v19, %s2257_s7  ;;  %1684 = vrot.lane.b32.xlu0 %v1680_v21, %s2261_s22  ;;  %s3199_s7 = sld [smem:[#allocation7 + $0x46]] }
 0x22a   : > { %v1285_v26 = vadd.f32 %v1283_v22, %v1278_v63 }
 0x22b   : > { %v1236_v48 = vpop.permute.xlu1 %1235  ;;  %v1293_v28 = vpop.permute.xlu0 %1292 }
 0x22c   : > { %v1240_v35 = vadd.f32 %v1236_v48, %v1227_v34  ;;  %v1298_v42 = vadd.f32 %v1293_v28, %v1285_v26 }
 0x22d   : > { %1647 = vrot.lane.b32.xlu1 %v1642_v37, %s2258_s9  ;;  %1697 = vrot.lane.b32.xlu0 %v1693_v30, %s2262_s26  ;;  %s3208_s9 = sld [smem:[#allocation7 + $0x4d]] }
 0x22f   : > { %v1249_v16 = vpop.permute.xlu1 %1248  ;;  %v1306_v8 = vpop.permute.xlu0 %1305  ;;  %v1367_v58 = vstv %s3199_s7 }
 0x230   : > { %v1253_v40 = vadd.f32 %v1249_v16, %v1240_v35  ;;  %v1311_v46 = vadd.f32 %v1306_v8, %v1298_v42  ;;  %v1368_v1 = vmul.f32 %v1367_v58, %v2993_v0  ;;  %v1369_v19 = vmul.f32 %v1367_v58, %v3026_v36 }
 0x231   : > { %1660 = vrot.lane.b32.xlu1 %v1655_v33, %s2259_s19  ;;  %s3213_s19 = sld [smem:[#allocation7 + $0x54]] }
 0x233   : > { %v1262_v12 = vpop.permute.xlu1 %1261  ;;  %v1319_v38 = vpop.permute.xlu0 %1318  ;;  %v1452_v48 = vstv %s3208_s9  ;;  %s3246_s9 = scalar_lea.hbm %s3293_s3, %s2039_s28 }
 0x234   : > { %v1266_v17 = vadd.f32 %v1262_v12, %v1253_v40  ;;  %v1324_v51 = vadd.f32 %v1319_v38, %v1311_v46  ;;  %v1453_v16 = vmul.f32 %v1452_v48, %v3044_v56 }
 0x235   : > { %1673 = vrot.lane.b32.xlu1 %v1668_v39, %s2260_s18  ;;  %s3218_s18 = sld [smem:[#allocation7 + $0x5b]] }
 0x237   : > { %v1275_v43 = vpop.permute.xlu1 %1274  ;;  %v1332_v41 = vpop.permute.xlu0 %1331 }
 0x238   : > { %v1279_v25 = vadd.f32 %v1275_v43, %v1266_v17  ;;  %v1337_v32 = vadd.f32 %v1332_v41, %v1324_v51 }
 0x239   : > { %1686 = vrot.lane.b32.xlu1 %v1681_v45, %s2261_s22  ;;  %s1705_s22 = sld [smem:[#allocation6]] }
 0x23a   : > { %v1286_v52 = vadd.f32 %v1284_v49, %v1279_v25  ;;  %v1454_v49 = vmul.f32 %v1452_v48, %v3077_v29 }
 0x23b   : > { %v1295_v20 = vpop.permute.xlu1 %1294  ;;  %v1345_v55 = vpop.permute.xlu0 %1344 }
 0x23c   : > { %v1350_v59 = vadd.f32 %v1345_v55, %v1337_v32  ;;  %v1299_v3 = vadd.f32 %v1295_v20, %v1286_v52  ;;  %v1537_v32 = vstv %s3213_s19 }
 0x23d   : > { %1699 = vrot.lane.b32.xlu1 %v1694_v57, %s2262_s26  ;;  %s2263_s26 = smov 16  }
 0x23f   : > { %v1308_v60 = vpop.permute.xlu1 %1307  ;;  %v1358_v62 = vpop.permute.xlu0 %1357 }
 0x240   : > { %v1363_v61 = vadd.f32 %v1358_v62, %v1350_v59  ;;  %v1312_v53 = vadd.f32 %v1308_v60, %v1299_v3 }
 0x242   : > { %v1370_v50 = vadd.f32 %v1368_v1, %v1363_v61  ;;  %v1538_v61 = vmul.f32 %v1537_v32, %v3095_v47 }
 0x243   : > { %v1321_v44 = vpop.permute.xlu1 %1320  ;;  %v1378_v2 = vpop.permute.xlu0 %1377 }
 0x244   : > { %v1325_v9 = vadd.f32 %v1321_v44, %v1312_v53  ;;  %v1383_v13 = vadd.f32 %v1378_v2, %v1370_v50 }
 0x247   : > { %v1334_v4 = vpop.permute.xlu1 %1333  ;;  %v1391_v7 = vpop.permute.xlu0 %1390 }
 0x248   : > { %v1338_v11 = vadd.f32 %v1334_v4, %v1325_v9  ;;  %v1396_v5 = vadd.f32 %v1391_v7, %v1383_v13 }
 0x24b   : > { %v1347_v27 = vpop.permute.xlu1 %1346  ;;  %v1404_v10 = vpop.permute.xlu0 %1403 }
 0x24c   : > { %v1351_v14 = vadd.f32 %v1347_v27, %v1338_v11  ;;  %v1409_v21 = vadd.f32 %v1404_v10, %v1396_v5 }
 0x24f   : > { %v1360_v15 = vpop.permute.xlu1 %1359  ;;  %v1417_v18 = vpop.permute.xlu0 %1416 }
 0x250   : > { %v1364_v0 = vadd.f32 %v1360_v15, %v1351_v14  ;;  %v1422_v26 = vadd.f32 %v1417_v18, %v1409_v21  ;;  %v1539_v18 = vmul.f32 %v1537_v32, %v3128_v23 }
 0x252   : > { %v1371_v22 = vadd.f32 %v1369_v19, %v1364_v0 }
 0x253   : > { %v1380_v63 = vpop.permute.xlu1 %1379  ;;  %v1430_v24 = vpop.permute.xlu0 %1429 }
 0x254   : > { %v1435_v28 = vadd.f32 %v1430_v24, %v1422_v26  ;;  %v1384_v35 = vadd.f32 %v1380_v63, %v1371_v22  ;;  %v1622_v63 = vstv %s3218_s18 }
 0x257   : > { %v1393_v37 = vpop.permute.xlu1 %1392  ;;  %v1443_v30 = vpop.permute.xlu0 %1442 }
 0x258   : > { %v1448_v31 = vadd.f32 %v1443_v30, %v1435_v28  ;;  %v1397_v39 = vadd.f32 %v1393_v37, %v1384_v35  ;;  %v1623_v37 = vmul.f32 %v1622_v63, %v3146_v6  ;;  %v1624_v6 = vmul.f32 %v1622_v63, %v3179_v54 }
 0x25a   : > { %v1455_v8 = vadd.f32 %v1453_v16, %v1448_v31 }
 0x25b   : > { %v1406_v33 = vpop.permute.xlu1 %1405  ;;  %v1463_v34 = vpop.permute.xlu0 %1462 }
 0x25c   : > { %v1410_v36 = vadd.f32 %v1406_v33, %v1397_v39  ;;  %v1468_v43 = vadd.f32 %v1463_v34, %v1455_v8 }
 0x25f   : > { %v1419_v12 = vpop.permute.xlu1 %1418  ;;  %v1476_v38 = vpop.permute.xlu0 %1475 }
 0x260   : > { %v1423_v17 = vadd.f32 %v1419_v12, %v1410_v36  ;;  %v1481_v25 = vadd.f32 %v1476_v38, %v1468_v43 }
 0x263   : > { %v1432_v40 = vpop.permute.xlu1 %1431  ;;  %v1489_v42 = vpop.permute.xlu0 %1488 }
 0x264   : > { %v1436_v41 = vadd.f32 %v1432_v40, %v1423_v17  ;;  %v1494_v51 = vadd.f32 %v1489_v42, %v1481_v25 }
 0x267   : > { %v1445_v45 = vpop.permute.xlu1 %1444  ;;  %v1502_v46 = vpop.permute.xlu0 %1501 }
 0x268   : > { %v1449_v56 = vadd.f32 %v1445_v45, %v1436_v41  ;;  %v1507_v57 = vadd.f32 %v1502_v46, %v1494_v51 }
 0x26a   : > { %v1456_v52 = vadd.f32 %v1454_v49, %v1449_v56 }
 0x26b   : > { %v1465_v20 = vpop.permute.xlu1 %1464  ;;  %v1515_v55 = vpop.permute.xlu0 %1514 }
 0x26c   : > { %v1520_v58 = vadd.f32 %v1515_v55, %v1507_v57  ;;  %v1469_v2 = vadd.f32 %v1465_v20, %v1456_v52  ;;  %v1706_v20 = vstv %s1705_s22 }
 0x26f   : > { %v1478_v59 = vpop.permute.xlu1 %1477  ;;  %v1528_v60 = vpop.permute.xlu0 %1527 }
 0x270   : > { %v1533_v62 = vadd.f32 %v1528_v60, %v1520_v58  ;;  %v1482_v7 = vadd.f32 %v1478_v59, %v1469_v2 }
 0x272   : > { %v1540_v1 = vadd.f32 %v1538_v61, %v1533_v62 }
 0x273   : > { %v1491_v50 = vpop.permute.xlu1 %1490  ;;  %v1548_v44 = vpop.permute.xlu0 %1547 }
 0x274   : > { %v1495_v29 = vadd.f32 %v1491_v50, %v1482_v7  ;;  %v1553_v10 = vadd.f32 %v1548_v44, %v1540_v1 }
 0x277   : > { %v1504_v3 = vpop.permute.xlu1 %1503  ;;  %v1561_v4 = vpop.permute.xlu0 %1560 }
 0x278   : > { %v1508_v27 = vadd.f32 %v1504_v3, %v1495_v29  ;;  %v1566_v15 = vadd.f32 %v1561_v4, %v1553_v10 }
 0x27b   : > { %v1517_v53 = vpop.permute.xlu1 %1516  ;;  %v1574_v9 = vpop.permute.xlu0 %1573 }
 0x27c   : > { %v1521_v11 = vadd.f32 %v1517_v53, %v1508_v27  ;;  %v1579_v5 = vadd.f32 %v1574_v9, %v1566_v15 }
 0x27f   : > { %v1530_v13 = vpop.permute.xlu1 %1529  ;;  %v1587_v14 = vpop.permute.xlu0 %1586 }
 0x280   : > { %v1534_v47 = vadd.f32 %v1530_v13, %v1521_v11  ;;  %v1592_v22 = vadd.f32 %v1587_v14, %v1579_v5 }
 0x282   : > { %v1541_v0 = vadd.f32 %v1539_v18, %v1534_v47 }
 0x283   : > { %v1550_v19 = vpop.permute.xlu1 %1549  ;;  %v1600_v21 = vpop.permute.xlu0 %1599 }
 0x284   : > { %v1605_v24 = vadd.f32 %v1600_v21, %v1592_v22  ;;  %v1554_v8 = vadd.f32 %v1550_v19, %v1541_v0 }
 0x287   : > { %v1563_v26 = vpop.permute.xlu1 %1562  ;;  %v1613_v48 = vpop.permute.xlu0 %1612 }
 0x288   : > { %v1618_v28 = vadd.f32 %v1613_v48, %v1605_v24  ;;  %v1567_v35 = vadd.f32 %v1563_v26, %v1554_v8 }
 0x28a   : > { %v1625_v30 = vadd.f32 %v1623_v37, %v1618_v28 }
 0x28b   : > { %v1576_v31 = vpop.permute.xlu1 %1575  ;;  %v1633_v16 = vpop.permute.xlu0 %1632 }
 0x28c   : > { %v1580_v23 = vadd.f32 %v1576_v31, %v1567_v35  ;;  %v1638_v36 = vadd.f32 %v1633_v16, %v1625_v30 }
 0x28f   : > { %v1589_v33 = vpop.permute.xlu1 %1588  ;;  %v1646_v34 = vpop.permute.xlu0 %1645 }
 0x290   : > { %v1593_v39 = vadd.f32 %v1589_v33, %v1580_v23  ;;  %v1651_v43 = vadd.f32 %v1646_v34, %v1638_v36 }
 0x293   : > { %v1602_v12 = vpop.permute.xlu1 %1601  ;;  %v1659_v38 = vpop.permute.xlu0 %1658 }
 0x294   : > { %v1606_v40 = vadd.f32 %v1602_v12, %v1593_v39  ;;  %v1664_v45 = vadd.f32 %v1659_v38, %v1651_v43  ;;  %v1824_v43 = vld [vmem:[%s2436_s12 + $0x2] sm:$0x3] }
 0x297   : > { %v1615_v42 = vpop.permute.xlu1 %1614  ;;  %v1672_v17 = vpop.permute.xlu0 %1671 }
 0x298   : > { %v1619_v41 = vadd.f32 %v1615_v42, %v1606_v40  ;;  %v1677_v49 = vadd.f32 %v1672_v17, %v1664_v45  ;;  %v1821_v17 = vld [vmem:[%s2436_s12] sm:$0x3] }
 0x29a   : > { %v1626_v46 = vadd.f32 %v1624_v6, %v1619_v41  ;;  %v1827_v41 = vld [vmem:[%s2436_s12 + $0x4] sm:$0x3]  ;;  %v1830_v6 = vld [vmem:[%s2436_s12 + $0x6] sm:$0x3]  ;;  %s2270_s12 = smov [#allocation12]  }
 0x29b   : > { %v1635_v25 = vpop.permute.xlu1 %1634  ;;  %v1685_v56 = vpop.permute.xlu0 %1684  ;;  %s2178_s19 = sshll.u32 %s2270_s12, 4  ;;  %s2179_s19 = int_to_ptr.vmem [resolvable:$false] %s2178_s19 }
 0x29c   : > { %v1690_v51 = vadd.f32 %v1685_v56, %v1677_v49  ;;  %v1639_v60 = vadd.f32 %v1635_v25, %v1626_v46  ;;  %s2180_s18 = scalar_lea.vmem %s2179_s19, 256  ;;  %p2181_p0 = scmp.lt.s32.totalorder %s3248_s30, %s2179_s19 }
 0x29d   : > { %p2182_p3 = scmp.lt.s32.totalorder %s2180_s18, %s2174_s11 }
 0x29f   : > { %v1648_v52 = vpop.permute.xlu1 %1647  ;;  %v1698_v55 = vpop.permute.xlu0 %1697  ;;  %p2183_p12 = por %p2182_p3, %p2181_p0 }
 0x2a0   : > { %v1703_v57 = vadd.f32 %v1698_v55, %v1690_v51  ;;  %v1652_v61 = vadd.f32 %v1648_v52, %v1639_v60 }
 0x2a1   : > { %p2184_p5 = pnand %p2183_p12, %p2177_p7 }
 0x2a2   : > { %v1707_v32 = vadd.f32 %v1706_v20, %v1703_v57 }
 0x2a3   : > { %v1661_v58 = vpop.permute.xlu1 %1660 }
 0x2a4   : > { %v2036_v59 = vmul.f32 -1.442695, %v1707_v32  ;;  %v1665_v1 = vadd.f32 %v1661_v58, %v1652_v61 }
 0x2a6   : > { %2121 = vpow2.f32 %v2036_v59 }
 0x2a7   : > { %v1674_v62 = vpop.permute.xlu1 %1673 }
 0x2a8   : > { %v1678_v54 = vadd.f32 %v1674_v62, %v1665_v1 }
 0x2ab   : > { %v1687_v50 = vpop.permute.xlu1 %1686 }
 0x2ac   : > { %v1691_v44 = vadd.f32 %v1687_v50, %v1678_v54 }
 0x2af   : > { %v1700_v2 = vpop.permute.xlu1 %1699 }
 0x2b0   : > { %v2122_v3 = vpop.eup %2121  ;;  %v1704_v4 = vadd.f32 %v1700_v2, %v1691_v44 }
 0x2b1   : > { %v1715_v7 = vadd.f32 1.0, %v2122_v3 }
 0x2b2   : > { %v1708_v29 = vadd.f32 %v1706_v20, %v1704_v4 }
 0x2b3   : > { %2123 = vrcp.f32 %v1715_v7 }
 0x2b4   : > { %v2037_v53 = vmul.f32 -1.442695, %v1708_v29 }
 0x2b6   : > { %2125 = vpow2.f32 %v2037_v53 }
 0x2bd   : > { %v2124_v9 = vpop.eup %2123 }
 0x2be   : > { %1722 = vst.msk [vmem:[#allocation4] sm:$0xff] %vm1721_vm3, %v2124_v9 }
 0x2c0   : > { %v2126_v27 = vpop.eup %2125 }
 0x2c1   : > { %v1716_v10 = vadd.f32 1.0, %v2126_v27 }
 0x2c3   : > { %2127 = vrcp.f32 %v1716_v10 }
 0x2c5   : > { %v1727_v11 = vld [vmem:[#allocation4 + $0x1] sm:$0x1]  ;;  %v1724_v13 = vld [vmem:[#allocation4] sm:$0x1]  ;;  %v1734_v14 = vld [vmem:[#allocation4 + $0x2] sm:$0x1] }
 0x2c6   : > { %1729 = vrot.lane.b32.xlu0 %v1727_v11, %s2263_s26  ;;  %1726 = vst.msk [vmem:[#allocation5] sm:$0x1] %vm1725_vm4, %v1724_v13  ;;  %v1741_v47 = vld [vmem:[#allocation4 + $0x3] sm:$0x1]  ;;  %v1748_v18 = vld [vmem:[#allocation4 + $0x4] sm:$0x1] }
 0x2c7   : > { %v1755_v0 = vld [vmem:[#allocation4 + $0x5] sm:$0x1]  ;;  %v1762_v22 = vld [vmem:[#allocation4 + $0x6] sm:$0x1]  ;;  %v1769_v24 = vld [vmem:[#allocation4 + $0x7] sm:$0x1] }
 0x2ca   : > { %1736 = vrot.lane.b32.xlu0 %v1734_v14, %s2264_s8 }
 0x2cd   : > { %v2128_v15 = vpop.eup %2127 }
 0x2ce   : > { %1723 = vst.msk [vmem:[#allocation4 + $0x8] sm:$0xff] %vm1721_vm3, %v2128_v15  ;;  %1743 = vrot.lane.b32.xlu0 %v1741_v47, %s2265_s13 }
 0x2d2   : > { %1750 = vrot.lane.b32.xlu0 %v1748_v18, %s2266_s24 }
 0x2d5   : > { %v1778_v5 = vld [vmem:[#allocation4 + $0x9] sm:$0x1]  ;;  %v1776_v19 = vld [vmem:[#allocation4 + $0x8] sm:$0x1]  ;;  %v1784_v21 = vld [vmem:[#allocation4 + $0xa] sm:$0x1] }
 0x2d6   : > { %1780 = vrot.lane.b32.xlu1 %v1778_v5, %s2263_s26  ;;  %1757 = vrot.lane.b32.xlu0 %v1755_v0, %s2267_s21  ;;  %1777 = vst.msk [vmem:[#allocation5 + $0x1] sm:$0x1] %vm1725_vm4, %v1776_v19  ;;  %v1790_v63 = vld [vmem:[#allocation4 + $0xb] sm:$0x1]  ;;  %v1796_v26 = vld [vmem:[#allocation4 + $0xc] sm:$0x1] }
 0x2d7   : > { %v1802_v48 = vld [vmem:[#allocation4 + $0xd] sm:$0x1]  ;;  %v1808_v28 = vld [vmem:[#allocation4 + $0xe] sm:$0x1]  ;;  %v1814_v37 = vld [vmem:[#allocation4 + $0xf] sm:$0x1] }
 0x2da   : > { %1786 = vrot.lane.b32.xlu1 %v1784_v21, %s2264_s8  ;;  %1764 = vrot.lane.b32.xlu0 %v1762_v22, %s2268_s23 }
 0x2de   : > { %1792 = vrot.lane.b32.xlu1 %v1790_v63, %s2265_s13  ;;  %1771 = vrot.lane.b32.xlu0 %v1769_v24, %s2269_s27 }
 0x2e2   : > { %1798 = vrot.lane.b32.xlu1 %v1796_v26, %s2266_s24 }
 0x2e6   : > { %1804 = vrot.lane.b32.xlu1 %v1802_v48, %s2267_s21 }
 0x2ea   : > { %1810 = vrot.lane.b32.xlu1 %v1808_v28, %s2268_s23 }
 0x2ee   : > { %1816 = vrot.lane.b32.xlu1 %v1814_v37, %s2269_s27 }
 0x338   : > { %v1730_v30 = vpop.permute.xlu0 %1729 }
 0x339   : > { %1733 = vst.msk [vmem:[#allocation5] sm:$0x1] %vm1732_vm5, %v1730_v30 }
 0x33c   : > { %v1737_v31 = vpop.permute.xlu0 %1736 }
 0x33d   : > { %1740 = vst.msk [vmem:[#allocation5] sm:$0x1] %vm1739_vm6, %v1737_v31 }
 0x340   : > { %v1744_v16 = vpop.permute.xlu0 %1743 }
 0x341   : > { %1747 = vst.msk [vmem:[#allocation5] sm:$0x1] %vm1746_vm7, %v1744_v16 }
 0x344   : > { %v1751_v8 = vpop.permute.xlu0 %1750 }
 0x345   : > { %1754 = vst.msk [vmem:[#allocation5] sm:$0x1] %vm1753_vm8, %v1751_v8 }
 0x348   : > { %v1781_v33 = vpop.permute.xlu1 %1780  ;;  %v1758_v34 = vpop.permute.xlu0 %1757 }
 0x349   : > { %1783 = vst.msk [vmem:[#allocation5 + $0x1] sm:$0x1] %vm1732_vm5, %v1781_v33 }
 0x34a   : > { %1761 = vst.msk [vmem:[#allocation5] sm:$0x1] %vm1760_vm9, %v1758_v34 }
 0x34c   : > { %v1787_v35 = vpop.permute.xlu1 %1786  ;;  %v1765_v23 = vpop.permute.xlu0 %1764 }
 0x34d   : > { %1789 = vst.msk [vmem:[#allocation5 + $0x1] sm:$0x1] %vm1739_vm6, %v1787_v35 }
 0x34e   : > { %1768 = vst.msk [vmem:[#allocation5] sm:$0x1] %vm1767_vm10, %v1765_v23 }
 0x350   : > { %v1793_v12 = vpop.permute.xlu1 %1792  ;;  %v1772_v38 = vpop.permute.xlu0 %1771 }
 0x351   : > { %1795 = vst.msk [vmem:[#allocation5 + $0x1] sm:$0x1] %vm1746_vm7, %v1793_v12 }
 0x352   : > { %1775 = vst.msk [vmem:[#allocation5] sm:$0x1] %vm1774_vm11, %v1772_v38 }
 0x354   : > { %v1799_v39 = vpop.permute.xlu1 %1798 }
 0x355   : > { %1801 = vst.msk [vmem:[#allocation5 + $0x1] sm:$0x1] %vm1753_vm8, %v1799_v39 }
 0x358   : > { %v1805_v36 = vpop.permute.xlu1 %1804 }
 0x359   : > { %1807 = vst.msk [vmem:[#allocation5 + $0x1] sm:$0x1] %vm1760_vm9, %v1805_v36 }
 0x35c   : > { %v1811_v40 = vpop.permute.xlu1 %1810 }
 0x35d   : > { %1813 = vst.msk [vmem:[#allocation5 + $0x1] sm:$0x1] %vm1767_vm10, %v1811_v40 }
 0x360   : > { %v1817_v42 = vpop.permute.xlu1 %1816 }
 0x361   : > { %1819 = vst.msk [vmem:[#allocation5 + $0x1] sm:$0x1] %vm1774_vm11, %v1817_v42 }
 0x368   : > { %v1820_v45 = vld [vmem:[#allocation5] sm:$0x3] }
 0x369   : > { %v1822_v46 = vmul.f32 %v1821_v17, %v1820_v45  ;;  %v1825_v25 = vmul.f32 %v1824_v43, %v1820_v45  ;;  %v1828_v56 = vmul.f32 %v1827_v41, %v1820_v45  ;;  %v1831_v49 = vmul.f32 %v1830_v6, %v1820_v45 }
 0x36b   : > { %1823 = vst [vmem:[%s200_s29] sm:$0x3] %v1822_v46  ;;  %1826 = vst [vmem:[%s200_s29 + $0x2] sm:$0x3] %v1825_v25 }
 0x36c   : > { %1829 = vst [vmem:[%s200_s29 + $0x4] sm:$0x3] %v1828_v56  ;;  %1832 = vst [vmem:[%s200_s29 + $0x6] sm:$0x3] %v1831_v49 }
 0x36d   : > { %2187 = shalt.err (!%p2184_p5)
}
 0x36e   : > { %s2188_s10 = scalar_lea.hbm %s3246_s9, 128  ;;  %s2192_s8 = scalar_lea.hbm %s3293_s3, 256 }
 0x36f   : > { %p2189_p10 = scmp.ne.s32.totalorder %s3246_s9, %s2188_s10  ;;  %p2193_p6 = scmp.lt.u32.totalorder %s3246_s9, %s3293_s3 }
 0x370   : > { %p2194_p13 = scmp.lt.u32.totalorder %s2192_s8, %s2188_s10  ;;  %p2196_p8 = scmp.lt.u32.totalorder %s2188_s10, %s3246_s9 }
 0x371   : > { %p2190_p2 = pnand %p2189_p10, %p3308_p9 }
 0x372   : > { %p2195_p4 = por %p2194_p13, %p2193_p6 }
 0x373   : > { %p2191_p1 = pneg %p2190_p2 }
 0x374   : > { %p2197_p11 = por %p2196_p8, %p2195_p4 }
 0x376   : > { %p2198_p7 = pnand %p2197_p11, %p2191_p1 }
 0x378   : > { %2201 = shalt.err (!%p2198_p7)
}
 0x379   : > { %2048 = dma.vmem_to_hbm [thread:$0]  (%p3308_p9), %s3248_s30, 128, %s3246_s9, %s1834_s1  }
 0x37a PF: > { %s1859_s21 = sand.u32 1, %s2232_s14   ;;  %p3309_p0 = scmp.ne.s32.totalorder %s3298_s20, 0 }
 0x37b   : > { %p3310_p3 = scmp.ge.s32.totalorder %s2244_s17, 2  ;;  %s1860_s23 = scalar_lea.sflag [#allocation9], %s1859_s21 }
 0x37d   : > { %p2059_p12 = pnand %p3310_p3, %p3309_p0 }
 0x37f   : > { %2227 = dma.done.wait (!%p2059_p12), %s1860_s23, 128  }
 0x380   : > { %2229 = vsyncadd (!%p2059_p12), %s1860_s23, 4294967168  ;;  %p18_p5 = scmp.ge.s32.totalorder %s2345_s25, 4   ;;  %s3311_s14 = smov %s2236_s15 }
 0x381   : > { %s3312_s15 = smov %s2240_s16  ;;  %s3313_s16 = smov %s2369_s5 }
 0x382   : > { %s3314_s17 = smov %s2345_s25  ;;  %20 = sbr.rel (!%p18_p5) target bundleno = 8 (0x8), region = 84 }
 0x389   :  { %1865 = vsyncpa [#allocation8], 1 }
 0x38a   :  { %1867 = vsyncpa [#allocation8 + $0x1], 1 }
 0x38b   :  { %1868 = vsyncpa [#allocation9], 1 }
 0x38c   :  { %1870 = vsyncpa [#allocation9 + $0x1], 1 }
 0x38d   :  { %1871 = vsyncpa [#allocation10], 1 }
 0x38e   :  { %1873 = vsyncpa [#allocation10 + $0x1], 1 }

</bundles_post_ra>
